<compile_context>
chip_gen: v7x
topology: tpu7x:2x2x1
jax: 0.10.0
libtpu: 0.0.40
codegen_flags: <defaults>
</compile_context>

<pallas_src>
import jax
import jax.numpy as jnp
from jax.experimental import pallas as pl
from jax.experimental.pallas import tpu as pltpu

LEAKY_SLOPE = 0.2
BN_EPS = 1e-5
LANE = 128
F32 = jnp.float32
BF16 = jnp.bfloat16


def _leaky_relu(x, alpha=LEAKY_SLOPE):
    return jnp.where(x >= 0, x, alpha * x)


def _round_up(n, m):
    return ((n + m - 1) // m) * m


# --------------------------------------------------------------------------
# Fused whole-network Pallas kernel
# --------------------------------------------------------------------------
def make_network_kernel(block_cfgs, final_cfg, L, body_off):

    def conv_same(hbuf, h, w_ref, k):
        # 'same' 1-D conv (odd k) as k accumulated MXU matmuls -- no (L, k*C)
        # im2col buffer.  Halo rows live in a persistent bf16 scratch: only the
        # 2*pad halo rows are zeroed per conv; the body is written once at a
        # 16-row-aligned offset so the large store is sublane-aligned for bf16.
        cin = h.shape[-1]
        h_bf = h.astype(BF16)
        if k == 1:
            return jnp.dot(h_bf, w_ref[0], preferred_element_type=F32)
        pad = (k - 1) // 2
        lo = body_off - pad
        hbuf[lo:body_off, 0:cin] = jnp.zeros((pad, cin), BF16)
        hbuf[body_off:body_off + L, 0:cin] = h_bf
        hbuf[body_off + L:body_off + L + pad, 0:cin] = jnp.zeros((pad, cin), BF16)
        acc = None
        for d in range(k):
            part = jnp.dot(hbuf[lo + d:lo + d + L, 0:cin], w_ref[d],
                           preferred_element_type=F32)
            acc = part if acc is None else acc + part
        return acc

    def kernel(x_ref, *refs):
        hbuf = refs[-1]          # persistent bf16 halo scratch
        o_ref = refs[-2]
        w = refs[:-2]

        h = x_ref[0].astype(F32)          # (L, Cin) -- no 128-lane input padding
        i = 0
        for cfg in block_cfgs:
            k = cfg['k']
            w1_ref, t1 = w[i], w[i + 1][...]
            w2_ref, t2 = w[i + 2], w[i + 3][...]
            wse1, wse2 = w[i + 4][...], w[i + 5][...]
            i += 6
            if cfg['has_proj']:
                wsc, tsc = w[i][...], w[i + 1][...]
                i += 2

            x_in = h
            # conv1 + BN1 (scale folded into w1) + LeakyReLU; dropout1 = identity
            a = _leaky_relu(conv_same(hbuf, h, w1_ref, k) + t1)
            # conv2 + BN2 (scale folded into w2);             dropout2 = identity
            g = conv_same(hbuf, a, w2_ref, k) + t2
            # squeeze-and-excite (mean / sigmoid / scaling stay in f32)
            avg = jnp.mean(g, axis=0, keepdims=True)                # (1, Coutp)
            z = jnp.maximum(
                jnp.dot(avg.astype(BF16), wse1, preferred_element_type=F32), 0.0)
            gate = jax.nn.sigmoid(
                jnp.dot(z.astype(BF16), wse2, preferred_element_type=F32))
            g = g * gate
            # residual + final LeakyReLU
            if cfg['use_residual']:
                if cfg['has_proj']:
                    g = g + (jnp.dot(x_in.astype(BF16), wsc,
                                     preferred_element_type=F32) + tsc)
                else:
                    if x_in.shape[-1] != g.shape[-1]:   # block-0 identity residual
                        x_in = jnp.concatenate(
                            [x_in,
                             jnp.zeros((L, g.shape[-1] - x_in.shape[-1]), F32)],
                            axis=-1)
                    g = g + x_in
            h = _leaky_relu(g)

        # final Conv1d (with bias): true (unpadded) output channels, transposed
        # so L is the lane-dense store axis -> no 128x-padded HBM writeback.
        wf_ref, bf = w[i], w[i + 1][...]
        y = conv_same(hbuf, h, wf_ref, final_cfg['k']) + bf         # (L, Cof)
        o_ref[0] = jnp.transpose(y).astype(o_ref.dtype)             # (Cof, L)

    return kernel


# --------------------------------------------------------------------------
# Parameter prep: fold BN scale into weights, cast to bf16, pad only the
# output (lane) channel dims to 128; keep conv weights per-tap (k, Cin, Cout).
# --------------------------------------------------------------------------
def prepare_kernel_params(params, input_channels):
    cfgs, arrays = [], []
    cin_w = input_channels        # activation width feeding the next conv

    for p in params['blocks']:
        k, cout = p['k'], p['cout']
        cin_a = p['w1'].shape[1]                 # true in-channels of this block
        coutp = _round_up(cout, LANE)            # output (lane) dim padded to 128

        w1 = (p['w1'] * p['s1'][0]).astype(BF16)              # fold BN1 scale
        w1p = jnp.zeros((k, cin_w, coutp), BF16).at[:, :cin_a, :cout].set(w1)
        t1p = jnp.zeros((1, coutp), F32).at[:, :cout].set(p['t1'])

        w2 = (p['w2'] * p['s2'][0]).astype(BF16)              # fold BN2 scale
        w2p = jnp.zeros((k, coutp, coutp), BF16).at[:, :cout, :cout].set(w2)
        t2p = jnp.zeros((1, coutp), F32).at[:, :cout].set(p['t2'])

        hid = p['wse1'].shape[1]
        wse1p = jnp.zeros((coutp, hid), BF16).at[:cout, :].set(p['wse1'].astype(BF16))
        wse2p = jnp.zeros((hid, coutp), BF16).at[:, :cout].set(p['wse2'].astype(BF16))

        arrays += [w1p, t1p, w2p, t2p, wse1p, wse2p]
        if p['has_proj']:
            wsc = (p['wsc'] * p['ssc'][0]).astype(BF16)       # fold shortcut BN scale
            wscp = jnp.zeros((cin_w, coutp), BF16).at[:cin_a, :cout].set(wsc)
            tscp = jnp.zeros((1, coutp), F32).at[:, :cout].set(p['tsc'])
            arrays += [wscp, tscp]

        cfgs.append(dict(k=k, cin_w=cin_w, coutp=coutp, hid=hid,
                         use_residual=p['use_residual'], has_proj=p['has_proj']))
        cin_w = coutp

    wf = params['final_w']                       # (kf, cin_last, Cout_final)
    kf, cin_a, cof = wf.shape
    wfp = jnp.zeros((kf, cin_w, cof), BF16).at[:, :cin_a, :].set(wf.astype(BF16))
    bfp = params['final_b'].astype(F32).reshape(1, cof)
    arrays += [wfp, bfp]
    final_cfg = dict(k=kf, cin_w=cin_w, cout=cof)
    return cfgs, final_cfg, arrays


def _cost_estimate(cfgs, final_cfg, B, L, x_bytes, out_bytes, arrays):
    flops = 0
    transcendentals = 0
    for c in cfgs:
        flops += 2 * L * c['k'] * c['cin_w'] * c['coutp']       # conv1
        flops += 2 * L * c['k'] * c['coutp'] * c['coutp']       # conv2
        flops += 4 * c['coutp'] * c['hid']                      # SE fc1 + fc2
        if c['has_proj']:
            flops += 2 * L * c['cin_w'] * c['coutp']            # shortcut conv
        transcendentals += c['coutp']                           # sigmoid
    flops += 2 * L * final_cfg['k'] * final_cfg['cin_w'] * final_cfg['cout']
    weight_bytes = sum(int(a.size) * a.dtype.itemsize for a in arrays)
    return pl.CostEstimate(flops=int(B * flops),
                           transcendentals=int(B * transcendentals),
                           bytes_accessed=int(x_bytes + out_bytes + weight_bytes))


def _derive_vmem_limit(L, cin, cof, cmax, kmax, arrays):
    weight_bytes = sum(int(a.size) * a.dtype.itemsize for a in arrays)
    act_bytes = 6 * L * cmax * 4                    # a handful of live f32 (L, C) values
    scratch_bytes = (L + 2 * kmax + 16) * cmax * 2  # bf16 halo scratch
    io_bytes = 2 * L * cin * 4 + 2 * cof * L * 4    # double-buffered in/out blocks
    est = 2 * weight_bytes + act_bytes + scratch_bytes + io_bytes + (8 << 20)
    cap = 48 << 20                                  # conservative default (< v7x 64 MiB)
    try:
        info = pltpu.get_tpu_info()
        phys = getattr(info, "vmem_capacity_bytes", None)
        if phys:
            cap = int(0.75 * phys)                  # ~96 MiB on v5e/v6e, ~48 MiB on v7x
    except Exception:
        pass
    return int(min(max(est, 32 << 20), cap))


# --------------------------------------------------------------------------
# Forward wrapper: one pallas_call for the whole network
# --------------------------------------------------------------------------
def se_resnet1d_forward(x, params):
    B, L, cin = x.shape
    for p in params['blocks']:
        assert p['k'] % 2 == 1, "only odd kernel sizes are supported"
    assert params['final_w'].shape[0] % 2 == 1, "only odd kernel sizes are supported"

    cfgs, final_cfg, arrays = prepare_kernel_params(params, cin)
    cof = final_cfg['cout']

    kmax = max([final_cfg['k']] + [c['k'] for c in cfgs])
    max_pad = (kmax - 1) // 2
    body_off = _round_up(max_pad, 16) if max_pad > 0 else 0
    cmax = max([cin, final_cfg['cin_w']] + [c['coutp'] for c in cfgs])
    scratch_rows = _round_up(body_off + L + max_pad, 8)

    kernel = make_network_kernel(cfgs, final_cfg, L, body_off)
    scratch = pltpu.VMEM((scratch_rows, cmax), BF16)

    cost = _cost_estimate(cfgs, final_cfg, B, L,
                          x_bytes=int(x.size) * x.dtype.itemsize,
                          out_bytes=B * L * cof * x.dtype.itemsize,
                          arrays=arrays)
    vmem_limit = _derive_vmem_limit(L, cin, cof, cmax, kmax, arrays)

    def run(single_buffer_weights):
        in_specs = [pl.BlockSpec((1, L, cin), lambda b: (b, 0, 0))]
        for a in arrays:
            kwargs = {}
            if single_buffer_weights:
                # Grid-invariant weights: no need for a second pipeline buffer.
                kwargs['pipeline_mode'] = pl.Buffered(1)
            in_specs.append(
                pl.BlockSpec(a.shape, lambda b, n=a.ndim: (0,) * n, **kwargs))
        y = pl.pallas_call(
            kernel,
            out_shape=jax.ShapeDtypeStruct((B, cof, L), x.dtype),
            grid_spec=pltpu.PrefetchScalarGridSpec(
                num_scalar_prefetch=0,
                grid=(B,),
                in_specs=in_specs,
                out_specs=pl.BlockSpec((1, cof, L), lambda b: (b, 0, 0)),
                scratch_shapes=[scratch],
            ),
            compiler_params=pltpu.CompilerParams(
                dimension_semantics=("parallel",),     # batch steps independent
                vmem_limit_bytes=vmem_limit),
            cost_estimate=cost,
        )(x, *arrays)
        return jax.block_until_ready(y)

    try:
        y = run(True)
    except Exception:
        # Older JAX without BlockSpec(pipeline_mode=...): use default buffering.
        y = run(False)

    # (B, Cout, L) lane-dense store -> (B, L, Cout) as the PyTorch model returns.
    return jnp.transpose(y, (0, 2, 1))


# --------------------------------------------------------------------------
# Deterministic synthetic parameter init (shapes follow the PyTorch __init__)
# --------------------------------------------------------------------------
def fold_bn(bias, gamma, beta, mean, var):
    s = gamma / jnp.sqrt(var + BN_EPS)
    t = (bias - mean) * s + beta
    return s.reshape(1, -1), t.reshape(1, -1)


def init_block(key, cin, cout, k, use_residual=True):
    keys = iter(jax.random.split(key, 24))

    def nrm(shape, scale=1.0):
        return jax.random.normal(next(keys), shape, jnp.float32) * scale

    def bn_params():
        gamma = 1.0 + nrm((cout,), 0.1)
        beta = nrm((cout,), 0.1)
        mean = nrm((cout,), 0.1)
        var = 1.0 + 0.2 * jax.random.uniform(next(keys), (cout,), jnp.float32)
        return gamma, beta, mean, var

    w1 = nrm((k, cin, cout), 1.0 / (cin * k) ** 0.5)
    b1 = nrm((cout,), 0.05)
    s1, t1 = fold_bn(b1, *bn_params())

    w2 = nrm((k, cout, cout), 1.0 / (cout * k) ** 0.5)
    b2 = nrm((cout,), 0.05)
    s2, t2 = fold_bn(b2, *bn_params())

    red = max(4, cout // 16)     # matches SE_ResBlock: reduction = max(4, out_channels // 16)
    chid = max(1, cout // red)
    wse1 = nrm((cout, chid), 1.0 / cout ** 0.5)
    wse2 = nrm((chid, cout), 1.0 / chid ** 0.5)

    has_proj = use_residual and (cin != cout)
    if has_proj:
        wsc = nrm((cin, cout), 1.0 / cin ** 0.5)
        bsc = nrm((cout,), 0.05)
        ssc, tsc = fold_bn(bsc, *bn_params())
    else:
        wsc = jnp.zeros((cin, cout), jnp.float32)
        ssc = jnp.zeros((1, cout), jnp.float32)
        tsc = jnp.zeros((1, cout), jnp.float32)

    return dict(k=k, cout=cout, use_residual=use_residual, has_proj=has_proj,
                w1=w1, s1=s1, t1=t1, w2=w2, s2=s2, t2=t2,
                wse1=wse1, wse2=wse2, wsc=wsc, ssc=ssc, tsc=tsc)


def init_model(key, input_channels, num_blocks, channels, kernel_sizes,
               use_residual=True):
    keys = jax.random.split(key, num_blocks + 2)
    blocks = []
    cin = input_channels
    for i in range(num_blocks):
        blocks.append(init_block(keys[i], cin, channels[i], kernel_sizes[i],
                                 use_residual))
        cin = channels[i]
    wf = jax.random.normal(keys[-2], (3, cin, input_channels), jnp.float32) \
        * (1.0 / (3 * cin) ** 0.5)
    bf = jax.random.normal(keys[-1], (1, input_channels), jnp.float32) * 0.05
    return dict(blocks=blocks, final_w=wf, final_b=bf)


# --------------------------------------------------------------------------
# Pure-JAX reference: same math (BN folded, bf16 matmul operands, f32
# accumulation / elementwise), no Pallas, no padding.
# --------------------------------------------------------------------------
def _q_bf16(w):
    return w.astype(jnp.bfloat16).astype(jnp.float32)


def _ref_conv1d(x, w):           # x: (B, L, Cin) f32, w: (k, Cin, Cout) bf16-rounded f32
    B, L, _ = x.shape
    k = w.shape[0]
    pad_l = (k - 1) // 2
    xp = _q_bf16(jnp.pad(x, ((0, 0), (pad_l, k - 1 - pad_l), (0, 0))))
    out = jnp.zeros((B, L, w.shape[2]), jnp.float32)
    for d in range(k):
        out = out + jnp.einsum('blc,cd->bld', xp[:, d:d + L, :], w[d])
    return out


def _ref_block(x, p):
    w1 = _q_bf16(p['w1'] * p['s1'][0])
    w2 = _q_bf16(p['w2'] * p['s2'][0])
    wse1, wse2 = _q_bf16(p['wse1']), _q_bf16(p['wse2'])
    h = _leaky_relu(_ref_conv1d(x, w1) + p['t1'])
    g = _ref_conv1d(h, w2) + p['t2']
    avg = jnp.mean(g, axis=1, keepdims=True)
    z = jnp.maximum(jnp.einsum('bic,ch->bih', _q_bf16(avg), wse1), 0.0)
    gate = jax.nn.sigmoid(jnp.einsum('bih,hc->bic', _q_bf16(z), wse2))
    g = g * gate
    if p['use_residual']:
        if p['has_proj']:
            wsc = _q_bf16(p['wsc'] * p['ssc'][0])
            res = jnp.einsum('blc,cd->bld', _q_bf16(x), wsc) + p['tsc']
        else:
            res = x
        g = g + res
    return _leaky_relu(g)


def se_resnet1d_reference(x, params):
    h = x
    for p in params['blocks']:
        h = _ref_block(h, p)
    return _ref_conv1d(h, _q_bf16(params['final_w'])) + params['final_b']


# --------------------------------------------------------------------------
if __name__ == "__main__":
    B, L = 2, 16
    input_channels = 4
    num_blocks = 2
    channels = [8, 8]
    kernel_sizes = [3, 5]    # odd kernels only ('same' symmetric padding)

    key = jax.random.PRNGKey(0)
    kx, kp = jax.random.split(key)
    x = jax.random.normal(kx, (B, L, input_channels), jnp.float32)
    params = init_model(kp, input_channels, num_blocks, channels, kernel_sizes)

    y = se_resnet1d_forward(x, params)
    y = jax.block_until_ready(y)
    assert y.shape == (B, L, input_channels)

    y_ref = se_resnet1d_reference(x, params)
    err = float(jnp.max(jnp.abs(y - y_ref)))
    tol = 2e-3 * (1.0 + float(jnp.max(jnp.abs(y_ref))))
    if err > tol:
        raise AssertionError(
            f"Pallas output mismatch vs reference: max abs err {err} (tol {tol})")

    print("KERNEL_OK")
</pallas_src>

<mosaic_0001>
module attributes {stable_mosaic.version = 11 : i64} {
  func.func @kernel(%arg0: i32, %arg1: memref<1x16x4xf32, #tpu.memory_space<vmem>>, %arg2: memref<3x4x128xbf16, #tpu.memory_space<vmem>>, %arg3: memref<1x128xf32, #tpu.memory_space<vmem>>, %arg4: memref<3x128x128xbf16, #tpu.memory_space<vmem>>, %arg5: memref<1x128xf32, #tpu.memory_space<vmem>>, %arg6: memref<128x2xbf16, #tpu.memory_space<vmem>>, %arg7: memref<2x128xbf16, #tpu.memory_space<vmem>>, %arg8: memref<4x128xbf16, #tpu.memory_space<vmem>>, %arg9: memref<1x128xf32, #tpu.memory_space<vmem>>, %arg10: memref<5x128x128xbf16, #tpu.memory_space<vmem>>, %arg11: memref<1x128xf32, #tpu.memory_space<vmem>>, %arg12: memref<5x128x128xbf16, #tpu.memory_space<vmem>>, %arg13: memref<1x128xf32, #tpu.memory_space<vmem>>, %arg14: memref<128x2xbf16, #tpu.memory_space<vmem>>, %arg15: memref<2x128xbf16, #tpu.memory_space<vmem>>, %arg16: memref<3x128x4xbf16, #tpu.memory_space<vmem>>, %arg17: memref<1x4xf32, #tpu.memory_space<vmem>>, %arg18: memref<1x4x16xf32, #tpu.memory_space<vmem>>, %arg19: memref<40x128xbf16, #tpu.memory_space<vmem>>) attributes {dimension_semantics = [#tpu.dimension_semantics<parallel>], iteration_bounds = array<i64: 2>, scalar_prefetch = 0 : i64, scratch_operands = 1 : i64, tpu.core_type = #tpu.core_type<tc>, window_params = [{transform_indices = @transform_0, window_bounds = array<i64: 1, 16, 4>}, {pipeline_mode = #tpu.pipeline_mode<synchronous>, transform_indices = @transform_1, window_bounds = array<i64: 3, 4, 128>}, {pipeline_mode = #tpu.pipeline_mode<synchronous>, transform_indices = @transform_2, window_bounds = array<i64: 1, 128>}, {pipeline_mode = #tpu.pipeline_mode<synchronous>, transform_indices = @transform_3, window_bounds = array<i64: 3, 128, 128>}, {pipeline_mode = #tpu.pipeline_mode<synchronous>, transform_indices = @transform_4, window_bounds = array<i64: 1, 128>}, {pipeline_mode = #tpu.pipeline_mode<synchronous>, transform_indices = @transform_5, window_bounds = array<i64: 128, 2>}, {pipeline_mode = #tpu.pipeline_mode<synchronous>, transform_indices = @transform_6, window_bounds = array<i64: 2, 128>}, {pipeline_mode = #tpu.pipeline_mode<synchronous>, transform_indices = @transform_7, window_bounds = array<i64: 4, 128>}, {pipeline_mode = #tpu.pipeline_mode<synchronous>, transform_indices = @transform_8, window_bounds = array<i64: 1, 128>}, {pipeline_mode = #tpu.pipeline_mode<synchronous>, transform_indices = @transform_9, window_bounds = array<i64: 5, 128, 128>}, {pipeline_mode = #tpu.pipeline_mode<synchronous>, transform_indices = @transform_10, window_bounds = array<i64: 1, 128>}, {pipeline_mode = #tpu.pipeline_mode<synchronous>, transform_indices = @transform_11, window_bounds = array<i64: 5, 128, 128>}, {pipeline_mode = #tpu.pipeline_mode<synchronous>, transform_indices = @transform_12, window_bounds = array<i64: 1, 128>}, {pipeline_mode = #tpu.pipeline_mode<synchronous>, transform_indices = @transform_13, window_bounds = array<i64: 128, 2>}, {pipeline_mode = #tpu.pipeline_mode<synchronous>, transform_indices = @transform_14, window_bounds = array<i64: 2, 128>}, {pipeline_mode = #tpu.pipeline_mode<synchronous>, transform_indices = @transform_15, window_bounds = array<i64: 3, 128, 4>}, {pipeline_mode = #tpu.pipeline_mode<synchronous>, transform_indices = @transform_16, window_bounds = array<i64: 1, 4>}, {transform_indices = @transform_17, window_bounds = array<i64: 1, 4, 16>}]} {
    %c0 = arith.constant 0 : index
    %c0_0 = arith.constant 0 : index
    %c0_1 = arith.constant 0 : index
    %0 = vector.load %arg1[%c0, %c0_0, %c0_1] : memref<1x16x4xf32, #tpu.memory_space<vmem>>, vector<1x16x4xf32>
    %1 = vector.shape_cast %0 : vector<1x16x4xf32> to vector<16x4xf32>
    %c0_2 = arith.constant 0 : index
    %c0_3 = arith.constant 0 : index
    %2 = vector.load %arg3[%c0_2, %c0_3] : memref<1x128xf32, #tpu.memory_space<vmem>>, vector<1x128xf32>
    %c0_4 = arith.constant 0 : index
    %c0_5 = arith.constant 0 : index
    %3 = vector.load %arg5[%c0_4, %c0_5] : memref<1x128xf32, #tpu.memory_space<vmem>>, vector<1x128xf32>
    %c0_6 = arith.constant 0 : index
    %c0_7 = arith.constant 0 : index
    %4 = vector.load %arg6[%c0_6, %c0_7] : memref<128x2xbf16, #tpu.memory_space<vmem>>, vector<128x2xbf16>
    %c0_8 = arith.constant 0 : index
    %c0_9 = arith.constant 0 : index
    %5 = vector.load %arg7[%c0_8, %c0_9] : memref<2x128xbf16, #tpu.memory_space<vmem>>, vector<2x128xbf16>
    %c0_10 = arith.constant 0 : index
    %c0_11 = arith.constant 0 : index
    %6 = vector.load %arg8[%c0_10, %c0_11] : memref<4x128xbf16, #tpu.memory_space<vmem>>, vector<4x128xbf16>
    %c0_12 = arith.constant 0 : index
    %c0_13 = arith.constant 0 : index
    %7 = vector.load %arg9[%c0_12, %c0_13] : memref<1x128xf32, #tpu.memory_space<vmem>>, vector<1x128xf32>
    %8 = arith.truncf %1 : vector<16x4xf32> to vector<16x4xbf16>
    %cst = arith.constant 0.000000e+00 : bf16
    %9 = vector.broadcast %cst : bf16 to vector<1x4xbf16>
    %c15 = arith.constant 15 : index
    %c0_14 = arith.constant 0 : index
    %10 = vector.load %arg19[%c15, %c0_14] : memref<40x128xbf16, #tpu.memory_space<vmem>>, vector<1x4xbf16>
    tpu.vector_store %arg19[%c15, %c0_14], %9 {strides = array<i32>} : memref<40x128xbf16, #tpu.memory_space<vmem>>, vector<1x4xbf16>,
    %c16 = arith.constant 16 : index
    %c0_15 = arith.constant 0 : index
    %11 = vector.load %arg19[%c16, %c0_15] : memref<40x128xbf16, #tpu.memory_space<vmem>>, vector<16x4xbf16>
    tpu.vector_store %arg19[%c16, %c0_15], %8 {strides = array<i32>} : memref<40x128xbf16, #tpu.memory_space<vmem>>, vector<16x4xbf16>,
    %cst_16 = arith.constant 0.000000e+00 : bf16
    %12 = vector.broadcast %cst_16 : bf16 to vector<1x4xbf16>
    %c32 = arith.constant 32 : index
    %c0_17 = arith.constant 0 : index
    %13 = vector.load %arg19[%c32, %c0_17] : memref<40x128xbf16, #tpu.memory_space<vmem>>, vector<1x4xbf16>
    tpu.vector_store %arg19[%c32, %c0_17], %12 {strides = array<i32>} : memref<40x128xbf16, #tpu.memory_space<vmem>>, vector<1x4xbf16>,
    %c15_18 = arith.constant 15 : index
    %c0_19 = arith.constant 0 : index
    %14 = vector.load %arg19[%c15_18, %c0_19] : memref<40x128xbf16, #tpu.memory_space<vmem>>, vector<16x4xbf16>
    %c0_20 = arith.constant 0 : index
    %c0_21 = arith.constant 0 : index
    %c0_22 = arith.constant 0 : index
    %15 = vector.load %arg2[%c0_20, %c0_21, %c0_22] : memref<3x4x128xbf16, #tpu.memory_space<vmem>>, vector<1x4x128xbf16>
    %16 = vector.shape_cast %15 : vector<1x4x128xbf16> to vector<4x128xbf16>
    %cst_23 = arith.constant dense<0.000000e+00> : vector<16x128xf32>
    %17 = tpu.matmul %14, %16, %cst_23 {dimension_numbers = #tpu.dot_dimension_numbers<[1], [0], [0], [1], [0, 0, 1, 1], [], []>} : vector<16x4xbf16>, vector<4x128xbf16>, vector<16x128xf32> -> vector<16x128xf32>
    %c16_24 = arith.constant 16 : index
    %c0_25 = arith.constant 0 : index
    %18 = vector.load %arg19[%c16_24, %c0_25] : memref<40x128xbf16, #tpu.memory_space<vmem>>, vector<16x4xbf16>
    %c1 = arith.constant 1 : index
    %c0_26 = arith.constant 0 : index
    %c0_27 = arith.constant 0 : index
    %19 = vector.load %arg2[%c1, %c0_26, %c0_27] : memref<3x4x128xbf16, #tpu.memory_space<vmem>>, vector<1x4x128xbf16>
    %20 = vector.shape_cast %19 : vector<1x4x128xbf16> to vector<4x128xbf16>
    %cst_28 = arith.constant dense<0.000000e+00> : vector<16x128xf32>
    %21 = tpu.matmul %18, %20, %cst_28 {dimension_numbers = #tpu.dot_dimension_numbers<[1], [0], [0], [1], [0, 0, 1, 1], [], []>} : vector<16x4xbf16>, vector<4x128xbf16>, vector<16x128xf32> -> vector<16x128xf32>
    %22 = arith.addf %17, %21 : vector<16x128xf32>
    %c17 = arith.constant 17 : index
    %c0_29 = arith.constant 0 : index
    %23 = vector.load %arg19[%c17, %c0_29] : memref<40x128xbf16, #tpu.memory_space<vmem>>, vector<16x4xbf16>
    %c2 = arith.constant 2 : index
    %c0_30 = arith.constant 0 : index
    %c0_31 = arith.constant 0 : index
    %24 = vector.load %arg2[%c2, %c0_30, %c0_31] : memref<3x4x128xbf16, #tpu.memory_space<vmem>>, vector<1x4x128xbf16>
    %25 = vector.shape_cast %24 : vector<1x4x128xbf16> to vector<4x128xbf16>
    %cst_32 = arith.constant dense<0.000000e+00> : vector<16x128xf32>
    %26 = tpu.matmul %23, %25, %cst_32 {dimension_numbers = #tpu.dot_dimension_numbers<[1], [0], [0], [1], [0, 0, 1, 1], [], []>} : vector<16x4xbf16>, vector<4x128xbf16>, vector<16x128xf32> -> vector<16x128xf32>
    %27 = arith.addf %22, %26 : vector<16x128xf32>
    %28 = vector.broadcast %2 : vector<1x128xf32> to vector<16x128xf32>
    %29 = arith.addf %27, %28 : vector<16x128xf32>
    %cst_33 = arith.constant 0.000000e+00 : f32
    %30 = vector.broadcast %cst_33 : f32 to vector<16x128xf32>
    %31 = arith.cmpf oge, %29, %30 : vector<16x128xf32>
    %cst_34 = arith.constant 2.000000e-01 : f32
    %32 = vector.broadcast %cst_34 : f32 to vector<16x128xf32>
    %33 = arith.mulf %32, %29 : vector<16x128xf32>
    %34 = arith.select %31, %29, %33 : vector<16x128xi1>, vector<16x128xf32>
    %35 = arith.truncf %34 : vector<16x128xf32> to vector<16x128xbf16>
    %cst_35 = arith.constant 0.000000e+00 : bf16
    %36 = vector.broadcast %cst_35 : bf16 to vector<1x128xbf16>
    %c15_36 = arith.constant 15 : index
    %c0_37 = arith.constant 0 : index
    %37 = vector.load %arg19[%c15_36, %c0_37] : memref<40x128xbf16, #tpu.memory_space<vmem>>, vector<1x128xbf16>
    tpu.vector_store %arg19[%c15_36, %c0_37], %36 {strides = array<i32>} : memref<40x128xbf16, #tpu.memory_space<vmem>>, vector<1x128xbf16>,
    %c16_38 = arith.constant 16 : index
    %c0_39 = arith.constant 0 : index
    %38 = vector.load %arg19[%c16_38, %c0_39] : memref<40x128xbf16, #tpu.memory_space<vmem>>, vector<16x128xbf16>
    tpu.vector_store %arg19[%c16_38, %c0_39], %35 {strides = array<i32>} : memref<40x128xbf16, #tpu.memory_space<vmem>>, vector<16x128xbf16>,
    %cst_40 = arith.constant 0.000000e+00 : bf16
    %39 = vector.broadcast %cst_40 : bf16 to vector<1x128xbf16>
    %c32_41 = arith.constant 32 : index
    %c0_42 = arith.constant 0 : index
    %40 = vector.load %arg19[%c32_41, %c0_42] : memref<40x128xbf16, #tpu.memory_space<vmem>>, vector<1x128xbf16>
    tpu.vector_store %arg19[%c32_41, %c0_42], %39 {strides = array<i32>} : memref<40x128xbf16, #tpu.memory_space<vmem>>, vector<1x128xbf16>,
    %c15_43 = arith.constant 15 : index
    %c0_44 = arith.constant 0 : index
    %41 = vector.load %arg19[%c15_43, %c0_44] : memref<40x128xbf16, #tpu.memory_space<vmem>>, vector<16x128xbf16>
    %c0_45 = arith.constant 0 : index
    %c0_46 = arith.constant 0 : index
    %c0_47 = arith.constant 0 : index
    %42 = vector.load %arg4[%c0_45, %c0_46, %c0_47] : memref<3x128x128xbf16, #tpu.memory_space<vmem>>, vector<1x128x128xbf16>
    %43 = vector.shape_cast %42 : vector<1x128x128xbf16> to vector<128x128xbf16>
    %cst_48 = arith.constant dense<0.000000e+00> : vector<16x128xf32>
    %44 = tpu.matmul %41, %43, %cst_48 {dimension_numbers = #tpu.dot_dimension_numbers<[1], [0], [0], [1], [0, 0, 1, 1], [], []>} : vector<16x128xbf16>, vector<128x128xbf16>, vector<16x128xf32> -> vector<16x128xf32>
    %c16_49 = arith.constant 16 : index
    %c0_50 = arith.constant 0 : index
    %45 = vector.load %arg19[%c16_49, %c0_50] : memref<40x128xbf16, #tpu.memory_space<vmem>>, vector<16x128xbf16>
    %c1_51 = arith.constant 1 : index
    %c0_52 = arith.constant 0 : index
    %c0_53 = arith.constant 0 : index
    %46 = vector.load %arg4[%c1_51, %c0_52, %c0_53] : memref<3x128x128xbf16, #tpu.memory_space<vmem>>, vector<1x128x128xbf16>
    %47 = vector.shape_cast %46 : vector<1x128x128xbf16> to vector<128x128xbf16>
    %cst_54 = arith.constant dense<0.000000e+00> : vector<16x128xf32>
    %48 = tpu.matmul %45, %47, %cst_54 {dimension_numbers = #tpu.dot_dimension_numbers<[1], [0], [0], [1], [0, 0, 1, 1], [], []>} : vector<16x128xbf16>, vector<128x128xbf16>, vector<16x128xf32> -> vector<16x128xf32>
    %49 = arith.addf %44, %48 : vector<16x128xf32>
    %c17_55 = arith.constant 17 : index
    %c0_56 = arith.constant 0 : index
    %50 = vector.load %arg19[%c17_55, %c0_56] : memref<40x128xbf16, #tpu.memory_space<vmem>>, vector<16x128xbf16>
    %c2_57 = arith.constant 2 : index
    %c0_58 = arith.constant 0 : index
    %c0_59 = arith.constant 0 : index
    %51 = vector.load %arg4[%c2_57, %c0_58, %c0_59] : memref<3x128x128xbf16, #tpu.memory_space<vmem>>, vector<1x128x128xbf16>
    %52 = vector.shape_cast %51 : vector<1x128x128xbf16> to vector<128x128xbf16>
    %cst_60 = arith.constant dense<0.000000e+00> : vector<16x128xf32>
    %53 = tpu.matmul %50, %52, %cst_60 {dimension_numbers = #tpu.dot_dimension_numbers<[1], [0], [0], [1], [0, 0, 1, 1], [], []>} : vector<16x128xbf16>, vector<128x128xbf16>, vector<16x128xf32> -> vector<16x128xf32>
    %54 = arith.addf %49, %53 : vector<16x128xf32>
    %55 = vector.broadcast %3 : vector<1x128xf32> to vector<16x128xf32>
    %56 = arith.addf %54, %55 : vector<16x128xf32>
    %cst_61 = arith.constant dense<0.000000e+00> : vector<128xf32>
    %57 = vector.multi_reduction <add>, %56, %cst_61 [0] : vector<16x128xf32> to vector<128xf32>
    %58 = vector.shape_cast %57 : vector<128xf32> to vector<1x128xf32>
    %cst_62 = arith.constant 1.600000e+01 : f32
    %59 = vector.broadcast %cst_62 : f32 to vector<1x128xf32>
    %60 = arith.divf %58, %59 : vector<1x128xf32>
    %61 = arith.truncf %60 : vector<1x128xf32> to vector<1x128xbf16>
    %cst_63 = arith.constant dense<0.000000e+00> : vector<1x2xf32>
    %62 = tpu.matmul %61, %4, %cst_63 {dimension_numbers = #tpu.dot_dimension_numbers<[1], [0], [0], [1], [0, 0, 1, 1], [], []>} : vector<1x128xbf16>, vector<128x2xbf16>, vector<1x2xf32> -> vector<1x2xf32>
    %cst_64 = arith.constant 0.000000e+00 : f32
    %63 = vector.broadcast %cst_64 : f32 to vector<1x2xf32>
    %64 = arith.maximumf %62, %63 : vector<1x2xf32>
    %65 = arith.truncf %64 : vector<1x2xf32> to vector<1x2xbf16>
    %cst_65 = arith.constant dense<0.000000e+00> : vector<1x128xf32>
    %66 = tpu.matmul %65, %5, %cst_65 {dimension_numbers = #tpu.dot_dimension_numbers<[1], [0], [0], [1], [0, 0, 1, 1], [], []>} : vector<1x2xbf16>, vector<2x128xbf16>, vector<1x128xf32> -> vector<1x128xf32>
    %67 = arith.negf %66 : vector<1x128xf32>
    %68 = math.exp %67 : vector<1x128xf32>
    %cst_66 = arith.constant 1.000000e+00 : f32
    %69 = vector.broadcast %cst_66 : f32 to vector<1x128xf32>
    %70 = arith.addf %69, %68 : vector<1x128xf32>
    %71 = arith.divf %69, %70 : vector<1x128xf32>
    %72 = vector.broadcast %71 : vector<1x128xf32> to vector<16x128xf32>
    %73 = arith.mulf %56, %72 : vector<16x128xf32>
    %74 = arith.truncf %1 : vector<16x4xf32> to vector<16x4xbf16>
    %cst_67 = arith.constant dense<0.000000e+00> : vector<16x128xf32>
    %75 = tpu.matmul %74, %6, %cst_67 {dimension_numbers = #tpu.dot_dimension_numbers<[1], [0], [0], [1], [0, 0, 1, 1], [], []>} : vector<16x4xbf16>, vector<4x128xbf16>, vector<16x128xf32> -> vector<16x128xf32>
    %76 = vector.broadcast %7 : vector<1x128xf32> to vector<16x128xf32>
    %77 = arith.addf %75, %76 : vector<16x128xf32>
    %78 = arith.addf %73, %77 : vector<16x128xf32>
    %cst_68 = arith.constant 0.000000e+00 : f32
    %79 = vector.broadcast %cst_68 : f32 to vector<16x128xf32>
    %80 = arith.cmpf oge, %78, %79 : vector<16x128xf32>
    %cst_69 = arith.constant 2.000000e-01 : f32
    %81 = vector.broadcast %cst_69 : f32 to vector<16x128xf32>
    %82 = arith.mulf %81, %78 : vector<16x128xf32>
    %83 = arith.select %80, %78, %82 : vector<16x128xi1>, vector<16x128xf32>
    %c0_70 = arith.constant 0 : index
    %c0_71 = arith.constant 0 : index
    %84 = vector.load %arg11[%c0_70, %c0_71] : memref<1x128xf32, #tpu.memory_space<vmem>>, vector<1x128xf32>
    %c0_72 = arith.constant 0 : index
    %c0_73 = arith.constant 0 : index
    %85 = vector.load %arg13[%c0_72, %c0_73] : memref<1x128xf32, #tpu.memory_space<vmem>>, vector<1x128xf32>
    %c0_74 = arith.constant 0 : index
    %c0_75 = arith.constant 0 : index
    %86 = vector.load %arg14[%c0_74, %c0_75] : memref<128x2xbf16, #tpu.memory_space<vmem>>, vector<128x2xbf16>
    %c0_76 = arith.constant 0 : index
    %c0_77 = arith.constant 0 : index
    %87 = vector.load %arg15[%c0_76, %c0_77] : memref<2x128xbf16, #tpu.memory_space<vmem>>, vector<2x128xbf16>
    %88 = arith.truncf %83 : vector<16x128xf32> to vector<16x128xbf16>
    %cst_78 = arith.constant 0.000000e+00 : bf16
    %89 = vector.broadcast %cst_78 : bf16 to vector<2x128xbf16>
    %c14 = arith.constant 14 : index
    %c0_79 = arith.constant 0 : index
    %90 = vector.load %arg19[%c14, %c0_79] : memref<40x128xbf16, #tpu.memory_space<vmem>>, vector<2x128xbf16>
    tpu.vector_store %arg19[%c14, %c0_79], %89 {strides = array<i32>} : memref<40x128xbf16, #tpu.memory_space<vmem>>, vector<2x128xbf16>,
    %c16_80 = arith.constant 16 : index
    %c0_81 = arith.constant 0 : index
    %91 = vector.load %arg19[%c16_80, %c0_81] : memref<40x128xbf16, #tpu.memory_space<vmem>>, vector<16x128xbf16>
    tpu.vector_store %arg19[%c16_80, %c0_81], %88 {strides = array<i32>} : memref<40x128xbf16, #tpu.memory_space<vmem>>, vector<16x128xbf16>,
    %cst_82 = arith.constant 0.000000e+00 : bf16
    %92 = vector.broadcast %cst_82 : bf16 to vector<2x128xbf16>
    %c32_83 = arith.constant 32 : index
    %c0_84 = arith.constant 0 : index
    %93 = vector.load %arg19[%c32_83, %c0_84] : memref<40x128xbf16, #tpu.memory_space<vmem>>, vector<2x128xbf16>
    tpu.vector_store %arg19[%c32_83, %c0_84], %92 {strides = array<i32>} : memref<40x128xbf16, #tpu.memory_space<vmem>>, vector<2x128xbf16>,
    %c14_85 = arith.constant 14 : index
    %c0_86 = arith.constant 0 : index
    %94 = vector.load %arg19[%c14_85, %c0_86] : memref<40x128xbf16, #tpu.memory_space<vmem>>, vector<16x128xbf16>
    %c0_87 = arith.constant 0 : index
    %c0_88 = arith.constant 0 : index
    %c0_89 = arith.constant 0 : index
    %95 = vector.load %arg10[%c0_87, %c0_88, %c0_89] : memref<5x128x128xbf16, #tpu.memory_space<vmem>>, vector<1x128x128xbf16>
    %96 = vector.shape_cast %95 : vector<1x128x128xbf16> to vector<128x128xbf16>
    %cst_90 = arith.constant dense<0.000000e+00> : vector<16x128xf32>
    %97 = tpu.matmul %94, %96, %cst_90 {dimension_numbers = #tpu.dot_dimension_numbers<[1], [0], [0], [1], [0, 0, 1, 1], [], []>} : vector<16x128xbf16>, vector<128x128xbf16>, vector<16x128xf32> -> vector<16x128xf32>
    %c15_91 = arith.constant 15 : index
    %c0_92 = arith.constant 0 : index
    %98 = vector.load %arg19[%c15_91, %c0_92] : memref<40x128xbf16, #tpu.memory_space<vmem>>, vector<16x128xbf16>
    %c1_93 = arith.constant 1 : index
    %c0_94 = arith.constant 0 : index
    %c0_95 = arith.constant 0 : index
    %99 = vector.load %arg10[%c1_93, %c0_94, %c0_95] : memref<5x128x128xbf16, #tpu.memory_space<vmem>>, vector<1x128x128xbf16>
    %100 = vector.shape_cast %99 : vector<1x128x128xbf16> to vector<128x128xbf16>
    %cst_96 = arith.constant dense<0.000000e+00> : vector<16x128xf32>
    %101 = tpu.matmul %98, %100, %cst_96 {dimension_numbers = #tpu.dot_dimension_numbers<[1], [0], [0], [1], [0, 0, 1, 1], [], []>} : vector<16x128xbf16>, vector<128x128xbf16>, vector<16x128xf32> -> vector<16x128xf32>
    %102 = arith.addf %97, %101 : vector<16x128xf32>
    %c16_97 = arith.constant 16 : index
    %c0_98 = arith.constant 0 : index
    %103 = vector.load %arg19[%c16_97, %c0_98] : memref<40x128xbf16, #tpu.memory_space<vmem>>, vector<16x128xbf16>
    %c2_99 = arith.constant 2 : index
    %c0_100 = arith.constant 0 : index
    %c0_101 = arith.constant 0 : index
    %104 = vector.load %arg10[%c2_99, %c0_100, %c0_101] : memref<5x128x128xbf16, #tpu.memory_space<vmem>>, vector<1x128x128xbf16>
    %105 = vector.shape_cast %104 : vector<1x128x128xbf16> to vector<128x128xbf16>
    %cst_102 = arith.constant dense<0.000000e+00> : vector<16x128xf32>
    %106 = tpu.matmul %103, %105, %cst_102 {dimension_numbers = #tpu.dot_dimension_numbers<[1], [0], [0], [1], [0, 0, 1, 1], [], []>} : vector<16x128xbf16>, vector<128x128xbf16>, vector<16x128xf32> -> vector<16x128xf32>
    %107 = arith.addf %102, %106 : vector<16x128xf32>
    %c17_103 = arith.constant 17 : index
    %c0_104 = arith.constant 0 : index
    %108 = vector.load %arg19[%c17_103, %c0_104] : memref<40x128xbf16, #tpu.memory_space<vmem>>, vector<16x128xbf16>
    %c3 = arith.constant 3 : index
    %c0_105 = arith.constant 0 : index
    %c0_106 = arith.constant 0 : index
    %109 = vector.load %arg10[%c3, %c0_105, %c0_106] : memref<5x128x128xbf16, #tpu.memory_space<vmem>>, vector<1x128x128xbf16>
    %110 = vector.shape_cast %109 : vector<1x128x128xbf16> to vector<128x128xbf16>
    %cst_107 = arith.constant dense<0.000000e+00> : vector<16x128xf32>
    %111 = tpu.matmul %108, %110, %cst_107 {dimension_numbers = #tpu.dot_dimension_numbers<[1], [0], [0], [1], [0, 0, 1, 1], [], []>} : vector<16x128xbf16>, vector<128x128xbf16>, vector<16x128xf32> -> vector<16x128xf32>
    %112 = arith.addf %107, %111 : vector<16x128xf32>
    %c18 = arith.constant 18 : index
    %c0_108 = arith.constant 0 : index
    %113 = vector.load %arg19[%c18, %c0_108] : memref<40x128xbf16, #tpu.memory_space<vmem>>, vector<16x128xbf16>
    %c4 = arith.constant 4 : index
    %c0_109 = arith.constant 0 : index
    %c0_110 = arith.constant 0 : index
    %114 = vector.load %arg10[%c4, %c0_109, %c0_110] : memref<5x128x128xbf16, #tpu.memory_space<vmem>>, vector<1x128x128xbf16>
    %115 = vector.shape_cast %114 : vector<1x128x128xbf16> to vector<128x128xbf16>
    %cst_111 = arith.constant dense<0.000000e+00> : vector<16x128xf32>
    %116 = tpu.matmul %113, %115, %cst_111 {dimension_numbers = #tpu.dot_dimension_numbers<[1], [0], [0], [1], [0, 0, 1, 1], [], []>} : vector<16x128xbf16>, vector<128x128xbf16>, vector<16x128xf32> -> vector<16x128xf32>
    %117 = arith.addf %112, %116 : vector<16x128xf32>
    %118 = vector.broadcast %84 : vector<1x128xf32> to vector<16x128xf32>
    %119 = arith.addf %117, %118 : vector<16x128xf32>
    %cst_112 = arith.constant 0.000000e+00 : f32
    %120 = vector.broadcast %cst_112 : f32 to vector<16x128xf32>
    %121 = arith.cmpf oge, %119, %120 : vector<16x128xf32>
    %cst_113 = arith.constant 2.000000e-01 : f32
    %122 = vector.broadcast %cst_113 : f32 to vector<16x128xf32>
    %123 = arith.mulf %122, %119 : vector<16x128xf32>
    %124 = arith.select %121, %119, %123 : vector<16x128xi1>, vector<16x128xf32>
    %125 = arith.truncf %124 : vector<16x128xf32> to vector<16x128xbf16>
    %cst_114 = arith.constant 0.000000e+00 : bf16
    %126 = vector.broadcast %cst_114 : bf16 to vector<2x128xbf16>
    %c14_115 = arith.constant 14 : index
    %c0_116 = arith.constant 0 : index
    %127 = vector.load %arg19[%c14_115, %c0_116] : memref<40x128xbf16, #tpu.memory_space<vmem>>, vector<2x128xbf16>
    tpu.vector_store %arg19[%c14_115, %c0_116], %126 {strides = array<i32>} : memref<40x128xbf16, #tpu.memory_space<vmem>>, vector<2x128xbf16>,
    %c16_117 = arith.constant 16 : index
    %c0_118 = arith.constant 0 : index
    %128 = vector.load %arg19[%c16_117, %c0_118] : memref<40x128xbf16, #tpu.memory_space<vmem>>, vector<16x128xbf16>
    tpu.vector_store %arg19[%c16_117, %c0_118], %125 {strides = array<i32>} : memref<40x128xbf16, #tpu.memory_space<vmem>>, vector<16x128xbf16>,
    %cst_119 = arith.constant 0.000000e+00 : bf16
    %129 = vector.broadcast %cst_119 : bf16 to vector<2x128xbf16>
    %c32_120 = arith.constant 32 : index
    %c0_121 = arith.constant 0 : index
    %130 = vector.load %arg19[%c32_120, %c0_121] : memref<40x128xbf16, #tpu.memory_space<vmem>>, vector<2x128xbf16>
    tpu.vector_store %arg19[%c32_120, %c0_121], %129 {strides = array<i32>} : memref<40x128xbf16, #tpu.memory_space<vmem>>, vector<2x128xbf16>,
    %c14_122 = arith.constant 14 : index
    %c0_123 = arith.constant 0 : index
    %131 = vector.load %arg19[%c14_122, %c0_123] : memref<40x128xbf16, #tpu.memory_space<vmem>>, vector<16x128xbf16>
    %c0_124 = arith.constant 0 : index
    %c0_125 = arith.constant 0 : index
    %c0_126 = arith.constant 0 : index
    %132 = vector.load %arg12[%c0_124, %c0_125, %c0_126] : memref<5x128x128xbf16, #tpu.memory_space<vmem>>, vector<1x128x128xbf16>
    %133 = vector.shape_cast %132 : vector<1x128x128xbf16> to vector<128x128xbf16>
    %cst_127 = arith.constant dense<0.000000e+00> : vector<16x128xf32>
    %134 = tpu.matmul %131, %133, %cst_127 {dimension_numbers = #tpu.dot_dimension_numbers<[1], [0], [0], [1], [0, 0, 1, 1], [], []>} : vector<16x128xbf16>, vector<128x128xbf16>, vector<16x128xf32> -> vector<16x128xf32>
    %c15_128 = arith.constant 15 : index
    %c0_129 = arith.constant 0 : index
    %135 = vector.load %arg19[%c15_128, %c0_129] : memref<40x128xbf16, #tpu.memory_space<vmem>>, vector<16x128xbf16>
    %c1_130 = arith.constant 1 : index
    %c0_131 = arith.constant 0 : index
    %c0_132 = arith.constant 0 : index
    %136 = vector.load %arg12[%c1_130, %c0_131, %c0_132] : memref<5x128x128xbf16, #tpu.memory_space<vmem>>, vector<1x128x128xbf16>
    %137 = vector.shape_cast %136 : vector<1x128x128xbf16> to vector<128x128xbf16>
    %cst_133 = arith.constant dense<0.000000e+00> : vector<16x128xf32>
    %138 = tpu.matmul %135, %137, %cst_133 {dimension_numbers = #tpu.dot_dimension_numbers<[1], [0], [0], [1], [0, 0, 1, 1], [], []>} : vector<16x128xbf16>, vector<128x128xbf16>, vector<16x128xf32> -> vector<16x128xf32>
    %139 = arith.addf %134, %138 : vector<16x128xf32>
    %c16_134 = arith.constant 16 : index
    %c0_135 = arith.constant 0 : index
    %140 = vector.load %arg19[%c16_134, %c0_135] : memref<40x128xbf16, #tpu.memory_space<vmem>>, vector<16x128xbf16>
    %c2_136 = arith.constant 2 : index
    %c0_137 = arith.constant 0 : index
    %c0_138 = arith.constant 0 : index
    %141 = vector.load %arg12[%c2_136, %c0_137, %c0_138] : memref<5x128x128xbf16, #tpu.memory_space<vmem>>, vector<1x128x128xbf16>
    %142 = vector.shape_cast %141 : vector<1x128x128xbf16> to vector<128x128xbf16>
    %cst_139 = arith.constant dense<0.000000e+00> : vector<16x128xf32>
    %143 = tpu.matmul %140, %142, %cst_139 {dimension_numbers = #tpu.dot_dimension_numbers<[1], [0], [0], [1], [0, 0, 1, 1], [], []>} : vector<16x128xbf16>, vector<128x128xbf16>, vector<16x128xf32> -> vector<16x128xf32>
    %144 = arith.addf %139, %143 : vector<16x128xf32>
    %c17_140 = arith.constant 17 : index
    %c0_141 = arith.constant 0 : index
    %145 = vector.load %arg19[%c17_140, %c0_141] : memref<40x128xbf16, #tpu.memory_space<vmem>>, vector<16x128xbf16>
    %c3_142 = arith.constant 3 : index
    %c0_143 = arith.constant 0 : index
    %c0_144 = arith.constant 0 : index
    %146 = vector.load %arg12[%c3_142, %c0_143, %c0_144] : memref<5x128x128xbf16, #tpu.memory_space<vmem>>, vector<1x128x128xbf16>
    %147 = vector.shape_cast %146 : vector<1x128x128xbf16> to vector<128x128xbf16>
    %cst_145 = arith.constant dense<0.000000e+00> : vector<16x128xf32>
    %148 = tpu.matmul %145, %147, %cst_145 {dimension_numbers = #tpu.dot_dimension_numbers<[1], [0], [0], [1], [0, 0, 1, 1], [], []>} : vector<16x128xbf16>, vector<128x128xbf16>, vector<16x128xf32> -> vector<16x128xf32>
    %149 = arith.addf %144, %148 : vector<16x128xf32>
    %c18_146 = arith.constant 18 : index
    %c0_147 = arith.constant 0 : index
    %150 = vector.load %arg19[%c18_146, %c0_147] : memref<40x128xbf16, #tpu.memory_space<vmem>>, vector<16x128xbf16>
    %c4_148 = arith.constant 4 : index
    %c0_149 = arith.constant 0 : index
    %c0_150 = arith.constant 0 : index
    %151 = vector.load %arg12[%c4_148, %c0_149, %c0_150] : memref<5x128x128xbf16, #tpu.memory_space<vmem>>, vector<1x128x128xbf16>
    %152 = vector.shape_cast %151 : vector<1x128x128xbf16> to vector<128x128xbf16>
    %cst_151 = arith.constant dense<0.000000e+00> : vector<16x128xf32>
    %153 = tpu.matmul %150, %152, %cst_151 {dimension_numbers = #tpu.dot_dimension_numbers<[1], [0], [0], [1], [0, 0, 1, 1], [], []>} : vector<16x128xbf16>, vector<128x128xbf16>, vector<16x128xf32> -> vector<16x128xf32>
    %154 = arith.addf %149, %153 : vector<16x128xf32>
    %155 = vector.broadcast %85 : vector<1x128xf32> to vector<16x128xf32>
    %156 = arith.addf %154, %155 : vector<16x128xf32>
    %cst_152 = arith.constant dense<0.000000e+00> : vector<128xf32>
    %157 = vector.multi_reduction <add>, %156, %cst_152 [0] : vector<16x128xf32> to vector<128xf32>
    %158 = vector.shape_cast %157 : vector<128xf32> to vector<1x128xf32>
    %cst_153 = arith.constant 1.600000e+01 : f32
    %159 = vector.broadcast %cst_153 : f32 to vector<1x128xf32>
    %160 = arith.divf %158, %159 : vector<1x128xf32>
    %161 = arith.truncf %160 : vector<1x128xf32> to vector<1x128xbf16>
    %cst_154 = arith.constant dense<0.000000e+00> : vector<1x2xf32>
    %162 = tpu.matmul %161, %86, %cst_154 {dimension_numbers = #tpu.dot_dimension_numbers<[1], [0], [0], [1], [0, 0, 1, 1], [], []>} : vector<1x128xbf16>, vector<128x2xbf16>, vector<1x2xf32> -> vector<1x2xf32>
    %cst_155 = arith.constant 0.000000e+00 : f32
    %163 = vector.broadcast %cst_155 : f32 to vector<1x2xf32>
    %164 = arith.maximumf %162, %163 : vector<1x2xf32>
    %165 = arith.truncf %164 : vector<1x2xf32> to vector<1x2xbf16>
    %cst_156 = arith.constant dense<0.000000e+00> : vector<1x128xf32>
    %166 = tpu.matmul %165, %87, %cst_156 {dimension_numbers = #tpu.dot_dimension_numbers<[1], [0], [0], [1], [0, 0, 1, 1], [], []>} : vector<1x2xbf16>, vector<2x128xbf16>, vector<1x128xf32> -> vector<1x128xf32>
    %167 = arith.negf %166 : vector<1x128xf32>
    %168 = math.exp %167 : vector<1x128xf32>
    %cst_157 = arith.constant 1.000000e+00 : f32
    %169 = vector.broadcast %cst_157 : f32 to vector<1x128xf32>
    %170 = arith.addf %169, %168 : vector<1x128xf32>
    %171 = arith.divf %169, %170 : vector<1x128xf32>
    %172 = vector.broadcast %171 : vector<1x128xf32> to vector<16x128xf32>
    %173 = arith.mulf %156, %172 : vector<16x128xf32>
    %174 = arith.addf %173, %83 : vector<16x128xf32>
    %cst_158 = arith.constant 0.000000e+00 : f32
    %175 = vector.broadcast %cst_158 : f32 to vector<16x128xf32>
    %176 = arith.cmpf oge, %174, %175 : vector<16x128xf32>
    %cst_159 = arith.constant 2.000000e-01 : f32
    %177 = vector.broadcast %cst_159 : f32 to vector<16x128xf32>
    %178 = arith.mulf %177, %174 : vector<16x128xf32>
    %179 = arith.select %176, %174, %178 : vector<16x128xi1>, vector<16x128xf32>
    %c0_160 = arith.constant 0 : index
    %c0_161 = arith.constant 0 : index
    %180 = vector.load %arg17[%c0_160, %c0_161] : memref<1x4xf32, #tpu.memory_space<vmem>>, vector<1x4xf32>
    %181 = arith.truncf %179 : vector<16x128xf32> to vector<16x128xbf16>
    %cst_162 = arith.constant 0.000000e+00 : bf16
    %182 = vector.broadcast %cst_162 : bf16 to vector<1x128xbf16>
    %c15_163 = arith.constant 15 : index
    %c0_164 = arith.constant 0 : index
    %183 = vector.load %arg19[%c15_163, %c0_164] : memref<40x128xbf16, #tpu.memory_space<vmem>>, vector<1x128xbf16>
    tpu.vector_store %arg19[%c15_163, %c0_164], %182 {strides = array<i32>} : memref<40x128xbf16, #tpu.memory_space<vmem>>, vector<1x128xbf16>,
    %c16_165 = arith.constant 16 : index
    %c0_166 = arith.constant 0 : index
    %184 = vector.load %arg19[%c16_165, %c0_166] : memref<40x128xbf16, #tpu.memory_space<vmem>>, vector<16x128xbf16>
    tpu.vector_store %arg19[%c16_165, %c0_166], %181 {strides = array<i32>} : memref<40x128xbf16, #tpu.memory_space<vmem>>, vector<16x128xbf16>,
    %cst_167 = arith.constant 0.000000e+00 : bf16
    %185 = vector.broadcast %cst_167 : bf16 to vector<1x128xbf16>
    %c32_168 = arith.constant 32 : index
    %c0_169 = arith.constant 0 : index
    %186 = vector.load %arg19[%c32_168, %c0_169] : memref<40x128xbf16, #tpu.memory_space<vmem>>, vector<1x128xbf16>
    tpu.vector_store %arg19[%c32_168, %c0_169], %185 {strides = array<i32>} : memref<40x128xbf16, #tpu.memory_space<vmem>>, vector<1x128xbf16>,
    %c15_170 = arith.constant 15 : index
    %c0_171 = arith.constant 0 : index
    %187 = vector.load %arg19[%c15_170, %c0_171] : memref<40x128xbf16, #tpu.memory_space<vmem>>, vector<16x128xbf16>
    %c0_172 = arith.constant 0 : index
    %c0_173 = arith.constant 0 : index
    %c0_174 = arith.constant 0 : index
    %188 = vector.load %arg16[%c0_172, %c0_173, %c0_174] : memref<3x128x4xbf16, #tpu.memory_space<vmem>>, vector<1x128x4xbf16>
    %189 = vector.shape_cast %188 : vector<1x128x4xbf16> to vector<128x4xbf16>
    %cst_175 = arith.constant dense<0.000000e+00> : vector<16x4xf32>
    %190 = tpu.matmul %187, %189, %cst_175 {dimension_numbers = #tpu.dot_dimension_numbers<[1], [0], [0], [1], [0, 0, 1, 1], [], []>} : vector<16x128xbf16>, vector<128x4xbf16>, vector<16x4xf32> -> vector<16x4xf32>
    %c16_176 = arith.constant 16 : index
    %c0_177 = arith.constant 0 : index
    %191 = vector.load %arg19[%c16_176, %c0_177] : memref<40x128xbf16, #tpu.memory_space<vmem>>, vector<16x128xbf16>
    %c1_178 = arith.constant 1 : index
    %c0_179 = arith.constant 0 : index
    %c0_180 = arith.constant 0 : index
    %192 = vector.load %arg16[%c1_178, %c0_179, %c0_180] : memref<3x128x4xbf16, #tpu.memory_space<vmem>>, vector<1x128x4xbf16>
    %193 = vector.shape_cast %192 : vector<1x128x4xbf16> to vector<128x4xbf16>
    %cst_181 = arith.constant dense<0.000000e+00> : vector<16x4xf32>
    %194 = tpu.matmul %191, %193, %cst_181 {dimension_numbers = #tpu.dot_dimension_numbers<[1], [0], [0], [1], [0, 0, 1, 1], [], []>} : vector<16x128xbf16>, vector<128x4xbf16>, vector<16x4xf32> -> vector<16x4xf32>
    %195 = arith.addf %190, %194 : vector<16x4xf32>
    %c17_182 = arith.constant 17 : index
    %c0_183 = arith.constant 0 : index
    %196 = vector.load %arg19[%c17_182, %c0_183] : memref<40x128xbf16, #tpu.memory_space<vmem>>, vector<16x128xbf16>
    %c2_184 = arith.constant 2 : index
    %c0_185 = arith.constant 0 : index
    %c0_186 = arith.constant 0 : index
    %197 = vector.load %arg16[%c2_184, %c0_185, %c0_186] : memref<3x128x4xbf16, #tpu.memory_space<vmem>>, vector<1x128x4xbf16>
    %198 = vector.shape_cast %197 : vector<1x128x4xbf16> to vector<128x4xbf16>
    %cst_187 = arith.constant dense<0.000000e+00> : vector<16x4xf32>
    %199 = tpu.matmul %196, %198, %cst_187 {dimension_numbers = #tpu.dot_dimension_numbers<[1], [0], [0], [1], [0, 0, 1, 1], [], []>} : vector<16x128xbf16>, vector<128x4xbf16>, vector<16x4xf32> -> vector<16x4xf32>
    %200 = arith.addf %195, %199 : vector<16x4xf32>
    %201 = vector.broadcast %180 : vector<1x4xf32> to vector<16x4xf32>
    %202 = arith.addf %200, %201 : vector<16x4xf32>
    %203 = tpu.transpose %202, [1, 0] : vector<16x4xf32> -> vector<4x16xf32>
    %c0_188 = arith.constant 0 : index
    %c0_189 = arith.constant 0 : index
    %c0_190 = arith.constant 0 : index
    %204 = vector.load %arg18[%c0_188, %c0_189, %c0_190] : memref<1x4x16xf32, #tpu.memory_space<vmem>>, vector<1x4x16xf32>
    %205 = vector.shape_cast %204 : vector<1x4x16xf32> to vector<4x16xf32>
    %206 = vector.shape_cast %203 : vector<4x16xf32> to vector<1x4x16xf32>
    tpu.vector_store %arg18[%c0_188, %c0_189, %c0_190], %206 {strides = array<i32>} : memref<1x4x16xf32, #tpu.memory_space<vmem>>, vector<1x4x16xf32>,
    return
  }
  func.func @transform_0(%arg0: i32) -> (i32, i32, i32) {
    %c0_i32 = arith.constant 0 : i32
    %c0_i32_0 = arith.constant 0 : i32
    %c0_i32_1 = arith.constant 0 : i32
    return %arg0, %c0_i32, %c0_i32_0 : i32, i32, i32
  }
  func.func @transform_1(%arg0: i32) -> (i32, i32, i32) {
    %c0_i32 = arith.constant 0 : i32
    %c0_i32_0 = arith.constant 0 : i32
    %c0_i32_1 = arith.constant 0 : i32
    %c0_i32_2 = arith.constant 0 : i32
    return %c0_i32, %c0_i32_0, %c0_i32_1 : i32, i32, i32
  }
  func.func @transform_2(%arg0: i32) -> (i32, i32) {
    %c0_i32 = arith.constant 0 : i32
    %c0_i32_0 = arith.constant 0 : i32
    %c0_i32_1 = arith.constant 0 : i32
    return %c0_i32, %c0_i32_0 : i32, i32
  }
  func.func @transform_3(%arg0: i32) -> (i32, i32, i32) {
    %c0_i32 = arith.constant 0 : i32
    %c0_i32_0 = arith.constant 0 : i32
    %c0_i32_1 = arith.constant 0 : i32
    %c0_i32_2 = arith.constant 0 : i32
    return %c0_i32, %c0_i32_0, %c0_i32_1 : i32, i32, i32
  }
  func.func @transform_4(%arg0: i32) -> (i32, i32) {
    %c0_i32 = arith.constant 0 : i32
    %c0_i32_0 = arith.constant 0 : i32
    %c0_i32_1 = arith.constant 0 : i32
    return %c0_i32, %c0_i32_0 : i32, i32
  }
  func.func @transform_5(%arg0: i32) -> (i32, i32) {
    %c0_i32 = arith.constant 0 : i32
    %c0_i32_0 = arith.constant 0 : i32
    %c0_i32_1 = arith.constant 0 : i32
    return %c0_i32, %c0_i32_0 : i32, i32
  }
  func.func @transform_6(%arg0: i32) -> (i32, i32) {
    %c0_i32 = arith.constant 0 : i32
    %c0_i32_0 = arith.constant 0 : i32
    %c0_i32_1 = arith.constant 0 : i32
    return %c0_i32, %c0_i32_0 : i32, i32
  }
  func.func @transform_7(%arg0: i32) -> (i32, i32) {
    %c0_i32 = arith.constant 0 : i32
    %c0_i32_0 = arith.constant 0 : i32
    %c0_i32_1 = arith.constant 0 : i32
    return %c0_i32, %c0_i32_0 : i32, i32
  }
  func.func @transform_8(%arg0: i32) -> (i32, i32) {
    %c0_i32 = arith.constant 0 : i32
    %c0_i32_0 = arith.constant 0 : i32
    %c0_i32_1 = arith.constant 0 : i32
    return %c0_i32, %c0_i32_0 : i32, i32
  }
  func.func @transform_9(%arg0: i32) -> (i32, i32, i32) {
    %c0_i32 = arith.constant 0 : i32
    %c0_i32_0 = arith.constant 0 : i32
    %c0_i32_1 = arith.constant 0 : i32
    %c0_i32_2 = arith.constant 0 : i32
    return %c0_i32, %c0_i32_0, %c0_i32_1 : i32, i32, i32
  }
  func.func @transform_10(%arg0: i32) -> (i32, i32) {
    %c0_i32 = arith.constant 0 : i32
    %c0_i32_0 = arith.constant 0 : i32
    %c0_i32_1 = arith.constant 0 : i32
    return %c0_i32, %c0_i32_0 : i32, i32
  }
  func.func @transform_11(%arg0: i32) -> (i32, i32, i32) {
    %c0_i32 = arith.constant 0 : i32
    %c0_i32_0 = arith.constant 0 : i32
    %c0_i32_1 = arith.constant 0 : i32
    %c0_i32_2 = arith.constant 0 : i32
    return %c0_i32, %c0_i32_0, %c0_i32_1 : i32, i32, i32
  }
  func.func @transform_12(%arg0: i32) -> (i32, i32) {
    %c0_i32 = arith.constant 0 : i32
    %c0_i32_0 = arith.constant 0 : i32
    %c0_i32_1 = arith.constant 0 : i32
    return %c0_i32, %c0_i32_0 : i32, i32
  }
  func.func @transform_13(%arg0: i32) -> (i32, i32) {
    %c0_i32 = arith.constant 0 : i32
    %c0_i32_0 = arith.constant 0 : i32
    %c0_i32_1 = arith.constant 0 : i32
    return %c0_i32, %c0_i32_0 : i32, i32
  }
  func.func @transform_14(%arg0: i32) -> (i32, i32) {
    %c0_i32 = arith.constant 0 : i32
    %c0_i32_0 = arith.constant 0 : i32
    %c0_i32_1 = arith.constant 0 : i32
    return %c0_i32, %c0_i32_0 : i32, i32
  }
  func.func @transform_15(%arg0: i32) -> (i32, i32, i32) {
    %c0_i32 = arith.constant 0 : i32
    %c0_i32_0 = arith.constant 0 : i32
    %c0_i32_1 = arith.constant 0 : i32
    %c0_i32_2 = arith.constant 0 : i32
    return %c0_i32, %c0_i32_0, %c0_i32_1 : i32, i32, i32
  }
  func.func @transform_16(%arg0: i32) -> (i32, i32) {
    %c0_i32 = arith.constant 0 : i32
    %c0_i32_0 = arith.constant 0 : i32
    %c0_i32_1 = arith.constant 0 : i32
    return %c0_i32, %c0_i32_0 : i32, i32
  }
  func.func @transform_17(%arg0: i32) -> (i32, i32, i32) {
    %c0_i32 = arith.constant 0 : i32
    %c0_i32_0 = arith.constant 0 : i32
    %c0_i32_1 = arith.constant 0 : i32
    return %arg0, %c0_i32, %c0_i32_0 : i32, i32, i32
  }
}

module attributes {stable_mosaic.version = 11 : i64} {
  func.func @kernel(%arg0: i32, %arg1: memref<1x16x4xf32, #tpu.memory_space<vmem>>, %arg2: memref<3x4x128xbf16, #tpu.memory_space<vmem>>, %arg3: memref<1x128xf32, #tpu.memory_space<vmem>>, %arg4: memref<3x128x128xbf16, #tpu.memory_space<vmem>>, %arg5: memref<1x128xf32, #tpu.memory_space<vmem>>, %arg6: memref<128x2xbf16, #tpu.memory_space<vmem>>, %arg7: memref<2x128xbf16, #tpu.memory_space<vmem>>, %arg8: memref<4x128xbf16, #tpu.memory_space<vmem>>, %arg9: memref<1x128xf32, #tpu.memory_space<vmem>>, %arg10: memref<5x128x128xbf16, #tpu.memory_space<vmem>>, %arg11: memref<1x128xf32, #tpu.memory_space<vmem>>, %arg12: memref<5x128x128xbf16, #tpu.memory_space<vmem>>, %arg13: memref<1x128xf32, #tpu.memory_space<vmem>>, %arg14: memref<128x2xbf16, #tpu.memory_space<vmem>>, %arg15: memref<2x128xbf16, #tpu.memory_space<vmem>>, %arg16: memref<3x128x4xbf16, #tpu.memory_space<vmem>>, %arg17: memref<1x4xf32, #tpu.memory_space<vmem>>, %arg18: memref<1x4x16xf32, #tpu.memory_space<vmem>>, %arg19: memref<40x128xbf16, #tpu.memory_space<vmem>>) attributes {dimension_semantics = [#tpu.dimension_semantics<parallel>], iteration_bounds = array<i64: 2>, scalar_prefetch = 0 : i64, scratch_operands = 1 : i64, tpu.core_type = #tpu.core_type<tc>, window_params = [{transform_indices = @transform_0, window_bounds = array<i64: 1, 16, 4>}, {pipeline_mode = #tpu.pipeline_mode<synchronous>, transform_indices = @transform_1, window_bounds = array<i64: 3, 4, 128>}, {pipeline_mode = #tpu.pipeline_mode<synchronous>, transform_indices = @transform_2, window_bounds = array<i64: 1, 128>}, {pipeline_mode = #tpu.pipeline_mode<synchronous>, transform_indices = @transform_3, window_bounds = array<i64: 3, 128, 128>}, {pipeline_mode = #tpu.pipeline_mode<synchronous>, transform_indices = @transform_4, window_bounds = array<i64: 1, 128>}, {pipeline_mode = #tpu.pipeline_mode<synchronous>, transform_indices = @transform_5, window_bounds = array<i64: 128, 2>}, {pipeline_mode = #tpu.pipeline_mode<synchronous>, transform_indices = @transform_6, window_bounds = array<i64: 2, 128>}, {pipeline_mode = #tpu.pipeline_mode<synchronous>, transform_indices = @transform_7, window_bounds = array<i64: 4, 128>}, {pipeline_mode = #tpu.pipeline_mode<synchronous>, transform_indices = @transform_8, window_bounds = array<i64: 1, 128>}, {pipeline_mode = #tpu.pipeline_mode<synchronous>, transform_indices = @transform_9, window_bounds = array<i64: 5, 128, 128>}, {pipeline_mode = #tpu.pipeline_mode<synchronous>, transform_indices = @transform_10, window_bounds = array<i64: 1, 128>}, {pipeline_mode = #tpu.pipeline_mode<synchronous>, transform_indices = @transform_11, window_bounds = array<i64: 5, 128, 128>}, {pipeline_mode = #tpu.pipeline_mode<synchronous>, transform_indices = @transform_12, window_bounds = array<i64: 1, 128>}, {pipeline_mode = #tpu.pipeline_mode<synchronous>, transform_indices = @transform_13, window_bounds = array<i64: 128, 2>}, {pipeline_mode = #tpu.pipeline_mode<synchronous>, transform_indices = @transform_14, window_bounds = array<i64: 2, 128>}, {pipeline_mode = #tpu.pipeline_mode<synchronous>, transform_indices = @transform_15, window_bounds = array<i64: 3, 128, 4>}, {pipeline_mode = #tpu.pipeline_mode<synchronous>, transform_indices = @transform_16, window_bounds = array<i64: 1, 4>}, {transform_indices = @transform_17, window_bounds = array<i64: 1, 4, 16>}]} {
    %c0 = arith.constant 0 : index
    %c0_0 = arith.constant 0 : index
    %c0_1 = arith.constant 0 : index
    %0 = vector.load %arg1[%c0, %c0_0, %c0_1] : memref<1x16x4xf32, #tpu.memory_space<vmem>>, vector<1x16x4xf32>
    %1 = vector.shape_cast %0 : vector<1x16x4xf32> to vector<16x4xf32>
    %c0_2 = arith.constant 0 : index
    %c0_3 = arith.constant 0 : index
    %2 = vector.load %arg3[%c0_2, %c0_3] : memref<1x128xf32, #tpu.memory_space<vmem>>, vector<1x128xf32>
    %c0_4 = arith.constant 0 : index
    %c0_5 = arith.constant 0 : index
    %3 = vector.load %arg5[%c0_4, %c0_5] : memref<1x128xf32, #tpu.memory_space<vmem>>, vector<1x128xf32>
    %c0_6 = arith.constant 0 : index
    %c0_7 = arith.constant 0 : index
    %4 = vector.load %arg6[%c0_6, %c0_7] : memref<128x2xbf16, #tpu.memory_space<vmem>>, vector<128x2xbf16>
    %c0_8 = arith.constant 0 : index
    %c0_9 = arith.constant 0 : index
    %5 = vector.load %arg7[%c0_8, %c0_9] : memref<2x128xbf16, #tpu.memory_space<vmem>>, vector<2x128xbf16>
    %c0_10 = arith.constant 0 : index
    %c0_11 = arith.constant 0 : index
    %6 = vector.load %arg8[%c0_10, %c0_11] : memref<4x128xbf16, #tpu.memory_space<vmem>>, vector<4x128xbf16>
    %c0_12 = arith.constant 0 : index
    %c0_13 = arith.constant 0 : index
    %7 = vector.load %arg9[%c0_12, %c0_13] : memref<1x128xf32, #tpu.memory_space<vmem>>, vector<1x128xf32>
    %8 = arith.truncf %1 : vector<16x4xf32> to vector<16x4xbf16>
    %cst = arith.constant 0.000000e+00 : bf16
    %9 = vector.broadcast %cst : bf16 to vector<1x4xbf16>
    %c15 = arith.constant 15 : index
    %c0_14 = arith.constant 0 : index
    %10 = vector.load %arg19[%c15, %c0_14] : memref<40x128xbf16, #tpu.memory_space<vmem>>, vector<1x4xbf16>
    tpu.vector_store %arg19[%c15, %c0_14], %9 {strides = array<i32>} : memref<40x128xbf16, #tpu.memory_space<vmem>>, vector<1x4xbf16>,
    %c16 = arith.constant 16 : index
    %c0_15 = arith.constant 0 : index
    %11 = vector.load %arg19[%c16, %c0_15] : memref<40x128xbf16, #tpu.memory_space<vmem>>, vector<16x4xbf16>
    tpu.vector_store %arg19[%c16, %c0_15], %8 {strides = array<i32>} : memref<40x128xbf16, #tpu.memory_space<vmem>>, vector<16x4xbf16>,
    %cst_16 = arith.constant 0.000000e+00 : bf16
    %12 = vector.broadcast %cst_16 : bf16 to vector<1x4xbf16>
    %c32 = arith.constant 32 : index
    %c0_17 = arith.constant 0 : index
    %13 = vector.load %arg19[%c32, %c0_17] : memref<40x128xbf16, #tpu.memory_space<vmem>>, vector<1x4xbf16>
    tpu.vector_store %arg19[%c32, %c0_17], %12 {strides = array<i32>} : memref<40x128xbf16, #tpu.memory_space<vmem>>, vector<1x4xbf16>,
    %c15_18 = arith.constant 15 : index
    %c0_19 = arith.constant 0 : index
    %14 = vector.load %arg19[%c15_18, %c0_19] : memref<40x128xbf16, #tpu.memory_space<vmem>>, vector<16x4xbf16>
    %c0_20 = arith.constant 0 : index
    %c0_21 = arith.constant 0 : index
    %c0_22 = arith.constant 0 : index
    %15 = vector.load %arg2[%c0_20, %c0_21, %c0_22] : memref<3x4x128xbf16, #tpu.memory_space<vmem>>, vector<1x4x128xbf16>
    %16 = vector.shape_cast %15 : vector<1x4x128xbf16> to vector<4x128xbf16>
    %cst_23 = arith.constant dense<0.000000e+00> : vector<16x128xf32>
    %17 = tpu.matmul %14, %16, %cst_23 {dimension_numbers = #tpu.dot_dimension_numbers<[1], [0], [0], [1], [0, 0, 1, 1], [], []>} : vector<16x4xbf16>, vector<4x128xbf16>, vector<16x128xf32> -> vector<16x128xf32>
    %c16_24 = arith.constant 16 : index
    %c0_25 = arith.constant 0 : index
    %18 = vector.load %arg19[%c16_24, %c0_25] : memref<40x128xbf16, #tpu.memory_space<vmem>>, vector<16x4xbf16>
    %c1 = arith.constant 1 : index
    %c0_26 = arith.constant 0 : index
    %c0_27 = arith.constant 0 : index
    %19 = vector.load %arg2[%c1, %c0_26, %c0_27] : memref<3x4x128xbf16, #tpu.memory_space<vmem>>, vector<1x4x128xbf16>
    %20 = vector.shape_cast %19 : vector<1x4x128xbf16> to vector<4x128xbf16>
    %cst_28 = arith.constant dense<0.000000e+00> : vector<16x128xf32>
    %21 = tpu.matmul %18, %20, %cst_28 {dimension_numbers = #tpu.dot_dimension_numbers<[1], [0], [0], [1], [0, 0, 1, 1], [], []>} : vector<16x4xbf16>, vector<4x128xbf16>, vector<16x128xf32> -> vector<16x128xf32>
    %22 = arith.addf %17, %21 : vector<16x128xf32>
    %c17 = arith.constant 17 : index
    %c0_29 = arith.constant 0 : index
    %23 = vector.load %arg19[%c17, %c0_29] : memref<40x128xbf16, #tpu.memory_space<vmem>>, vector<16x4xbf16>
    %c2 = arith.constant 2 : index
    %c0_30 = arith.constant 0 : index
    %c0_31 = arith.constant 0 : index
    %24 = vector.load %arg2[%c2, %c0_30, %c0_31] : memref<3x4x128xbf16, #tpu.memory_space<vmem>>, vector<1x4x128xbf16>
    %25 = vector.shape_cast %24 : vector<1x4x128xbf16> to vector<4x128xbf16>
    %cst_32 = arith.constant dense<0.000000e+00> : vector<16x128xf32>
    %26 = tpu.matmul %23, %25, %cst_32 {dimension_numbers = #tpu.dot_dimension_numbers<[1], [0], [0], [1], [0, 0, 1, 1], [], []>} : vector<16x4xbf16>, vector<4x128xbf16>, vector<16x128xf32> -> vector<16x128xf32>
    %27 = arith.addf %22, %26 : vector<16x128xf32>
    %28 = vector.broadcast %2 : vector<1x128xf32> to vector<16x128xf32>
    %29 = arith.addf %27, %28 : vector<16x128xf32>
    %cst_33 = arith.constant 0.000000e+00 : f32
    %30 = vector.broadcast %cst_33 : f32 to vector<16x128xf32>
    %31 = arith.cmpf oge, %29, %30 : vector<16x128xf32>
    %cst_34 = arith.constant 2.000000e-01 : f32
    %32 = vector.broadcast %cst_34 : f32 to vector<16x128xf32>
    %33 = arith.mulf %32, %29 : vector<16x128xf32>
    %34 = arith.select %31, %29, %33 : vector<16x128xi1>, vector<16x128xf32>
    %35 = arith.truncf %34 : vector<16x128xf32> to vector<16x128xbf16>
    %cst_35 = arith.constant 0.000000e+00 : bf16
    %36 = vector.broadcast %cst_35 : bf16 to vector<1x128xbf16>
    %c15_36 = arith.constant 15 : index
    %c0_37 = arith.constant 0 : index
    %37 = vector.load %arg19[%c15_36, %c0_37] : memref<40x128xbf16, #tpu.memory_space<vmem>>, vector<1x128xbf16>
    tpu.vector_store %arg19[%c15_36, %c0_37], %36 {strides = array<i32>} : memref<40x128xbf16, #tpu.memory_space<vmem>>, vector<1x128xbf16>,
    %c16_38 = arith.constant 16 : index
    %c0_39 = arith.constant 0 : index
    %38 = vector.load %arg19[%c16_38, %c0_39] : memref<40x128xbf16, #tpu.memory_space<vmem>>, vector<16x128xbf16>
    tpu.vector_store %arg19[%c16_38, %c0_39], %35 {strides = array<i32>} : memref<40x128xbf16, #tpu.memory_space<vmem>>, vector<16x128xbf16>,
    %cst_40 = arith.constant 0.000000e+00 : bf16
    %39 = vector.broadcast %cst_40 : bf16 to vector<1x128xbf16>
    %c32_41 = arith.constant 32 : index
    %c0_42 = arith.constant 0 : index
    %40 = vector.load %arg19[%c32_41, %c0_42] : memref<40x128xbf16, #tpu.memory_space<vmem>>, vector<1x128xbf16>
    tpu.vector_store %arg19[%c32_41, %c0_42], %39 {strides = array<i32>} : memref<40x128xbf16, #tpu.memory_space<vmem>>, vector<1x128xbf16>,
    %c15_43 = arith.constant 15 : index
    %c0_44 = arith.constant 0 : index
    %41 = vector.load %arg19[%c15_43, %c0_44] : memref<40x128xbf16, #tpu.memory_space<vmem>>, vector<16x128xbf16>
    %c0_45 = arith.constant 0 : index
    %c0_46 = arith.constant 0 : index
    %c0_47 = arith.constant 0 : index
    %42 = vector.load %arg4[%c0_45, %c0_46, %c0_47] : memref<3x128x128xbf16, #tpu.memory_space<vmem>>, vector<1x128x128xbf16>
    %43 = vector.shape_cast %42 : vector<1x128x128xbf16> to vector<128x128xbf16>
    %cst_48 = arith.constant dense<0.000000e+00> : vector<16x128xf32>
    %44 = tpu.matmul %41, %43, %cst_48 {dimension_numbers = #tpu.dot_dimension_numbers<[1], [0], [0], [1], [0, 0, 1, 1], [], []>} : vector<16x128xbf16>, vector<128x128xbf16>, vector<16x128xf32> -> vector<16x128xf32>
    %c16_49 = arith.constant 16 : index
    %c0_50 = arith.constant 0 : index
    %45 = vector.load %arg19[%c16_49, %c0_50] : memref<40x128xbf16, #tpu.memory_space<vmem>>, vector<16x128xbf16>
    %c1_51 = arith.constant 1 : index
    %c0_52 = arith.constant 0 : index
    %c0_53 = arith.constant 0 : index
    %46 = vector.load %arg4[%c1_51, %c0_52, %c0_53] : memref<3x128x128xbf16, #tpu.memory_space<vmem>>, vector<1x128x128xbf16>
    %47 = vector.shape_cast %46 : vector<1x128x128xbf16> to vector<128x128xbf16>
    %cst_54 = arith.constant dense<0.000000e+00> : vector<16x128xf32>
    %48 = tpu.matmul %45, %47, %cst_54 {dimension_numbers = #tpu.dot_dimension_numbers<[1], [0], [0], [1], [0, 0, 1, 1], [], []>} : vector<16x128xbf16>, vector<128x128xbf16>, vector<16x128xf32> -> vector<16x128xf32>
    %49 = arith.addf %44, %48 : vector<16x128xf32>
    %c17_55 = arith.constant 17 : index
    %c0_56 = arith.constant 0 : index
    %50 = vector.load %arg19[%c17_55, %c0_56] : memref<40x128xbf16, #tpu.memory_space<vmem>>, vector<16x128xbf16>
    %c2_57 = arith.constant 2 : index
    %c0_58 = arith.constant 0 : index
    %c0_59 = arith.constant 0 : index
    %51 = vector.load %arg4[%c2_57, %c0_58, %c0_59] : memref<3x128x128xbf16, #tpu.memory_space<vmem>>, vector<1x128x128xbf16>
    %52 = vector.shape_cast %51 : vector<1x128x128xbf16> to vector<128x128xbf16>
    %cst_60 = arith.constant dense<0.000000e+00> : vector<16x128xf32>
    %53 = tpu.matmul %50, %52, %cst_60 {dimension_numbers = #tpu.dot_dimension_numbers<[1], [0], [0], [1], [0, 0, 1, 1], [], []>} : vector<16x128xbf16>, vector<128x128xbf16>, vector<16x128xf32> -> vector<16x128xf32>
    %54 = arith.addf %49, %53 : vector<16x128xf32>
    %55 = vector.broadcast %3 : vector<1x128xf32> to vector<16x128xf32>
    %56 = arith.addf %54, %55 : vector<16x128xf32>
    %cst_61 = arith.constant dense<0.000000e+00> : vector<128xf32>
    %57 = vector.multi_reduction <add>, %56, %cst_61 [0] : vector<16x128xf32> to vector<128xf32>
    %58 = vector.shape_cast %57 : vector<128xf32> to vector<1x128xf32>
    %cst_62 = arith.constant 1.600000e+01 : f32
    %59 = vector.broadcast %cst_62 : f32 to vector<1x128xf32>
    %60 = arith.divf %58, %59 : vector<1x128xf32>
    %61 = arith.truncf %60 : vector<1x128xf32> to vector<1x128xbf16>
    %cst_63 = arith.constant dense<0.000000e+00> : vector<1x2xf32>
    %62 = tpu.matmul %61, %4, %cst_63 {dimension_numbers = #tpu.dot_dimension_numbers<[1], [0], [0], [1], [0, 0, 1, 1], [], []>} : vector<1x128xbf16>, vector<128x2xbf16>, vector<1x2xf32> -> vector<1x2xf32>
    %cst_64 = arith.constant 0.000000e+00 : f32
    %63 = vector.broadcast %cst_64 : f32 to vector<1x2xf32>
    %64 = arith.maximumf %62, %63 : vector<1x2xf32>
    %65 = arith.truncf %64 : vector<1x2xf32> to vector<1x2xbf16>
    %cst_65 = arith.constant dense<0.000000e+00> : vector<1x128xf32>
    %66 = tpu.matmul %65, %5, %cst_65 {dimension_numbers = #tpu.dot_dimension_numbers<[1], [0], [0], [1], [0, 0, 1, 1], [], []>} : vector<1x2xbf16>, vector<2x128xbf16>, vector<1x128xf32> -> vector<1x128xf32>
    %67 = arith.negf %66 : vector<1x128xf32>
    %68 = math.exp %67 : vector<1x128xf32>
    %cst_66 = arith.constant 1.000000e+00 : f32
    %69 = vector.broadcast %cst_66 : f32 to vector<1x128xf32>
    %70 = arith.addf %69, %68 : vector<1x128xf32>
    %71 = arith.divf %69, %70 : vector<1x128xf32>
    %72 = vector.broadcast %71 : vector<1x128xf32> to vector<16x128xf32>
    %73 = arith.mulf %56, %72 : vector<16x128xf32>
    %74 = arith.truncf %1 : vector<16x4xf32> to vector<16x4xbf16>
    %cst_67 = arith.constant dense<0.000000e+00> : vector<16x128xf32>
    %75 = tpu.matmul %74, %6, %cst_67 {dimension_numbers = #tpu.dot_dimension_numbers<[1], [0], [0], [1], [0, 0, 1, 1], [], []>} : vector<16x4xbf16>, vector<4x128xbf16>, vector<16x128xf32> -> vector<16x128xf32>
    %76 = vector.broadcast %7 : vector<1x128xf32> to vector<16x128xf32>
    %77 = arith.addf %75, %76 : vector<16x128xf32>
    %78 = arith.addf %73, %77 : vector<16x128xf32>
    %cst_68 = arith.constant 0.000000e+00 : f32
    %79 = vector.broadcast %cst_68 : f32 to vector<16x128xf32>
    %80 = arith.cmpf oge, %78, %79 : vector<16x128xf32>
    %cst_69 = arith.constant 2.000000e-01 : f32
    %81 = vector.broadcast %cst_69 : f32 to vector<16x128xf32>
    %82 = arith.mulf %81, %78 : vector<16x128xf32>
    %83 = arith.select %80, %78, %82 : vector<16x128xi1>, vector<16x128xf32>
    %c0_70 = arith.constant 0 : index
    %c0_71 = arith.constant 0 : index
    %84 = vector.load %arg11[%c0_70, %c0_71] : memref<1x128xf32, #tpu.memory_space<vmem>>, vector<1x128xf32>
    %c0_72 = arith.constant 0 : index
    %c0_73 = arith.constant 0 : index
    %85 = vector.load %arg13[%c0_72, %c0_73] : memref<1x128xf32, #tpu.memory_space<vmem>>, vector<1x128xf32>
    %c0_74 = arith.constant 0 : index
    %c0_75 = arith.constant 0 : index
    %86 = vector.load %arg14[%c0_74, %c0_75] : memref<128x2xbf16, #tpu.memory_space<vmem>>, vector<128x2xbf16>
    %c0_76 = arith.constant 0 : index
    %c0_77 = arith.constant 0 : index
    %87 = vector.load %arg15[%c0_76, %c0_77] : memref<2x128xbf16, #tpu.memory_space<vmem>>, vector<2x128xbf16>
    %88 = arith.truncf %83 : vector<16x128xf32> to vector<16x128xbf16>
    %cst_78 = arith.constant 0.000000e+00 : bf16
    %89 = vector.broadcast %cst_78 : bf16 to vector<2x128xbf16>
    %c14 = arith.constant 14 : index
    %c0_79 = arith.constant 0 : index
    %90 = vector.load %arg19[%c14, %c0_79] : memref<40x128xbf16, #tpu.memory_space<vmem>>, vector<2x128xbf16>
    tpu.vector_store %arg19[%c14, %c0_79], %89 {strides = array<i32>} : memref<40x128xbf16, #tpu.memory_space<vmem>>, vector<2x128xbf16>,
    %c16_80 = arith.constant 16 : index
    %c0_81 = arith.constant 0 : index
    %91 = vector.load %arg19[%c16_80, %c0_81] : memref<40x128xbf16, #tpu.memory_space<vmem>>, vector<16x128xbf16>
    tpu.vector_store %arg19[%c16_80, %c0_81], %88 {strides = array<i32>} : memref<40x128xbf16, #tpu.memory_space<vmem>>, vector<16x128xbf16>,
    %cst_82 = arith.constant 0.000000e+00 : bf16
    %92 = vector.broadcast %cst_82 : bf16 to vector<2x128xbf16>
    %c32_83 = arith.constant 32 : index
    %c0_84 = arith.constant 0 : index
    %93 = vector.load %arg19[%c32_83, %c0_84] : memref<40x128xbf16, #tpu.memory_space<vmem>>, vector<2x128xbf16>
    tpu.vector_store %arg19[%c32_83, %c0_84], %92 {strides = array<i32>} : memref<40x128xbf16, #tpu.memory_space<vmem>>, vector<2x128xbf16>,
    %c14_85 = arith.constant 14 : index
    %c0_86 = arith.constant 0 : index
    %94 = vector.load %arg19[%c14_85, %c0_86] : memref<40x128xbf16, #tpu.memory_space<vmem>>, vector<16x128xbf16>
    %c0_87 = arith.constant 0 : index
    %c0_88 = arith.constant 0 : index
    %c0_89 = arith.constant 0 : index
    %95 = vector.load %arg10[%c0_87, %c0_88, %c0_89] : memref<5x128x128xbf16, #tpu.memory_space<vmem>>, vector<1x128x128xbf16>
    %96 = vector.shape_cast %95 : vector<1x128x128xbf16> to vector<128x128xbf16>
    %cst_90 = arith.constant dense<0.000000e+00> : vector<16x128xf32>
    %97 = tpu.matmul %94, %96, %cst_90 {dimension_numbers = #tpu.dot_dimension_numbers<[1], [0], [0], [1], [0, 0, 1, 1], [], []>} : vector<16x128xbf16>, vector<128x128xbf16>, vector<16x128xf32> -> vector<16x128xf32>
    %c15_91 = arith.constant 15 : index
    %c0_92 = arith.constant 0 : index
    %98 = vector.load %arg19[%c15_91, %c0_92] : memref<40x128xbf16, #tpu.memory_space<vmem>>, vector<16x128xbf16>
    %c1_93 = arith.constant 1 : index
    %c0_94 = arith.constant 0 : index
    %c0_95 = arith.constant 0 : index
    %99 = vector.load %arg10[%c1_93, %c0_94, %c0_95] : memref<5x128x128xbf16, #tpu.memory_space<vmem>>, vector<1x128x128xbf16>
    %100 = vector.shape_cast %99 : vector<1x128x128xbf16> to vector<128x128xbf16>
    %cst_96 = arith.constant dense<0.000000e+00> : vector<16x128xf32>
    %101 = tpu.matmul %98, %100, %cst_96 {dimension_numbers = #tpu.dot_dimension_numbers<[1], [0], [0], [1], [0, 0, 1, 1], [], []>} : vector<16x128xbf16>, vector<128x128xbf16>, vector<16x128xf32> -> vector<16x128xf32>
    %102 = arith.addf %97, %101 : vector<16x128xf32>
    %c16_97 = arith.constant 16 : index
    %c0_98 = arith.constant 0 : index
    %103 = vector.load %arg19[%c16_97, %c0_98] : memref<40x128xbf16, #tpu.memory_space<vmem>>, vector<16x128xbf16>
    %c2_99 = arith.constant 2 : index
    %c0_100 = arith.constant 0 : index
    %c0_101 = arith.constant 0 : index
    %104 = vector.load %arg10[%c2_99, %c0_100, %c0_101] : memref<5x128x128xbf16, #tpu.memory_space<vmem>>, vector<1x128x128xbf16>
    %105 = vector.shape_cast %104 : vector<1x128x128xbf16> to vector<128x128xbf16>
    %cst_102 = arith.constant dense<0.000000e+00> : vector<16x128xf32>
    %106 = tpu.matmul %103, %105, %cst_102 {dimension_numbers = #tpu.dot_dimension_numbers<[1], [0], [0], [1], [0, 0, 1, 1], [], []>} : vector<16x128xbf16>, vector<128x128xbf16>, vector<16x128xf32> -> vector<16x128xf32>
    %107 = arith.addf %102, %106 : vector<16x128xf32>
    %c17_103 = arith.constant 17 : index
    %c0_104 = arith.constant 0 : index
    %108 = vector.load %arg19[%c17_103, %c0_104] : memref<40x128xbf16, #tpu.memory_space<vmem>>, vector<16x128xbf16>
    %c3 = arith.constant 3 : index
    %c0_105 = arith.constant 0 : index
    %c0_106 = arith.constant 0 : index
    %109 = vector.load %arg10[%c3, %c0_105, %c0_106] : memref<5x128x128xbf16, #tpu.memory_space<vmem>>, vector<1x128x128xbf16>
    %110 = vector.shape_cast %109 : vector<1x128x128xbf16> to vector<128x128xbf16>
    %cst_107 = arith.constant dense<0.000000e+00> : vector<16x128xf32>
    %111 = tpu.matmul %108, %110, %cst_107 {dimension_numbers = #tpu.dot_dimension_numbers<[1], [0], [0], [1], [0, 0, 1, 1], [], []>} : vector<16x128xbf16>, vector<128x128xbf16>, vector<16x128xf32> -> vector<16x128xf32>
    %112 = arith.addf %107, %111 : vector<16x128xf32>
    %c18 = arith.constant 18 : index
    %c0_108 = arith.constant 0 : index
    %113 = vector.load %arg19[%c18, %c0_108] : memref<40x128xbf16, #tpu.memory_space<vmem>>, vector<16x128xbf16>
    %c4 = arith.constant 4 : index
    %c0_109 = arith.constant 0 : index
    %c0_110 = arith.constant 0 : index
    %114 = vector.load %arg10[%c4, %c0_109, %c0_110] : memref<5x128x128xbf16, #tpu.memory_space<vmem>>, vector<1x128x128xbf16>
    %115 = vector.shape_cast %114 : vector<1x128x128xbf16> to vector<128x128xbf16>
    %cst_111 = arith.constant dense<0.000000e+00> : vector<16x128xf32>
    %116 = tpu.matmul %113, %115, %cst_111 {dimension_numbers = #tpu.dot_dimension_numbers<[1], [0], [0], [1], [0, 0, 1, 1], [], []>} : vector<16x128xbf16>, vector<128x128xbf16>, vector<16x128xf32> -> vector<16x128xf32>
    %117 = arith.addf %112, %116 : vector<16x128xf32>
    %118 = vector.broadcast %84 : vector<1x128xf32> to vector<16x128xf32>
    %119 = arith.addf %117, %118 : vector<16x128xf32>
    %cst_112 = arith.constant 0.000000e+00 : f32
    %120 = vector.broadcast %cst_112 : f32 to vector<16x128xf32>
    %121 = arith.cmpf oge, %119, %120 : vector<16x128xf32>
    %cst_113 = arith.constant 2.000000e-01 : f32
    %122 = vector.broadcast %cst_113 : f32 to vector<16x128xf32>
    %123 = arith.mulf %122, %119 : vector<16x128xf32>
    %124 = arith.select %121, %119, %123 : vector<16x128xi1>, vector<16x128xf32>
    %125 = arith.truncf %124 : vector<16x128xf32> to vector<16x128xbf16>
    %cst_114 = arith.constant 0.000000e+00 : bf16
    %126 = vector.broadcast %cst_114 : bf16 to vector<2x128xbf16>
    %c14_115 = arith.constant 14 : index
    %c0_116 = arith.constant 0 : index
    %127 = vector.load %arg19[%c14_115, %c0_116] : memref<40x128xbf16, #tpu.memory_space<vmem>>, vector<2x128xbf16>
    tpu.vector_store %arg19[%c14_115, %c0_116], %126 {strides = array<i32>} : memref<40x128xbf16, #tpu.memory_space<vmem>>, vector<2x128xbf16>,
    %c16_117 = arith.constant 16 : index
    %c0_118 = arith.constant 0 : index
    %128 = vector.load %arg19[%c16_117, %c0_118] : memref<40x128xbf16, #tpu.memory_space<vmem>>, vector<16x128xbf16>
    tpu.vector_store %arg19[%c16_117, %c0_118], %125 {strides = array<i32>} : memref<40x128xbf16, #tpu.memory_space<vmem>>, vector<16x128xbf16>,
    %cst_119 = arith.constant 0.000000e+00 : bf16
    %129 = vector.broadcast %cst_119 : bf16 to vector<2x128xbf16>
    %c32_120 = arith.constant 32 : index
    %c0_121 = arith.constant 0 : index
    %130 = vector.load %arg19[%c32_120, %c0_121] : memref<40x128xbf16, #tpu.memory_space<vmem>>, vector<2x128xbf16>
    tpu.vector_store %arg19[%c32_120, %c0_121], %129 {strides = array<i32>} : memref<40x128xbf16, #tpu.memory_space<vmem>>, vector<2x128xbf16>,
    %c14_122 = arith.constant 14 : index
    %c0_123 = arith.constant 0 : index
    %131 = vector.load %arg19[%c14_122, %c0_123] : memref<40x128xbf16, #tpu.memory_space<vmem>>, vector<16x128xbf16>
    %c0_124 = arith.constant 0 : index
    %c0_125 = arith.constant 0 : index
    %c0_126 = arith.constant 0 : index
    %132 = vector.load %arg12[%c0_124, %c0_125, %c0_126] : memref<5x128x128xbf16, #tpu.memory_space<vmem>>, vector<1x128x128xbf16>
    %133 = vector.shape_cast %132 : vector<1x128x128xbf16> to vector<128x128xbf16>
    %cst_127 = arith.constant dense<0.000000e+00> : vector<16x128xf32>
    %134 = tpu.matmul %131, %133, %cst_127 {dimension_numbers = #tpu.dot_dimension_numbers<[1], [0], [0], [1], [0, 0, 1, 1], [], []>} : vector<16x128xbf16>, vector<128x128xbf16>, vector<16x128xf32> -> vector<16x128xf32>
    %c15_128 = arith.constant 15 : index
    %c0_129 = arith.constant 0 : index
    %135 = vector.load %arg19[%c15_128, %c0_129] : memref<40x128xbf16, #tpu.memory_space<vmem>>, vector<16x128xbf16>
    %c1_130 = arith.constant 1 : index
    %c0_131 = arith.constant 0 : index
    %c0_132 = arith.constant 0 : index
    %136 = vector.load %arg12[%c1_130, %c0_131, %c0_132] : memref<5x128x128xbf16, #tpu.memory_space<vmem>>, vector<1x128x128xbf16>
    %137 = vector.shape_cast %136 : vector<1x128x128xbf16> to vector<128x128xbf16>
    %cst_133 = arith.constant dense<0.000000e+00> : vector<16x128xf32>
    %138 = tpu.matmul %135, %137, %cst_133 {dimension_numbers = #tpu.dot_dimension_numbers<[1], [0], [0], [1], [0, 0, 1, 1], [], []>} : vector<16x128xbf16>, vector<128x128xbf16>, vector<16x128xf32> -> vector<16x128xf32>
    %139 = arith.addf %134, %138 : vector<16x128xf32>
    %c16_134 = arith.constant 16 : index
    %c0_135 = arith.constant 0 : index
    %140 = vector.load %arg19[%c16_134, %c0_135] : memref<40x128xbf16, #tpu.memory_space<vmem>>, vector<16x128xbf16>
    %c2_136 = arith.constant 2 : index
    %c0_137 = arith.constant 0 : index
    %c0_138 = arith.constant 0 : index
    %141 = vector.load %arg12[%c2_136, %c0_137, %c0_138] : memref<5x128x128xbf16, #tpu.memory_space<vmem>>, vector<1x128x128xbf16>
    %142 = vector.shape_cast %141 : vector<1x128x128xbf16> to vector<128x128xbf16>
    %cst_139 = arith.constant dense<0.000000e+00> : vector<16x128xf32>
    %143 = tpu.matmul %140, %142, %cst_139 {dimension_numbers = #tpu.dot_dimension_numbers<[1], [0], [0], [1], [0, 0, 1, 1], [], []>} : vector<16x128xbf16>, vector<128x128xbf16>, vector<16x128xf32> -> vector<16x128xf32>
    %144 = arith.addf %139, %143 : vector<16x128xf32>
    %c17_140 = arith.constant 17 : index
    %c0_141 = arith.constant 0 : index
    %145 = vector.load %arg19[%c17_140, %c0_141] : memref<40x128xbf16, #tpu.memory_space<vmem>>, vector<16x128xbf16>
    %c3_142 = arith.constant 3 : index
    %c0_143 = arith.constant 0 : index
    %c0_144 = arith.constant 0 : index
    %146 = vector.load %arg12[%c3_142, %c0_143, %c0_144] : memref<5x128x128xbf16, #tpu.memory_space<vmem>>, vector<1x128x128xbf16>
    %147 = vector.shape_cast %146 : vector<1x128x128xbf16> to vector<128x128xbf16>
    %cst_145 = arith.constant dense<0.000000e+00> : vector<16x128xf32>
    %148 = tpu.matmul %145, %147, %cst_145 {dimension_numbers = #tpu.dot_dimension_numbers<[1], [0], [0], [1], [0, 0, 1, 1], [], []>} : vector<16x128xbf16>, vector<128x128xbf16>, vector<16x128xf32> -> vector<16x128xf32>
    %149 = arith.addf %144, %148 : vector<16x128xf32>
    %c18_146 = arith.constant 18 : index
    %c0_147 = arith.constant 0 : index
    %150 = vector.load %arg19[%c18_146, %c0_147] : memref<40x128xbf16, #tpu.memory_space<vmem>>, vector<16x128xbf16>
    %c4_148 = arith.constant 4 : index
    %c0_149 = arith.constant 0 : index
    %c0_150 = arith.constant 0 : index
    %151 = vector.load %arg12[%c4_148, %c0_149, %c0_150] : memref<5x128x128xbf16, #tpu.memory_space<vmem>>, vector<1x128x128xbf16>
    %152 = vector.shape_cast %151 : vector<1x128x128xbf16> to vector<128x128xbf16>
    %cst_151 = arith.constant dense<0.000000e+00> : vector<16x128xf32>
    %153 = tpu.matmul %150, %152, %cst_151 {dimension_numbers = #tpu.dot_dimension_numbers<[1], [0], [0], [1], [0, 0, 1, 1], [], []>} : vector<16x128xbf16>, vector<128x128xbf16>, vector<16x128xf32> -> vector<16x128xf32>
    %154 = arith.addf %149, %153 : vector<16x128xf32>
    %155 = vector.broadcast %85 : vector<1x128xf32> to vector<16x128xf32>
    %156 = arith.addf %154, %155 : vector<16x128xf32>
    %cst_152 = arith.constant dense<0.000000e+00> : vector<128xf32>
    %157 = vector.multi_reduction <add>, %156, %cst_152 [0] : vector<16x128xf32> to vector<128xf32>
    %158 = vector.shape_cast %157 : vector<128xf32> to vector<1x128xf32>
    %cst_153 = arith.constant 1.600000e+01 : f32
    %159 = vector.broadcast %cst_153 : f32 to vector<1x128xf32>
    %160 = arith.divf %158, %159 : vector<1x128xf32>
    %161 = arith.truncf %160 : vector<1x128xf32> to vector<1x128xbf16>
    %cst_154 = arith.constant dense<0.000000e+00> : vector<1x2xf32>
    %162 = tpu.matmul %161, %86, %cst_154 {dimension_numbers = #tpu.dot_dimension_numbers<[1], [0], [0], [1], [0, 0, 1, 1], [], []>} : vector<1x128xbf16>, vector<128x2xbf16>, vector<1x2xf32> -> vector<1x2xf32>
    %cst_155 = arith.constant 0.000000e+00 : f32
    %163 = vector.broadcast %cst_155 : f32 to vector<1x2xf32>
    %164 = arith.maximumf %162, %163 : vector<1x2xf32>
    %165 = arith.truncf %164 : vector<1x2xf32> to vector<1x2xbf16>
    %cst_156 = arith.constant dense<0.000000e+00> : vector<1x128xf32>
    %166 = tpu.matmul %165, %87, %cst_156 {dimension_numbers = #tpu.dot_dimension_numbers<[1], [0], [0], [1], [0, 0, 1, 1], [], []>} : vector<1x2xbf16>, vector<2x128xbf16>, vector<1x128xf32> -> vector<1x128xf32>
    %167 = arith.negf %166 : vector<1x128xf32>
    %168 = math.exp %167 : vector<1x128xf32>
    %cst_157 = arith.constant 1.000000e+00 : f32
    %169 = vector.broadcast %cst_157 : f32 to vector<1x128xf32>
    %170 = arith.addf %169, %168 : vector<1x128xf32>
    %171 = arith.divf %169, %170 : vector<1x128xf32>
    %172 = vector.broadcast %171 : vector<1x128xf32> to vector<16x128xf32>
    %173 = arith.mulf %156, %172 : vector<16x128xf32>
    %174 = arith.addf %173, %83 : vector<16x128xf32>
    %cst_158 = arith.constant 0.000000e+00 : f32
    %175 = vector.broadcast %cst_158 : f32 to vector<16x128xf32>
    %176 = arith.cmpf oge, %174, %175 : vector<16x128xf32>
    %cst_159 = arith.constant 2.000000e-01 : f32
    %177 = vector.broadcast %cst_159 : f32 to vector<16x128xf32>
    %178 = arith.mulf %177, %174 : vector<16x128xf32>
    %179 = arith.select %176, %174, %178 : vector<16x128xi1>, vector<16x128xf32>
    %c0_160 = arith.constant 0 : index
    %c0_161 = arith.constant 0 : index
    %180 = vector.load %arg17[%c0_160, %c0_161] : memref<1x4xf32, #tpu.memory_space<vmem>>, vector<1x4xf32>
    %181 = arith.truncf %179 : vector<16x128xf32> to vector<16x128xbf16>
    %cst_162 = arith.constant 0.000000e+00 : bf16
    %182 = vector.broadcast %cst_162 : bf16 to vector<1x128xbf16>
    %c15_163 = arith.constant 15 : index
    %c0_164 = arith.constant 0 : index
    %183 = vector.load %arg19[%c15_163, %c0_164] : memref<40x128xbf16, #tpu.memory_space<vmem>>, vector<1x128xbf16>
    tpu.vector_store %arg19[%c15_163, %c0_164], %182 {strides = array<i32>} : memref<40x128xbf16, #tpu.memory_space<vmem>>, vector<1x128xbf16>,
    %c16_165 = arith.constant 16 : index
    %c0_166 = arith.constant 0 : index
    %184 = vector.load %arg19[%c16_165, %c0_166] : memref<40x128xbf16, #tpu.memory_space<vmem>>, vector<16x128xbf16>
    tpu.vector_store %arg19[%c16_165, %c0_166], %181 {strides = array<i32>} : memref<40x128xbf16, #tpu.memory_space<vmem>>, vector<16x128xbf16>,
    %cst_167 = arith.constant 0.000000e+00 : bf16
    %185 = vector.broadcast %cst_167 : bf16 to vector<1x128xbf16>
    %c32_168 = arith.constant 32 : index
    %c0_169 = arith.constant 0 : index
    %186 = vector.load %arg19[%c32_168, %c0_169] : memref<40x128xbf16, #tpu.memory_space<vmem>>, vector<1x128xbf16>
    tpu.vector_store %arg19[%c32_168, %c0_169], %185 {strides = array<i32>} : memref<40x128xbf16, #tpu.memory_space<vmem>>, vector<1x128xbf16>,
    %c15_170 = arith.constant 15 : index
    %c0_171 = arith.constant 0 : index
    %187 = vector.load %arg19[%c15_170, %c0_171] : memref<40x128xbf16, #tpu.memory_space<vmem>>, vector<16x128xbf16>
    %c0_172 = arith.constant 0 : index
    %c0_173 = arith.constant 0 : index
    %c0_174 = arith.constant 0 : index
    %188 = vector.load %arg16[%c0_172, %c0_173, %c0_174] : memref<3x128x4xbf16, #tpu.memory_space<vmem>>, vector<1x128x4xbf16>
    %189 = vector.shape_cast %188 : vector<1x128x4xbf16> to vector<128x4xbf16>
    %cst_175 = arith.constant dense<0.000000e+00> : vector<16x4xf32>
    %190 = tpu.matmul %187, %189, %cst_175 {dimension_numbers = #tpu.dot_dimension_numbers<[1], [0], [0], [1], [0, 0, 1, 1], [], []>} : vector<16x128xbf16>, vector<128x4xbf16>, vector<16x4xf32> -> vector<16x4xf32>
    %c16_176 = arith.constant 16 : index
    %c0_177 = arith.constant 0 : index
    %191 = vector.load %arg19[%c16_176, %c0_177] : memref<40x128xbf16, #tpu.memory_space<vmem>>, vector<16x128xbf16>
    %c1_178 = arith.constant 1 : index
    %c0_179 = arith.constant 0 : index
    %c0_180 = arith.constant 0 : index
    %192 = vector.load %arg16[%c1_178, %c0_179, %c0_180] : memref<3x128x4xbf16, #tpu.memory_space<vmem>>, vector<1x128x4xbf16>
    %193 = vector.shape_cast %192 : vector<1x128x4xbf16> to vector<128x4xbf16>
    %cst_181 = arith.constant dense<0.000000e+00> : vector<16x4xf32>
    %194 = tpu.matmul %191, %193, %cst_181 {dimension_numbers = #tpu.dot_dimension_numbers<[1], [0], [0], [1], [0, 0, 1, 1], [], []>} : vector<16x128xbf16>, vector<128x4xbf16>, vector<16x4xf32> -> vector<16x4xf32>
    %195 = arith.addf %190, %194 : vector<16x4xf32>
    %c17_182 = arith.constant 17 : index
    %c0_183 = arith.constant 0 : index
    %196 = vector.load %arg19[%c17_182, %c0_183] : memref<40x128xbf16, #tpu.memory_space<vmem>>, vector<16x128xbf16>
    %c2_184 = arith.constant 2 : index
    %c0_185 = arith.constant 0 : index
    %c0_186 = arith.constant 0 : index
    %197 = vector.load %arg16[%c2_184, %c0_185, %c0_186] : memref<3x128x4xbf16, #tpu.memory_space<vmem>>, vector<1x128x4xbf16>
    %198 = vector.shape_cast %197 : vector<1x128x4xbf16> to vector<128x4xbf16>
    %cst_187 = arith.constant dense<0.000000e+00> : vector<16x4xf32>
    %199 = tpu.matmul %196, %198, %cst_187 {dimension_numbers = #tpu.dot_dimension_numbers<[1], [0], [0], [1], [0, 0, 1, 1], [], []>} : vector<16x128xbf16>, vector<128x4xbf16>, vector<16x4xf32> -> vector<16x4xf32>
    %200 = arith.addf %195, %199 : vector<16x4xf32>
    %201 = vector.broadcast %180 : vector<1x4xf32> to vector<16x4xf32>
    %202 = arith.addf %200, %201 : vector<16x4xf32>
    %203 = tpu.transpose %202, [1, 0] : vector<16x4xf32> -> vector<4x16xf32>
    %c0_188 = arith.constant 0 : index
    %c0_189 = arith.constant 0 : index
    %c0_190 = arith.constant 0 : index
    %204 = vector.load %arg18[%c0_188, %c0_189, %c0_190] : memref<1x4x16xf32, #tpu.memory_space<vmem>>, vector<1x4x16xf32>
    %205 = vector.shape_cast %204 : vector<1x4x16xf32> to vector<4x16xf32>
    %206 = vector.shape_cast %203 : vector<4x16xf32> to vector<1x4x16xf32>
    tpu.vector_store %arg18[%c0_188, %c0_189, %c0_190], %206 {strides = array<i32>} : memref<1x4x16xf32, #tpu.memory_space<vmem>>, vector<1x4x16xf32>,
    return
  }
  func.func @transform_0(%arg0: i32) -> (i32, i32, i32) {
    %c0_i32 = arith.constant 0 : i32
    %c0_i32_0 = arith.constant 0 : i32
    %c0_i32_1 = arith.constant 0 : i32
    return %arg0, %c0_i32, %c0_i32_0 : i32, i32, i32
  }
  func.func @transform_1(%arg0: i32) -> (i32, i32, i32) {
    %c0_i32 = arith.constant 0 : i32
    %c0_i32_0 = arith.constant 0 : i32
    %c0_i32_1 = arith.constant 0 : i32
    %c0_i32_2 = arith.constant 0 : i32
    return %c0_i32, %c0_i32_0, %c0_i32_1 : i32, i32, i32
  }
  func.func @transform_2(%arg0: i32) -> (i32, i32) {
    %c0_i32 = arith.constant 0 : i32
    %c0_i32_0 = arith.constant 0 : i32
    %c0_i32_1 = arith.constant 0 : i32
    return %c0_i32, %c0_i32_0 : i32, i32
  }
  func.func @transform_3(%arg0: i32) -> (i32, i32, i32) {
    %c0_i32 = arith.constant 0 : i32
    %c0_i32_0 = arith.constant 0 : i32
    %c0_i32_1 = arith.constant 0 : i32
    %c0_i32_2 = arith.constant 0 : i32
    return %c0_i32, %c0_i32_0, %c0_i32_1 : i32, i32, i32
  }
  func.func @transform_4(%arg0: i32) -> (i32, i32) {
    %c0_i32 = arith.constant 0 : i32
    %c0_i32_0 = arith.constant 0 : i32
    %c0_i32_1 = arith.constant 0 : i32
    return %c0_i32, %c0_i32_0 : i32, i32
  }
  func.func @transform_5(%arg0: i32) -> (i32, i32) {
    %c0_i32 = arith.constant 0 : i32
    %c0_i32_0 = arith.constant 0 : i32
    %c0_i32_1 = arith.constant 0 : i32
    return %c0_i32, %c0_i32_0 : i32, i32
  }
  func.func @transform_6(%arg0: i32) -> (i32, i32) {
    %c0_i32 = arith.constant 0 : i32
    %c0_i32_0 = arith.constant 0 : i32
    %c0_i32_1 = arith.constant 0 : i32
    return %c0_i32, %c0_i32_0 : i32, i32
  }
  func.func @transform_7(%arg0: i32) -> (i32, i32) {
    %c0_i32 = arith.constant 0 : i32
    %c0_i32_0 = arith.constant 0 : i32
    %c0_i32_1 = arith.constant 0 : i32
    return %c0_i32, %c0_i32_0 : i32, i32
  }
  func.func @transform_8(%arg0: i32) -> (i32, i32) {
    %c0_i32 = arith.constant 0 : i32
    %c0_i32_0 = arith.constant 0 : i32
    %c0_i32_1 = arith.constant 0 : i32
    return %c0_i32, %c0_i32_0 : i32, i32
  }
  func.func @transform_9(%arg0: i32) -> (i32, i32, i32) {
    %c0_i32 = arith.constant 0 : i32
    %c0_i32_0 = arith.constant 0 : i32
    %c0_i32_1 = arith.constant 0 : i32
    %c0_i32_2 = arith.constant 0 : i32
    return %c0_i32, %c0_i32_0, %c0_i32_1 : i32, i32, i32
  }
  func.func @transform_10(%arg0: i32) -> (i32, i32) {
    %c0_i32 = arith.constant 0 : i32
    %c0_i32_0 = arith.constant 0 : i32
    %c0_i32_1 = arith.constant 0 : i32
    return %c0_i32, %c0_i32_0 : i32, i32
  }
  func.func @transform_11(%arg0: i32) -> (i32, i32, i32) {
    %c0_i32 = arith.constant 0 : i32
    %c0_i32_0 = arith.constant 0 : i32
    %c0_i32_1 = arith.constant 0 : i32
    %c0_i32_2 = arith.constant 0 : i32
    return %c0_i32, %c0_i32_0, %c0_i32_1 : i32, i32, i32
  }
  func.func @transform_12(%arg0: i32) -> (i32, i32) {
    %c0_i32 = arith.constant 0 : i32
    %c0_i32_0 = arith.constant 0 : i32
    %c0_i32_1 = arith.constant 0 : i32
    return %c0_i32, %c0_i32_0 : i32, i32
  }
  func.func @transform_13(%arg0: i32) -> (i32, i32) {
    %c0_i32 = arith.constant 0 : i32
    %c0_i32_0 = arith.constant 0 : i32
    %c0_i32_1 = arith.constant 0 : i32
    return %c0_i32, %c0_i32_0 : i32, i32
  }
  func.func @transform_14(%arg0: i32) -> (i32, i32) {
    %c0_i32 = arith.constant 0 : i32
    %c0_i32_0 = arith.constant 0 : i32
    %c0_i32_1 = arith.constant 0 : i32
    return %c0_i32, %c0_i32_0 : i32, i32
  }
  func.func @transform_15(%arg0: i32) -> (i32, i32, i32) {
    %c0_i32 = arith.constant 0 : i32
    %c0_i32_0 = arith.constant 0 : i32
    %c0_i32_1 = arith.constant 0 : i32
    %c0_i32_2 = arith.constant 0 : i32
    return %c0_i32, %c0_i32_0, %c0_i32_1 : i32, i32, i32
  }
  func.func @transform_16(%arg0: i32) -> (i32, i32) {
    %c0_i32 = arith.constant 0 : i32
    %c0_i32_0 = arith.constant 0 : i32
    %c0_i32_1 = arith.constant 0 : i32
    return %c0_i32, %c0_i32_0 : i32, i32
  }
  func.func @transform_17(%arg0: i32) -> (i32, i32, i32) {
    %c0_i32 = arith.constant 0 : i32
    %c0_i32_0 = arith.constant 0 : i32
    %c0_i32_1 = arith.constant 0 : i32
    return %arg0, %c0_i32, %c0_i32_0 : i32, i32, i32
  }
}

</mosaic_0001>

<bundles_post_ra>
// kernel: tpu_custom_call.1
= control target key start
LH: loop header
LB: loop body
LE: loop exit
PB: predicated region body
PF: predicated region fallthrough
CT: control target
= control target key end

     0   :  { %s5618_s0 = inlined_call_operand.vmem [shape: f32[2,16,4], index: 0, kind: input, shape index: {}]   ;;  %s5619_s1 = inlined_call_operand.vmem [shape: bf16[3,4,128], index: 1, kind: input, shape index: {}]   ;;  %s5620_s2 = inlined_call_operand.vmem [shape: f32[1,128], index: 2, kind: input, shape index: {}]   ;;  %s5621_s3 = inlined_call_operand.hbm [shape: bf16[3,128,128], index: 3, kind: input, shape index: {}]   ;;  %s5622_s4 = inlined_call_operand.vmem [shape: f32[1,128], index: 4, kind: input, shape index: {}]   ;;  %s5623_s5 = inlined_call_operand.vmem [shape: bf16[128,2], index: 5, kind: input, shape index: {}]   ;;  %s5624_s6 = inlined_call_operand.vmem [shape: bf16[2,128], index: 6, kind: input, shape index: {}]   ;;  %s5625_s7 = inlined_call_operand.vmem [shape: bf16[4,128], index: 7, kind: input, shape index: {}]   ;;  %s5626_s8 = inlined_call_operand.vmem [shape: f32[1,128], index: 8, kind: input, shape index: {}]   ;;  %s5627_s9 = inlined_call_operand.vmem [shape: bf16[5,128,128], index: 9, kind: input, shape index: {}]   ;;  %s5628_s10 = inlined_call_operand.vmem [shape: f32[1,128], index: 10, kind: input, shape index: {}]   ;;  %s5629_s11 = inlined_call_operand.hbm [shape: bf16[5,128,128], index: 11, kind: input, shape index: {}]   ;;  %s5630_s12 = inlined_call_operand.vmem [shape: f32[1,128], index: 12, kind: input, shape index: {}]   ;;  %s5631_s13 = inlined_call_operand.vmem [shape: bf16[128,2], index: 13, kind: input, shape index: {}]   ;;  %s5632_s14 = inlined_call_operand.vmem [shape: bf16[2,128], index: 14, kind: input, shape index: {}]   ;;  %s5633_s15 = inlined_call_operand.vmem [shape: bf16[3,128,4], index: 15, kind: input, shape index: {}]   ;;  %s5634_s16 = inlined_call_operand.vmem [shape: f32[1,4], index: 16, kind: input, shape index: {}]   ;;  %s5635_s17 = inlined_call_operand.hbm [shape: f32[2,4,16], index: 17, kind: output, shape index: {}]  }
   0x1   :  { %5649 = sst [smem:[#allocation19_spill]] %s5618_s0 }
   0x2   :  { %5650 = sst [smem:[#allocation20_spill]] %s5619_s1 }
   0x3   :  { %5651 = sst [smem:[#allocation21_spill]] %s5634_s16 }
   0x4   :  { %5652 = sst [smem:[#allocation22_spill]] %s5635_s17 }
   0x5   :  { %22 = vsyncpa [#allocation4], 0 }
   0x6   :  { %23 = vsyncpa [#allocation7], 0 }
   0x7   :  { %24 = vsyncpa [#allocation5], 0 }
   0x8   :  { %26 = vsyncpa [#allocation5 + $0x1], 0  ;;  %s4826_s24 = smov 0   ;;  %s4828_s25 = smov 0  }
   0x9   :  { %s4830_s26 = smov 0   ;;  %s4832_s27 = smov 0  }
   0xa LB: > { %5653 = sst [smem:[#allocation12_spill]] %s4714_s24  ;;  %s4847_s28 = sadd.s32 4294967295, %s4726_s27   ;;  %s4726_s27 = sphi %s4832_s27, %s5688_s27   ;;  %s4722_s26 = sphi %s4830_s26, %s5690_s26   ;;  %s4718_s25 = sphi %s4828_s25, %s5692_s25   ;;  %s4714_s24 = sphi %s4826_s24, %s5691_s24  }
   0xb   : > { %5654 = sst [smem:[#allocation13_spill]] %s4722_s26  ;;  %s3437_s29 = sadd.s32 4294967294, %s4726_s27  }
   0xc   : > { %5655 = sst [smem:[#allocation14_spill]] %s4726_s27  ;;  %s4851_s0 = sadd.s32 1, %s4726_s27  }
   0xd   : > { %5656 = sst [smem:[#allocation15_spill]] %s4851_s0  ;;  %s401_s30 = sadd.s32 1, %s4722_s26 }
   0xe   : > { %s398_s18 = ssub.s32 %s4726_s27, %s4851_s0  ;;  %p411_p0 = scmp.ne.s32.totalorder %s4722_s26, %s4718_s25 }
   0xf   : > { %p399_p1 = scmp.eq.s32.totalorder %s398_s18, 0  ;;  %p412_p2 = scmp.eq.s32.totalorder %s4847_s28, 1 }
  0x10   : > { %p417_p3 = scmp.ne.s32.totalorder %s4718_s25, %s4714_s24  ;;  %p418_p4 = scmp.eq.s32.totalorder %s3437_s29, 1 }
  0x11   : > { %s4862_s19 = scalar_select %p399_p1, %s4722_s26, %s401_s30  }
  0x12   : > { %p4864_p5 = por %p412_p2, %p411_p0  ;;  %p4868_p6 = por %p418_p4, %p417_p3 }
  0x13   : > { %5657 = sst [smem:[#allocation16_spill]] %s4862_s19  ;;  %p3438_p7 = scmp.ge.s32.totalorder %s4726_s27, 1 }
  0x14   : > { %s5658_s1 = scalar_select %p4864_p5, 1, 0 }
  0x15   : > { %s5660_s20 = scalar_select %p4868_p6, 1, 0 }
  0x16   : > { %5659 = sst [smem:[#allocation17_spill]] %s5658_s1  ;;  %p425_p8 = scmp.lt.s32.totalorder %s4726_s27, 3 }
  0x17   : > { %5661 = sst [smem:[#allocation18_spill]] %s5660_s20  ;;  %p5643_p9 = scmp.eq.s32.totalorder %s4847_s28, 0 }
  0x18   : > { %p4875_p10 = pnand %p3438_p7, %p425_p8  ;;  %s4728_s22 = smov [#allocation3]  }
  0x19   : > { %s443_s23 = sshll.u32 %s4728_s22, 4  ;;  %s4729_s30 = smov [#allocation6]   ;;  %s444_s23 = int_to_ptr.vmem [resolvable:$true] %s443_s23 }
  0x1a   : > { %s5662_s21 = scalar_select %p4875_p10, 1, 0 }
  0x1b   : > { %p4362_p11 = pneg %p4875_p10  ;;  %s477_s18 = sshll.u32 %s4729_s30, 4  ;;  %s4887_s18 = int_to_ptr.vmem [resolvable:$true] %s477_s18 }
  0x1c   : > { %s4600_s0 = scalar_lea.hbm %s5621_s3, 3072 }
  0x1d   : > { %p4883_p12 = pnand %p5643_p9, %p4362_p11  ;;  %p4601_p13 = scmp.ne.s32.totalorder %s5621_s3, %s4600_s0 }
  0x1e   : > { %p4607_p3 = scmp.lt.u32.totalorder %s4600_s0, %s5621_s3 }
  0x1f   : > { %p4602_p0 = pneg %p4883_p12 }
  0x21   : > { %p4603_p1 = pnand %p4602_p0, %p4601_p13 }
  0x23   : > { %p4604_p2 = pneg %p4603_p1 }
  0x25   : > { %p4609_p4 = pnand %p4607_p3, %p4604_p2 }
  0x27   : > { %4612 = shalt.err (!%p4609_p4)
}
  0x28   : > { %s4613_s30 = scalar_lea.vmem %s444_s23, 3072  ;;  %p4621_p9 = scmp.lt.s32.totalorder %s444_s23, %s444_s23 }
  0x29   : > { %p4614_p7 = scmp.ne.s32.totalorder %s444_s23, %s4613_s30  ;;  %p4622_p6 = scmp.lt.s32.totalorder %s4613_s30, %s4613_s30 }
  0x2b   : > { %p4616_p8 = pnand %p4614_p7, %p4602_p0  ;;  %p4623_p5 = por %p4622_p6, %p4621_p9 }
  0x2d   : > { %p4617_p11 = pneg %p4616_p8 }
  0x2f   : > { %p4624_p10 = pnand %p4623_p5, %p4617_p11 }
  0x31   : > { %4627 = shalt.err (!%p4624_p10)
}
  0x32   : > { %s4730_s26 = smov 64   ;;  %s4731_s19 = smov 4  }
  0x33   : > { %4365 = dma.hbm_to_vmem [thread:$0]  (!%p4883_p12), %s5621_s3, 3072, %s444_s23, [#allocation4], %s4730_s26, %s4730_s26, %s4731_s19  }
  0x34   : > { %s4628_s22 = scalar_lea.hbm %s5629_s11, 5120 }
  0x35   : > { %p4629_p13 = scmp.ne.s32.totalorder %s5629_s11, %s4628_s22  ;;  %p4635_p9 = scmp.lt.u32.totalorder %s4628_s22, %s5629_s11 }
  0x37   : > { %p4631_p5 = pnand %p4629_p13, %p4602_p0 }
  0x39   : > { %p4632_p6 = pneg %p4631_p5 }
  0x3b   : > { %p4637_p10 = pnand %p4635_p9, %p4632_p6 }
  0x3d   : > { %4640 = shalt.err (!%p4637_p10)
}
  0x3e   : > { %s4641_s23 = scalar_lea.vmem %s4887_s18, 5120  ;;  %p4649_p4 = scmp.lt.s32.totalorder %s4887_s18, %s4887_s18 }
  0x3f   : > { %p4642_p1 = scmp.ne.s32.totalorder %s4887_s18, %s4641_s23  ;;  %p4650_p7 = scmp.lt.s32.totalorder %s4641_s23, %s4641_s23 }
  0x41   : > { %p4644_p2 = pnand %p4642_p1, %p4602_p0  ;;  %p4651_p8 = por %p4650_p7, %p4649_p4 }
  0x43   : > { %p4645_p3 = pneg %p4644_p2 }
  0x45   : > { %p4652_p11 = pnand %p4651_p8, %p4645_p3 }
  0x47   : > { %4655 = shalt.err (!%p4652_p11)
}
  0x48   : > { %4368 = dma.hbm_to_vmem [thread:$0]  (!%p4883_p12), %s5629_s11, 5120, %s4887_s18, [#allocation7], %s4730_s26, %s4730_s26, %s4731_s19  }
  0x49   : > { %p5664_p13 = scmp.ne.s32.totalorder %s5662_s21, 0 }
  0x4a   : > { %p5665_p5 = scmp.eq.s32.totalorder (!%p5664_p13), %s4847_s28, 0 }
  0x4b   : > { %516 = sbr.rel (%p5664_p13) target bundleno = 2575 (0xa0f), region = 88 }
  0x52   : > { %4701 = dma.done.wait (%p5665_p5), [#allocation4], 3072   ;;  %p5666_p0 = pmov %p5665_p5 }
  0x54   : > { %4703 = vsyncadd (%p5666_p0), [#allocation4], 4294964224  ;;  %p5667_p6 = pmov %p5666_p0 }
  0x55   : > { %p5668_p9 = pmov %p5666_p0 }
  0x56   : > { %4705 = dma.done.wait (%p5667_p6), [#allocation7], 5120  }
  0x57   : > { %4707 = vsyncadd (%p5668_p9), [#allocation7], 4294962176  ;;  %p572_p10 = scmp.lt.s32.totalorder %s4847_s28, 1  ;;  %v4732_v0 = vmov 0.0   ;;  %vm4733_vm0 = vmmov 0   ;;  %vm602_vm1 = vcmask 27651  }
  0x58   : > { %3956 = vmatprep.subr.bf16.mxu1 %v4732_v0  ;;  %3958 = vmatprep.mubr.msk.bf16.mxu1 %vm4733_vm0, %v4732_v0  ;;  %vm603_vm2 = vsmask.f32 7950  ;;  %vm618_vm3 = vcmask 24576   ;;  %vm619_vm4 = vsmask.f32 256  ;;  %vm639_vm5 = vcmask 1041408  }
  0x59   : > { %s573_s1 = scalar_select %p572_p10, %s4847_s28, 1  ;;  %3968 = vmatprep.subr.bf16.mxu0 %v4732_v0  ;;  %3970 = vmatprep.mubr.msk.bf16.mxu0 %vm4733_vm0, %v4732_v0  ;;  %vm4960_vm6 = vmand %vm602_vm1, %vm603_vm2  ;;  %vm843_vm7 = vcmask 1043459   ;;  %vm615_vm9 = vcmask 27648   ;;  %vm857_vm10 = vcmask 1040384   ;;  %v605_v7 = vld [vmem:[#allocation2 + $0x4] sm:$0x8] }
  0x5a   : > { %s5669_s26 = sld [smem:[#allocation19_spill]]  ;;  %vm4965_vm8 = vmand %vm618_vm3, %vm619_vm4  ;;  %s5674_s0 = sld [smem:[#allocation20_spill]]  ;;  %v606_v11 = vsel %vm4960_vm6, 0, %v605_v7  ;;  %vm635_vm11 = vcmask 31744   ;;  %v621_v15 = vld [vmem:[#allocation2 + $0x10] sm:$0x1] }
  0x5b   : > { %s3747_s21 = sshll.u32 %s573_s1, 4  ;;  %vm4982_vm12 = vmand %vm843_vm7, %vm603_vm2  ;;  %607 = vst [vmem:[#allocation2 + $0x4] sm:$0x8] %v606_v11  ;;  %v622_v17 = vsel %vm4965_vm8, 0, %v621_v15  ;;  %vm766_vm14 = vsmask.f32 7424 }
  0x5c   : > { %vm4998_vm13 = vmand %vm857_vm10, %vm619_vm4  ;;  %623 = vst [vmem:[#allocation2 + $0x10] sm:$0x1] %v622_v17  ;;  %vm688_vm15 = vsmask.f32 4352  ;;  %v4422_v49 = vld [vmem:[#allocation3 + $0x40] sm:$0xff]   ;;  %v4423_v50 = vld [vmem:[#allocation3 + $0x48] sm:$0xff]  }
  0x5d   : > { %v4424_v51 = vld [vmem:[#allocation3 + $0x50] sm:$0xff]   ;;  %v4425_v52 = vld [vmem:[#allocation3] sm:$0xff]   ;;  %v4426_v53 = vld [vmem:[#allocation3 + $0x58] sm:$0xff]   ;;  %vm1344_vm3 = vcmask 15360   ;;  %vm1651_vm6 = vcmask 1044480   ;;  %vm2008_vm7 = vcmask 1046528  }
  0x5e   : > { %v4427_v54 = vld [vmem:[#allocation3 + $0x8] sm:$0xff]   ;;  %v4428_v55 = vld [vmem:[#allocation3 + $0x60] sm:$0xff]   ;;  %v4429_v56 = vld [vmem:[#allocation3 + $0x10] sm:$0xff]   ;;  %s5680_s30 = sld [smem:[#allocation17_spill]]  ;;  %s569_s23 = sand.u32 1, %s4718_s25  }
  0x5f   : > { %v4430_v57 = vld [vmem:[#allocation3 + $0x68] sm:$0xff]   ;;  %v4431_v58 = vld [vmem:[#allocation3 + $0x18] sm:$0xff]   ;;  %v4432_v59 = vld [vmem:[#allocation3 + $0x70] sm:$0xff]   ;;  %s3445_s16 = sshll.u32 %s569_s23, 2  ;;  %s3744_s17 = sshll.u32 %s4847_s28, 6 }
  0x60   : > { %s4957_s19 = scalar_lea.vmem %s5669_s26, %s3747_s21  ;;  %v3450_v3 = vld [vmem:[%s5674_s0 + $0x2] sm:$0x3]  ;;  %v627_v10 = vld [vmem:[%s5674_s0] sm:$0x3]  ;;  %v3456_v14 = vld [vmem:[%s5674_s0 + $0x4] sm:$0x3] }
  0x61   : > { %v578_v4 = vld [vmem:[%s4957_s19] sm:$0xff]  ;;  %v579_v5 = vld [vmem:[%s4957_s19 + $0x8] sm:$0xff]  ;;  %v641_v6 = vsel %vm639_vm5, %v3450_v3, 0  ;;  %v710_v13 = vsel %vm639_vm5, %v627_v10, 0  ;;  %v783_v16 = vsel %vm639_vm5, %v3456_v14, 0  ;;  %v4433_v60 = vld [vmem:[#allocation3 + $0x20] sm:$0xff]  }
  0x62   : > { %v3748_v8 = vpack.c.bf16 %v578_v4, %v578_v4  ;;  %v3749_v9 = vpack.c.bf16 %v579_v5, %v579_v5  ;;  %3957 = vmatpush3.bf16.msra.mxu1 %v641_v6  ;;  %3969 = vmatpush3.bf16.msra.mxu0 %v783_v16  ;;  %v624_v19 = vld [vmem:[#allocation2 + $0x4] sm:$0x8]  ;;  %v4434_v61 = vld [vmem:[#allocation3 + $0x78] sm:$0xff]   ;;  %v4435_v62 = vld [vmem:[#allocation3 + $0x28] sm:$0xff]   ;;  %v4734_v3 = vmov 0   ;;  %s571_s1 = scalar_lea.vmem [#allocation8], %s3445_s16 }
  0x63   : > { %3962 = vmatprep.subr.bf16.mxu1 %v4732_v0  ;;  %3994 = vmatprep.subr.bf16.mxu0 %v4732_v0  ;;  %v845_v24 = vld [vmem:[#allocation2 + $0x4] sm:$0x8]  ;;  %v859_v28 = vld [vmem:[#allocation2 + $0x10] sm:$0x1]  ;;  %v3460_v15 = vld [vmem:[%s5620_s2] ss:$0 sm:$0xff] }
  0x64   : > { %616 = vst.msk [vmem:[#allocation2 + $0x8] sm:$0xf] %vm615_vm9, %v3748_v8  ;;  %617 = vst.msk [vmem:[#allocation2 + $0xc] sm:$0xf] %vm615_vm9, %v3749_v9  ;;  %v846_v26 = vsel %vm4982_vm12, 0, %v845_v24  ;;  %v860_v30 = vsel %vm4998_vm13, 0, %v859_v28 }
  0x65   : > { %847 = vst [vmem:[#allocation2 + $0x4] sm:$0x8] %v846_v26  ;;  %v4420_v29 = vld [vmem:[#allocation2 + $0x10] ss:$0 sps:$4 sm:$0x11]   ;;  %v4438_v63 = vld [vmem:[#allocation3 + $0x30] sm:$0xff]  }
  0x66   : > { %861 = vst [vmem:[#allocation2 + $0x10] sm:$0x1] %v860_v30  ;;  %v775_v37 = vshll.u32 %v4420_v29, 16  ;;  %v4440_v4 = vld [vmem:[#allocation3 + $0x38] sm:$0xff]   ;;  %s3356_s21 = sshll.u32 %s571_s1, 4  ;;  %s5681_s26 = sld [smem:[#allocation22_spill]]  ;;  %s5578_s21 = int_to_ptr.vmem [resolvable:$true] %s3356_s21 }
  0x67   : > { %s3343_s27 = scalar_lea.sflag [#allocation5], %s569_s23  ;;  %s4656_s22 = scalar_lea.vmem %s5578_s21, 64 }
  0x68   : > { %v777_v43 = vrot.slane %v775_v37, 1  ;;  %p4657_p12 = scmp.ne.s32.totalorder %s5578_s21, %s4656_s22  ;;  %p5683_p1 = scmp.ne.s32.totalorder %s5680_s30, 0 }
  0x69   : > { %s4735_s28 = smov [#allocation8]  }
  0x6a   : > { %p4658_p2 = pnand %p4657_p12, %p5683_p1 }
  0x6b   : > { %v625_v20 = vld [vmem:[#allocation2 + $0x8] sm:$0xf]  ;;  %v626_v21 = vld [vmem:[#allocation2 + $0xc] sm:$0xf] }
  0x6c   : > { %v3451_v22 = vcombine.low %v625_v20, %v626_v21  ;;  %v3453_v23 = vcombine.low %v624_v19, %v625_v20  ;;  %v3454_v25 = vcombine.low %v626_v21, %v626_v21  ;;  %v4419_v27 = vld [vmem:[#allocation2 + $0x8] sm:$0xff]   ;;  %v862_v1 = vld [vmem:[#allocation2 + $0x4] sm:$0x8]  ;;  %s5682_s20 = smov %s5681_s26  ;;  %s5576_s24 = scalar_lea.hbm %s5681_s26, %s3744_s17 }
  0x6d   : > { %v768_v33 = vshrl.u32 %v4419_v27, 16  ;;  %v770_v34 = vshll.u32 %v4419_v27, 16  ;;  %v5033_v2 = vld [vmem:[#allocation2 + $0x10] ss:$0 sps:$4 sm:$0x11]   ;;  %p4659_p3 = pneg %p4658_p2 }
  0x6e   : > { %3959 = vmatmul.mubr.msk.bf16.vlgmr.msra.gmra.mrb[0].mxu1 %vm635_vm11, %v3451_v22  ;;  %v690_v31 = vshrl.u32 %v3453_v23, 16  ;;  %v693_v32 = vshll.u32 %v3453_v23, 16  ;;  %v698_v35 = vshrl.u32 %v3454_v25, 16  ;;  %v701_v36 = vshll.u32 %v3454_v25, 16  ;;  %1485 = vst [vmem:[#allocation2 + $0x4] sm:$0x8] %v4734_v3 }
  0x6f   : > { %3963 = vmatpush3.bf16.msra.mxu1 %v710_v13  ;;  %3964 = vmatprep.mubr.msk.bf16.mxu1 %vm4733_vm0, %v4732_v0  ;;  %v772_v40 = vrot.slane %v770_v34, 1  ;;  %1495 = vst [vmem:[#allocation2 + $0x10] sm:$0x1] %v4734_v3 }
  0x70   : > { %v692_v38 = vrot.slane %v690_v31, 3  ;;  %v695_v39 = vrot.slane %v693_v32, 4  ;;  %3974 = vmatprep.subr.bf16.mxu1 %v4732_v0  ;;  %v700_v41 = vrot.slane %v698_v35, 3  ;;  %v703_v42 = vrot.slane %v701_v36, 4  ;;  %v4439_v31 = vld [vmem:[#allocation3 + $0x80] sm:$0xff]  }
  0x71   : > { %v773_v45 = vor.u32 %v772_v40, %v768_v33 }
  0x72   : > { %v696_v44 = vor.u32 %v695_v39, %v692_v38  ;;  %v704_v46 = vor.u32 %v703_v42, %v700_v41  ;;  %v4441_v41 = vld [vmem:[#allocation3 + $0x88] sm:$0xff]  }
  0x73   : > { %v778_v47 = vsel %vm766_vm14, %v773_v45, %v777_v43 }
  0x74   : > { %v705_v48 = vsel %vm688_vm15, %v696_v44, %v704_v46  ;;  %3971 = vmatmul.mubr.msk.bf16.vlgmr.msra.gmra.mrb[0].mxu0 %vm635_vm11, %v778_v47 }
  0x75   : > { %4010 = vmatprep.mubr.msk.bf16.mxu0 %vm4733_vm0, %v4732_v0  ;;  %3995 = vmatpush3.bf16.msra.mxu0 %v4425_v52 }
  0x76   : > { %3965 = vmatmul.mubr.msk.bf16.vlgmr.msra.gmra.mrb[4].mxu1 %vm635_vm11, %v705_v48  ;;  %3996 = vmatprep.subr.bf16.mxu0 %v4732_v0  ;;  %v4443_v48 = vld [vmem:[#allocation3 + $0x90] sm:$0xff]  }
  0x77   : > { %3990 = vmatprep.mubr.msk.bf16.mxu1 %vm4733_vm0, %v4732_v0  ;;  %3975 = vmatpush3.bf16.msra.mxu1 %v4422_v49 }
  0x78   : > { %3976 = vmatprep.subr.bf16.mxu1 %v4732_v0 }
  0x79   : > { %3997 = vmatpush3.bf16.msra.mxu0 %v4427_v54 }
  0x7a   : > { %3998 = vmatprep.subr.bf16.mxu0 %v4732_v0 }
  0x7b   : > { %3977 = vmatpush3.bf16.msra.mxu1 %v4423_v50  ;;  %v4444_v50 = vld [vmem:[#allocation3 + $0x98] sm:$0xff]  }
  0x7c   : > { %3978 = vmatprep.subr.bf16.mxu1 %v4732_v0 }
  0x7d   : > { %3999 = vmatpush3.bf16.msra.mxu0 %v4429_v56 }
  0x7e   : > { %4000 = vmatprep.subr.bf16.mxu0 %v4732_v0 }
  0x7f   : > { %3979 = vmatpush3.bf16.msra.mxu1 %v4424_v51  ;;  %v4445_v51 = vld [vmem:[#allocation3 + $0xa0] sm:$0xff]  }
  0x80   : > { %3980 = vmatprep.subr.bf16.mxu1 %v4732_v0 }
  0x81   : > { %4001 = vmatpush3.bf16.msra.mxu0 %v4431_v58  ;;  %v4448_v58 = vld [vmem:[#allocation3 + $0xb8] sm:$0xff]  }
  0x82   : > { %4002 = vmatprep.subr.bf16.mxu0 %v4732_v0 }
  0x83   : > { %3981 = vmatpush3.bf16.msra.mxu1 %v4426_v53  ;;  %v4446_v53 = vld [vmem:[#allocation3 + $0xa8] sm:$0xff]  }
  0x84   : > { %3982 = vmatprep.subr.bf16.mxu1 %v4732_v0 }
  0x85   : > { %4003 = vmatpush3.bf16.msra.mxu0 %v4433_v60 }
  0x86   : > { %4004 = vmatprep.subr.bf16.mxu0 %v4732_v0 }
  0x87   : > { %3983 = vmatpush3.bf16.msra.mxu1 %v4428_v55  ;;  %v4447_v55 = vld [vmem:[#allocation3 + $0xb0] sm:$0xff]  }
  0x88   : > { %3984 = vmatprep.subr.bf16.mxu1 %v4732_v0 }
  0x89   : > { %4005 = vmatpush3.bf16.msra.mxu0 %v4435_v62 }
  0x8a   : > { %4006 = vmatprep.subr.bf16.mxu0 %v4732_v0 }
  0x8b   : > { %3985 = vmatpush3.bf16.msra.mxu1 %v4430_v57  ;;  %v1140_v57 = vshll.u32 %v5033_v2, 16  ;;  %v4453_v2 = vld [vmem:[%s5623_s5 + $0x10] sm:$0xff]  }
  0x8c   : > { %3986 = vmatprep.subr.bf16.mxu1 %v4732_v0 }
  0x8d   : > { %4007 = vmatpush3.bf16.msra.mxu0 %v4438_v63  ;;  %v4451_v63 = vld [vmem:[%s5623_s5] sm:$0xff]  }
  0x8e   : > { %4008 = vmatprep.subr.bf16.mxu0 %v4732_v0 }
  0x8f   : > { %3987 = vmatpush3.bf16.msra.mxu1 %v4432_v59 }
  0x90   : > { %3988 = vmatprep.subr.bf16.mxu1 %v4732_v0 }
  0x91   : > { %4009 = vmatpush3.bf16.msra.mxu0 %v4440_v4  ;;  %v4454_v4 = vld [vmem:[%s5623_s5 + $0x18] sm:$0xff]  }
  0x92   : > { %4034 = vmatprep.subr.bf16.mxu0 %v4732_v0 }
  0x93   : > { %3989 = vmatpush3.bf16.msra.mxu1 %v4434_v61  ;;  %v1142_v61 = vrot.slane %v1140_v57, 1 }
  0x94   : > { %4014 = vmatprep.subr.bf16.mxu1 %v4732_v0 }
 0x141   : > { %v677_v5 = vpop.f32.mrb[0].mxu1 }
 0x142   : > { %v3960_v6 = vpop.f32.mrb[1].mxu1 }
 0x143   : > { %v680_v7 = vpop.f32.mrb[2].mxu1  ;;  %v4456_v6 = vld [vmem:[%s5623_s5 + $0x28] sm:$0xff]  }
 0x144   : > { %v3961_v8 = vpop.f32.mrb[3].mxu1 }
 0x145   : > { %v4458_v8 = vld [vmem:[%s5623_s5 + $0x38] sm:$0xff]  }
 0x147   : > { %v819_v9 = vpop.f32.mrb[0].mxu0 }
 0x148   : > { %v3972_v13 = vpop.f32.mrb[1].mxu0 }
 0x149   : > { %v746_v10 = vpop.f32.mrb[4].mxu1  ;;  %v822_v16 = vpop.f32.mrb[2].mxu0 }
 0x14a   : > { %v747_v11 = vadd.f32 %v746_v10, %v677_v5  ;;  %v3966_v14 = vpop.f32.mrb[5].mxu1  ;;  %v3973_v21 = vpop.f32.mrb[3].mxu0  ;;  %v4455_v5 = vld [vmem:[%s5623_s5 + $0x20] sm:$0xff]  }
 0x14b   : > { %v749_v17 = vpop.f32.mrb[6].mxu1 }
 0x14c   : > { %v826_v19 = vadd.f32 %v819_v9, %v747_v11  ;;  %v750_v20 = vadd.f32 %v749_v17, %v680_v7  ;;  %v3967_v22 = vpop.f32.mrb[7].mxu1  ;;  %v4457_v7 = vld [vmem:[%s5623_s5 + $0x30] sm:$0xff]   ;;  %v598_v9 = vld [vmem:[%s5624_s6] sm:$0x1] }
 0x14d   : > { %v1350_v10 = vsel %vm857_vm10, %v598_v9, 0  ;;  %v4473_v9 = vld [vmem:[%s5627_s9 + $0x38] sm:$0xff]  }
 0x14e   : > { %v834_v23 = vadd.f32 %v3460_v15, %v826_v19  ;;  %v827_v24 = vadd.f32 %v822_v16, %v750_v20 }
 0x150   : > { %v838_v25 = vmul.f32 0.2, %v834_v23  ;;  %v835_v26 = vadd.f32 %v3460_v15, %v827_v24  ;;  %vm836_vm1 = vcmp.ge.f32.partialorder %v834_v23, 0.0 }
 0x152   : > { %vm837_vm2 = vcmp.ge.f32.partialorder %v835_v26, 0.0  ;;  %v839_v27 = vmul.f32 0.2, %v835_v26  ;;  %v840_v28 = vsel %vm836_vm1, %v834_v23, %v838_v25 }
 0x154   : > { %v841_v29 = vsel %vm837_vm2, %v835_v26, %v839_v27  ;;  %v3492_v26 = vld [vmem:[%s5622_s4] ss:$0 sm:$0xff] }
 0x155   : > { %v3761_v30 = vpack.c.bf16 %v841_v29, %v840_v28 }
 0x157   : > { %3778 = vst [vmem:[#allocation2 + $0x8] sm:$0xff] %v3761_v30  }
 0x15e   : > { %v863_v32 = vld [vmem:[#allocation2 + $0x8] sm:$0xf]  ;;  %v864_v33 = vld [vmem:[#allocation2 + $0xc] sm:$0xf] }
 0x15f   : > { %v3463_v34 = vcombine.low %v863_v32, %v864_v33  ;;  %v3472_v35 = vcombine.low %v862_v1, %v863_v32  ;;  %v3473_v36 = vcombine.low %v864_v33, %v864_v33  ;;  %v4449_v52 = vld [vmem:[#allocation2 + $0x8] sm:$0xff]  }
 0x160   : > { %v1135_v54 = vshll.u32 %v4449_v52, 16  ;;  %v1133_v59 = vshrl.u32 %v4449_v52, 16  ;;  %v4452_v1 = vld [vmem:[%s5623_s5 + $0x8] sm:$0xff]   ;;  %v4459_v52 = vld [vmem:[%s5627_s9] sm:$0xff]  }
 0x161   : > { %3991 = vmatmul.mubr.bf16.vlgmr.msra.gmra.mrb[8].mxu1 %v3463_v34  ;;  %v998_v37 = vshrl.u32 %v3472_v35, 16  ;;  %v1001_v38 = vshll.u32 %v3472_v35, 16  ;;  %v1006_v39 = vshrl.u32 %v3473_v36, 16  ;;  %v1009_v40 = vshll.u32 %v3473_v36, 16 }
 0x162   : > { %4015 = vmatpush3.bf16.msra.mxu1 %v4439_v31  ;;  %4030 = vmatprep.mubr.msk.bf16.mxu1 %vm4733_vm0, %v4732_v0  ;;  %v1137_v56 = vrot.slane %v1135_v54, 1  ;;  %v4461_v54 = vld [vmem:[%s5627_s9 + $0x8] sm:$0xff]  }
 0x163   : > { %4016 = vmatprep.subr.bf16.mxu1 %v4732_v0  ;;  %v1000_v42 = vrot.slane %v998_v37, 3  ;;  %v1003_v43 = vrot.slane %v1001_v38, 4  ;;  %v1008_v44 = vrot.slane %v1006_v39, 3  ;;  %v1011_v45 = vrot.slane %v1009_v40, 4 }
 0x164   : > { %v1138_v60 = vor.u32 %v1137_v56, %v1133_v59  ;;  %v4463_v59 = vld [vmem:[%s5627_s9 + $0x10] sm:$0xff]  }
 0x165   : > { %v1004_v46 = vor.u32 %v1003_v43, %v1000_v42  ;;  %v1012_v47 = vor.u32 %v1011_v45, %v1008_v44  ;;  %v4598_v43 = vld [vmem:[%s4957_s19] sm:$0xff]  ;;  %v4599_v44 = vld [vmem:[%s4957_s19 + $0x8] sm:$0xff]  ;;  %s5679_s19 = sld [smem:[#allocation21_spill]] }
 0x166   : > { %4017 = vmatpush3.bf16.msra.mxu1 %v4441_v41  ;;  %v1143_v62 = vsel %vm766_vm14, %v1138_v60, %v1142_v61  ;;  %v599_v41 = vld [vmem:[%s5625_s7] sm:$0x3]  ;;  %v601_v45 = vpack.c.bf16 %v4599_v44, %v4598_v43  ;;  %v4464_v61 = vld [vmem:[%s5627_s9 + $0x50] sm:$0xff]  }
 0x167   : > { %v1013_v49 = vsel %vm688_vm15, %v1004_v46, %v1012_v47  ;;  %4018 = vmatprep.subr.bf16.mxu1 %v4732_v0  ;;  %v1414_v42 = vsel %vm639_vm5, %v599_v41, 0  ;;  %v4477_v44 = vld [vmem:[%s5627_s9 + $0xc0] sm:$0xff]  }
 0x168   : > { %4011 = vmatmul.mubr.bf16.vlgmr.msra.gmra.mrb[4].mxu0 %v1013_v49 }
 0x169   : > { %4050 = vmatprep.mubr.msk.bf16.mxu0 %vm4733_vm0, %v4732_v0  ;;  %4035 = vmatpush3.bf16.msra.mxu0 %v4451_v63  ;;  %v4466_v63 = vld [vmem:[%s5627_s9 + $0x58] sm:$0xff]  }
 0x16a   : > { %4019 = vmatpush3.bf16.msra.mxu1 %v4443_v48  ;;  %4036 = vmatprep.subr.bf16.mxu0 %v4732_v0 }
 0x16b   : > { %4020 = vmatprep.subr.bf16.mxu1 %v4732_v0 }
 0x16d   : > { %4037 = vmatpush3.bf16.msra.mxu0 %v4452_v1  ;;  %v4467_v1 = vld [vmem:[%s5627_s9 + $0x20] sm:$0xff]  }
 0x16e   : > { %4021 = vmatpush3.bf16.msra.mxu1 %v4444_v50  ;;  %4038 = vmatprep.subr.bf16.mxu0 %v4732_v0 }
 0x16f   : > { %4022 = vmatprep.subr.bf16.mxu1 %v4732_v0 }
 0x171   : > { %4039 = vmatpush3.bf16.msra.mxu0 %v4453_v2  ;;  %v4468_v2 = vld [vmem:[%s5627_s9 + $0x60] sm:$0xff]  }
 0x172   : > { %4023 = vmatpush3.bf16.msra.mxu1 %v4445_v51  ;;  %4040 = vmatprep.subr.bf16.mxu0 %v4732_v0 }
 0x173   : > { %4024 = vmatprep.subr.bf16.mxu1 %v4732_v0 }
 0x175   : > { %4041 = vmatpush3.bf16.msra.mxu0 %v4454_v4  ;;  %v4469_v4 = vld [vmem:[%s5627_s9 + $0x28] sm:$0xff]  }
 0x176   : > { %4025 = vmatpush3.bf16.msra.mxu1 %v4446_v53  ;;  %4042 = vmatprep.subr.bf16.mxu0 %v4732_v0  ;;  %v4460_v53 = vld [vmem:[%s5627_s9 + $0x40] sm:$0xff]  }
 0x177   : > { %4026 = vmatprep.subr.bf16.mxu1 %v4732_v0 }
 0x179   : > { %4043 = vmatpush3.bf16.msra.mxu0 %v4455_v5  ;;  %v4470_v5 = vld [vmem:[%s5627_s9 + $0x68] sm:$0xff]  }
 0x17a   : > { %4027 = vmatpush3.bf16.msra.mxu1 %v4447_v55  ;;  %4044 = vmatprep.subr.bf16.mxu0 %v4732_v0 }
 0x17b   : > { %4028 = vmatprep.subr.bf16.mxu1 %v4732_v0 }
 0x17d   : > { %4045 = vmatpush3.bf16.msra.mxu0 %v4456_v6  ;;  %v4471_v6 = vld [vmem:[%s5627_s9 + $0x30] sm:$0xff]  }
 0x17e   : > { %4029 = vmatpush3.bf16.msra.mxu1 %v4448_v58  ;;  %4046 = vmatprep.subr.bf16.mxu0 %v4732_v0  ;;  %v4462_v58 = vld [vmem:[%s5627_s9 + $0x48] sm:$0xff]  }
 0x17f   : > { %4054 = vmatprep.subr.bf16.mxu1 %v4732_v0 }
 0x181   : > { %4031 = vmatmul.mubr.bf16.vlgmr.msra.gmra.mrb[12].mxu1 %v1143_v62  ;;  %4047 = vmatpush3.bf16.msra.mxu0 %v4457_v7  ;;  %v4465_v62 = vld [vmem:[%s5627_s9 + $0x18] sm:$0xff]   ;;  %v1496_v7 = vld [vmem:[#allocation2 + $0x4] sm:$0x8] }
 0x182   : > { %4056 = vmatprep.mubr.msk.bf16.mxu1 %vm4733_vm0, %v4732_v0  ;;  %4048 = vmatprep.subr.bf16.mxu0 %v4732_v0  ;;  %2119 = vst [vmem:[#allocation2 + $0x4] sm:$0x8] %v4734_v3 }
 0x183   : > { %4055 = vmatpush3.bf16.msra.mxu1 %v1350_v10  ;;  %v4474_v10 = vld [vmem:[%s5627_s9 + $0x78] sm:$0xff]  }
 0x184   : > { %4066 = vmatprep.subr.bf16.mxu1 %v4732_v0 }
 0x185   : > { %4049 = vmatpush3.bf16.msra.mxu0 %v4458_v8  ;;  %v4472_v8 = vld [vmem:[%s5627_s9 + $0x70] sm:$0xff]  }
 0x186   : > { %4060 = vmatprep.subr.bf16.mxu0 %v4732_v0 }
 0x234   : > { %v986_v11 = vpop.f32.mrb[8].mxu1 }
 0x235   : > { %v3992_v13 = vpop.f32.mrb[9].mxu1 }
 0x236   : > { %v989_v14 = vpop.f32.mrb[10].mxu1 }
 0x237   : > { %v3993_v15 = vpop.f32.mrb[11].mxu1 }
 0x23b   : > { %v1097_v16 = vpop.f32.mrb[4].mxu0 }
 0x23c   : > { %v1098_v17 = vadd.f32 %v1097_v16, %v986_v11  ;;  %v4012_v19 = vpop.f32.mrb[5].mxu0  ;;  %v5188_v11 = vld [vmem:[#allocation2 + $0x10] ss:$0 sps:$4 sm:$0x11]  }
 0x23d   : > { %v1100_v20 = vpop.f32.mrb[6].mxu0  ;;  %2129 = vst [vmem:[#allocation2 + $0x10] sm:$0x1] %v4734_v3  ;;  %v3503_v3 = vld [vmem:[%s5626_s8] ss:$0 sm:$0xff] }
 0x23e   : > { %v1101_v21 = vadd.f32 %v1100_v20, %v989_v14  ;;  %v4013_v22 = vpop.f32.mrb[7].mxu0 }
 0x254   : > { %v1227_v23 = vpop.f32.mrb[12].mxu1 }
 0x255   : > { %v1234_v24 = vadd.f32 %v1227_v23, %v1098_v17  ;;  %v4032_v25 = vpop.f32.mrb[13].mxu1 }
 0x256   : > { %v1230_v27 = vpop.f32.mrb[14].mxu1 }
 0x257   : > { %v1235_v28 = vadd.f32 %v1230_v27, %v1101_v21  ;;  %v4033_v29 = vpop.f32.mrb[15].mxu1  ;;  %v5099_v30 = vadd.f32 %v3492_v26, %v1234_v24  ;;  %v1398_v21 = vlaneseq }
 0x259   : > { %v5101_v31 = vadd.f32 %v3492_v26, %v1235_v28  ;;  %v5192_v22 = vshrl.u32 %v1398_v21, 7  ;;  %v4495_v21 = vld [vmem:[%s5627_s9 + $0xb8] sm:$0xff]  }
 0x25b   : > { %v1244_v32 = vadd.f32 %v5101_v31, %v5099_v30  ;;  %v1400_v23 = vsub.s32 0, %v5192_v22  ;;  %v4579_v22 = vld [vmem:[%s5633_s15 + $0x80] sm:$0xff]  }
 0x25d   : > { %v1245_v33 = vrot.slane %v1244_v32, 4 }
 0x25f   : > { %v1246_v34 = vadd.f32 %v1245_v33, %v1244_v32 }
 0x261   : > { %v1247_v35 = vrot.slane %v1246_v34, 2 }
 0x263   : > { %v1248_v36 = vadd.f32 %v1247_v35, %v1246_v34 }
 0x265   : > { %v1249_v37 = vrot.slane %v1248_v36, 1 }
 0x267   : > { %v1250_v38 = vadd.f32 %v1249_v37, %v1248_v36 }
 0x269   : > { %v1252_v39 = vmul.f32 0.0625, %v1250_v38 }
 0x26b   : > { %v1253_v40 = vpack.c.bf16 %v1252_v39, %v1252_v39 }
 0x26d   : > { %4051 = vmatmul.mubr.bf16.vlgmr.msra.gmra.mrb[8].mxu0 %v1253_v40 }
 0x26e   : > { %4062 = vmatprep.mubr.msk.bf16.mxu0 %vm4733_vm0, %v4732_v0  ;;  %4061 = vmatpush3.bf16.msra.mxu0 %v1414_v42 }
 0x26f   : > { %4086 = vmatprep.subr.bf16.mxu0 %v4732_v0 }
 0x275   : > { %4063 = vmatmul.mubr.msk.bf16.vlgmr.msra.gmra.mrb[12].mxu0 %vm635_vm11, %v601_v45 }
 0x276   : > { %4102 = vmatprep.mubr.msk.bf16.mxu0 %vm4733_vm0, %v4732_v0  ;;  %4087 = vmatpush3.bf16.msra.mxu0 %v4459_v52 }
 0x277   : > { %4088 = vmatprep.subr.bf16.mxu0 %v4732_v0 }
 0x27a   : > { %4089 = vmatpush3.bf16.msra.mxu0 %v4461_v54 }
 0x27b   : > { %4090 = vmatprep.subr.bf16.mxu0 %v4732_v0 }
 0x27e   : > { %4091 = vmatpush3.bf16.msra.mxu0 %v4463_v59  ;;  %v4482_v59 = vld [vmem:[%s5627_s9 + $0xd0] sm:$0xff]  }
 0x27f   : > { %4092 = vmatprep.subr.bf16.mxu0 %v4732_v0 }
 0x282   : > { %4093 = vmatpush3.bf16.msra.mxu0 %v4465_v62  ;;  %v4483_v62 = vld [vmem:[%s5627_s9 + $0x90] sm:$0xff]  }
 0x283   : > { %4094 = vmatprep.subr.bf16.mxu0 %v4732_v0 }
 0x286   : > { %4095 = vmatpush3.bf16.msra.mxu0 %v4467_v1 }
 0x287   : > { %4096 = vmatprep.subr.bf16.mxu0 %v4732_v0 }
 0x28a   : > { %4097 = vmatpush3.bf16.msra.mxu0 %v4469_v4  ;;  %v4485_v4 = vld [vmem:[%s5627_s9 + $0x98] sm:$0xff]  }
 0x28b   : > { %4098 = vmatprep.subr.bf16.mxu0 %v4732_v0 }
 0x28e   : > { %4099 = vmatpush3.bf16.msra.mxu0 %v4471_v6  ;;  %v4488_v6 = vld [vmem:[%s5627_s9 + $0xe8] sm:$0xff]  }
 0x28f   : > { %4100 = vmatprep.subr.bf16.mxu0 %v4732_v0 }
 0x292   : > { %4101 = vmatpush3.bf16.msra.mxu0 %v4473_v9  ;;  %v4490_v9 = vld [vmem:[%s5627_s9 + $0xf0] sm:$0xff]  }
 0x293   : > { %4126 = vmatprep.subr.bf16.mxu0 %v4732_v0 }
 0x340   : > { %v1336_v46 = vpop.f32.mrb[8].mxu0 }
 0x341   : > { %v1342_v47 = vmax.f32 %v1336_v46, 0.0  ;;  %v4052_v48 = vpop.f32.mrb[9].mxu0 }
 0x342   : > { %v1339_v49 = vpop.f32.mrb[10].mxu0 }
 0x343   : > { %v1343_v50 = vpack.c.bf16 %v1342_v47, %v1342_v47  ;;  %v4053_v51 = vpop.f32.mrb[11].mxu0 }
 0x345   : > { %4057 = vmatmul.mubr.msk.bf16.vlgmr.msra.gmra.mrb[16].mxu1 %vm1344_vm3, %v1343_v50 }
 0x346   : > { %4082 = vmatprep.mubr.msk.bf16.mxu1 %vm4733_vm0, %v4732_v0  ;;  %4067 = vmatpush3.bf16.msra.mxu1 %v4460_v53 }
 0x347   : > { %4068 = vmatprep.subr.bf16.mxu1 %v4732_v0 }
 0x348   : > { %v5130_v55 = vpop.f32.mrb[12].mxu0 }
 0x349   : > { %v4064_v56 = vpop.f32.mrb[13].mxu0  ;;  %v1451_v27 = vadd.f32 %v3503_v3, %v5130_v55  ;;  %v4480_v55 = vld [vmem:[%s5627_s9 + $0xc8] sm:$0xff]  }
 0x34a   : > { %v5134_v57 = vpop.f32.mrb[14].mxu0  ;;  %4069 = vmatpush3.bf16.msra.mxu1 %v4462_v58 }
 0x34b   : > { %v4065_v60 = vpop.f32.mrb[15].mxu0  ;;  %4070 = vmatprep.subr.bf16.mxu1 %v4732_v0  ;;  %v1454_v29 = vadd.f32 %v3503_v3, %v5134_v57  ;;  %v4479_v57 = vld [vmem:[%s5627_s9 + $0x80] sm:$0xff]  }
 0x34c   : > { %v4481_v60 = vld [vmem:[%s5627_s9 + $0x88] sm:$0xff]   ;;  %v4497_v3 = vld [vmem:[%s5627_s9 + $0x100] sm:$0xff]  }
 0x34e   : > { %4071 = vmatpush3.bf16.msra.mxu1 %v4464_v61  ;;  %v4484_v61 = vld [vmem:[%s5627_s9 + $0xd8] sm:$0xff]  }
 0x34f   : > { %4072 = vmatprep.subr.bf16.mxu1 %v4732_v0 }
 0x352   : > { %4073 = vmatpush3.bf16.msra.mxu1 %v4466_v63 }
 0x353   : > { %4074 = vmatprep.subr.bf16.mxu1 %v4732_v0 }
 0x356   : > { %4075 = vmatpush3.bf16.msra.mxu1 %v4468_v2  ;;  %v4486_v2 = vld [vmem:[%s5627_s9 + $0xe0] sm:$0xff]  }
 0x357   : > { %4076 = vmatprep.subr.bf16.mxu1 %v4732_v0 }
 0x35a   : > { %4077 = vmatpush3.bf16.msra.mxu1 %v4470_v5 }
 0x35b   : > { %4078 = vmatprep.subr.bf16.mxu1 %v4732_v0 }
 0x35e   : > { %4079 = vmatpush3.bf16.msra.mxu1 %v4472_v8 }
 0x35f   : > { %4080 = vmatprep.subr.bf16.mxu1 %v4732_v0 }
 0x362   : > { %4081 = vmatpush3.bf16.msra.mxu1 %v4474_v10  ;;  %v4489_v10 = vld [vmem:[%s5627_s9 + $0xa8] sm:$0xff]  }
 0x363   : > { %4106 = vmatprep.subr.bf16.mxu1 %v4732_v0 }
 0x418   : > { %v1386_v13 = vpop.f32.mrb[16].mxu1 }
 0x419   : > { %v3502_v14 = vmul.f32 -1.442695, %v1386_v13  ;;  %v4058_v15 = vpop.f32.mrb[17].mxu1 }
 0x41a   : > { %v1389_v16 = vpop.f32.mrb[18].mxu1  ;;  %v4492_v15 = vld [vmem:[%s5627_s9 + $0xf8] sm:$0xff]  }
 0x41b   : > { %4590 = vpow2.f32 %v3502_v14  ;;  %v4059_v17 = vpop.f32.mrb[19].mxu1  ;;  %v1891_v14 = vshll.u32 %v5188_v11, 16 }
 0x41c   : > { %v4491_v17 = vld [vmem:[%s5627_s9 + $0xb0] sm:$0xff]  }
 0x425   : > { %v4591_v19 = vpop.eup %4590 }
 0x426   : > { %v1395_v20 = vadd.f32 1.0, %v4591_v19 }
 0x428   : > { %4592 = vrcp.f32 %v1395_v20  ;;  %v1893_v20 = vrot.slane %v1891_v14, 1 }
 0x432   : > { %v4593_v24 = vpop.eup %4592 }
 0x433   : > { %v1401_v25 = vrot.slane %v4593_v24, %v1400_v23 }
 0x435   : > { %v1402_v26 = vmul.f32 %v1401_v25, %v5099_v30  ;;  %v1403_v28 = vmul.f32 %v1401_v25, %v5101_v31 }
 0x437   : > { %v1457_v32 = vadd.f32 %v1451_v27, %v1402_v26  ;;  %v1458_v33 = vadd.f32 %v1454_v29, %v1403_v28  ;;  %v4498_v26 = vld [vmem:[%s5627_s9 + $0x108] sm:$0xff]   ;;  %v4499_v27 = vld [vmem:[%s5627_s9 + $0x110] sm:$0xff]   ;;  %v4500_v28 = vld [vmem:[%s5627_s9 + $0x118] sm:$0xff]  }
 0x438   : > { %v4501_v29 = vld [vmem:[%s5627_s9 + $0x120] sm:$0xff]  }
 0x439   : > { %vm1459_vm4 = vcmp.ge.f32.partialorder %v1457_v32, 0.0  ;;  %v1461_v34 = vmul.f32 0.2, %v1457_v32  ;;  %vm1460_vm5 = vcmp.ge.f32.partialorder %v1458_v33, 0.0  ;;  %v1462_v35 = vmul.f32 0.2, %v1458_v33 }
 0x43b   : > { %v5204_v36 = vsel %vm1459_vm4, %v1457_v32, %v1461_v34  ;;  %v5206_v37 = vsel %vm1460_vm5, %v1458_v33, %v1462_v35  ;;  %v4502_v32 = vld [vmem:[%s5627_s9 + $0x128] sm:$0xff]   ;;  %v4503_v34 = vld [vmem:[%s5627_s9 + $0x130] sm:$0xff]  }
 0x43c   : > { %v3766_v38 = vpack.c.bf16 %v5206_v37, %v5204_v36 }
 0x43e   : > { %3779 = vst [vmem:[#allocation2 + $0x8] sm:$0xff] %v3766_v38   ;;  %v4504_v38 = vld [vmem:[%s5627_s9 + $0x138] sm:$0xff]  }
 0x445   : > { %v5210_v30 = vld [vmem:[#allocation2 + $0x8] sm:$0xf]  ;;  %v5212_v39 = vld [vmem:[#allocation2 + $0xc] sm:$0xf] }
 0x446   : > { %v3523_v31 = vcombine.low %v1496_v7, %v5210_v30  ;;  %v4476_v40 = vld [vmem:[#allocation2 + $0xc] ss:$0 sps:$4 sm:$0x77]   ;;  %v3524_v41 = vcombine.low %v5212_v39, %v5212_v39  ;;  %v1855_v63 = vld [vmem:[#allocation2 + $0x8] sm:$0xf]  ;;  %v4487_v7 = vld [vmem:[%s5627_s9 + $0xa0] sm:$0xff]   ;;  %v3558_v25 = vcombine.low %v5210_v30, %v5212_v39 }
 0x447   : > { %v1653_v43 = vrot.slane %v4476_v40, 3  ;;  %v5249_v1 = vld [vmem:[#allocation2 + $0xc] sm:$0xf]  ;;  %v1987_v33 = vld [vmem:[#allocation2 + $0x8] sm:$0xe]  ;;  %v2010_v39 = vrot.slane %v5188_v11, 1 }
 0x448   : > { %v1652_v42 = vrot.slane %v3523_v31, 3  ;;  %v1542_v45 = vshrl.u32 %v3523_v31, 16  ;;  %v1545_v46 = vshll.u32 %v3523_v31, 16  ;;  %v1550_v47 = vshrl.u32 %v3524_v41, 16  ;;  %v4506_v40 = vld [vmem:[#allocation6] sm:$0xff]   ;;  %v4509_v11 = vld [vmem:[#allocation6 + $0x48] sm:$0xff]  }
 0x449   : > { %v1553_v48 = vshll.u32 %v3524_v41, 16  ;;  %v3583_v5 = vcombine.low %v1855_v63, %v5249_v1  ;;  %v3609_v35 = vcombine.low %v1987_v33, %v5249_v1  ;;  %v4507_v41 = vld [vmem:[#allocation6 + $0x40] sm:$0xff]  }
 0x44a   : > { %v1654_v49 = vsel %vm1651_vm6, %v1652_v42, %v1653_v43  ;;  %v1544_v50 = vrot.slane %v1542_v45, 3  ;;  %v1547_v51 = vrot.slane %v1545_v46, 4  ;;  %v1552_v52 = vrot.slane %v1550_v47, 3  ;;  %v4508_v42 = vld [vmem:[#allocation6 + $0x8] sm:$0xff]   ;;  %v4510_v43 = vld [vmem:[#allocation6 + $0x10] sm:$0xff]   ;;  %v4512_v45 = vld [vmem:[#allocation6 + $0x18] sm:$0xff]  }
 0x44b   : > { %4103 = vmatmul.mubr.bf16.vlgmr.msra.gmra.mrb[16].mxu0 %v1654_v49  ;;  %v1555_v53 = vrot.slane %v1553_v48, 4  ;;  %v1886_v8 = vshll.u32 %v3583_v5, 16  ;;  %v1884_v16 = vshrl.u32 %v3583_v5, 16  ;;  %v2009_v30 = vrot.slane %v3609_v35, 1  ;;  %v4513_v46 = vld [vmem:[#allocation6 + $0x58] sm:$0xff]   ;;  %v4514_v47 = vld [vmem:[#allocation6 + $0x20] sm:$0xff]  }
 0x44c   : > { %4127 = vmatpush3.bf16.msra.mxu0 %v4477_v44  ;;  %v1548_v54 = vor.u32 %v1547_v51, %v1544_v50  ;;  %4142 = vmatprep.mubr.msk.bf16.mxu0 %vm4733_vm0, %v4732_v0  ;;  %v4511_v44 = vld [vmem:[#allocation6 + $0x50] sm:$0xff]   ;;  %v4515_v48 = vld [vmem:[#allocation6 + $0x60] sm:$0xff]   ;;  %v4516_v49 = vld [vmem:[#allocation6 + $0x28] sm:$0xff]  }
 0x44d   : > { %4128 = vmatprep.subr.bf16.mxu0 %v4732_v0  ;;  %v1556_v56 = vor.u32 %v1555_v53, %v1552_v52  ;;  %v1888_v13 = vrot.slane %v1886_v8, 1  ;;  %v2011_v31 = vsel %vm2008_vm7, %v2009_v30, %v2010_v39  ;;  %v4517_v50 = vld [vmem:[#allocation6 + $0x68] sm:$0xff]   ;;  %v4518_v51 = vld [vmem:[#allocation6 + $0x30] sm:$0xff]   ;;  %v4520_v53 = vld [vmem:[#allocation6 + $0x38] sm:$0xff]  }
 0x44e   : > { %v4519_v52 = vld [vmem:[#allocation6 + $0x70] sm:$0xff]  }
 0x44f   : > { %v1557_v58 = vsel %vm688_vm15, %v1548_v54, %v1556_v56  ;;  %v1889_v19 = vor.u32 %v1888_v13, %v1884_v16  ;;  %v2911_v54 = vld [vmem:[#allocation2 + $0x4] sm:$0x8] }
 0x450   : > { %4083 = vmatmul.mubr.bf16.vlgmr.msra.gmra.mrb[20].mxu1 %v1557_v58  ;;  %4129 = vmatpush3.bf16.msra.mxu0 %v4480_v55  ;;  %v4521_v55 = vld [vmem:[#allocation6 + $0x78] sm:$0xff]   ;;  %v2130_v56 = vld [vmem:[#allocation2 + $0x4] sm:$0x8] }
 0x451   : > { %4107 = vmatpush3.bf16.msra.mxu1 %v4479_v57  ;;  %4130 = vmatprep.subr.bf16.mxu0 %v4732_v0  ;;  %v1894_v24 = vsel %vm766_vm14, %v1889_v19, %v1893_v20  ;;  %v2912_v57 = vsel %vm4982_vm12, 0, %v2911_v54  ;;  %v2923_v58 = vld [vmem:[#allocation2 + $0x10] sm:$0x1] }
 0x452   : > { %4108 = vmatprep.subr.bf16.mxu1 %v4732_v0  ;;  %4122 = vmatprep.mubr.msk.bf16.mxu1 %vm4733_vm0, %v4732_v0  ;;  %2913 = vst [vmem:[#allocation2 + $0x4] sm:$0x8] %v2912_v57 }
 0x454   : > { %4131 = vmatpush3.bf16.msra.mxu0 %v4482_v59  ;;  %v5353_v59 = vld [vmem:[#allocation2 + $0x10] ss:$0 sps:$4 sm:$0x11]  }
 0x455   : > { %4109 = vmatpush3.bf16.msra.mxu1 %v4481_v60  ;;  %4132 = vmatprep.subr.bf16.mxu0 %v4732_v0  ;;  %v2924_v60 = vsel %vm4998_vm13, 0, %v2923_v58  ;;  %v4526_v58 = vld [vmem:[#allocation6 + $0x80] sm:$0xff]  }
 0x456   : > { %4110 = vmatprep.subr.bf16.mxu1 %v4732_v0  ;;  %2925 = vst [vmem:[#allocation2 + $0x10] sm:$0x1] %v2924_v60 }
 0x458   : > { %4133 = vmatpush3.bf16.msra.mxu0 %v4484_v61 }
 0x459   : > { %4111 = vmatpush3.bf16.msra.mxu1 %v4483_v62  ;;  %4134 = vmatprep.subr.bf16.mxu0 %v4732_v0 }
 0x45a   : > { %4112 = vmatprep.subr.bf16.mxu1 %v4732_v0 }
 0x45c   : > { %4135 = vmatpush3.bf16.msra.mxu0 %v4486_v2 }
 0x45d   : > { %4113 = vmatpush3.bf16.msra.mxu1 %v4485_v4  ;;  %4136 = vmatprep.subr.bf16.mxu0 %v4732_v0 }
 0x45e   : > { %4114 = vmatprep.subr.bf16.mxu1 %v4732_v0 }
 0x460   : > { %4137 = vmatpush3.bf16.msra.mxu0 %v4488_v6 }
 0x461   : > { %4115 = vmatpush3.bf16.msra.mxu1 %v4487_v7  ;;  %4138 = vmatprep.subr.bf16.mxu0 %v4732_v0 }
 0x462   : > { %4116 = vmatprep.subr.bf16.mxu1 %v4732_v0 }
 0x464   : > { %4139 = vmatpush3.bf16.msra.mxu0 %v4490_v9 }
 0x465   : > { %4117 = vmatpush3.bf16.msra.mxu1 %v4489_v10  ;;  %4140 = vmatprep.subr.bf16.mxu0 %v4732_v0 }
 0x466   : > { %4118 = vmatprep.subr.bf16.mxu1 %v4732_v0 }
 0x468   : > { %4141 = vmatpush3.bf16.msra.mxu0 %v4492_v15 }
 0x469   : > { %4119 = vmatpush3.bf16.msra.mxu1 %v4491_v17  ;;  %4166 = vmatprep.subr.bf16.mxu0 %v4732_v0 }
 0x46a   : > { %4120 = vmatprep.subr.bf16.mxu1 %v4732_v0 }
 0x46b   : > { %4143 = vmatmul.mubr.bf16.vlgmr.msra.gmra.mrb[20].mxu0 %v1894_v24  ;;  %v3618_v24 = vld [vmem:[%s5628_s10] ss:$0 sm:$0xff] }
 0x46c   : > { %4182 = vmatprep.mubr.msk.bf16.mxu0 %vm4733_vm0, %v4732_v0  ;;  %4167 = vmatpush3.bf16.msra.mxu0 %v4507_v41 }
 0x46d   : > { %4121 = vmatpush3.bf16.msra.mxu1 %v4495_v21  ;;  %4168 = vmatprep.subr.bf16.mxu0 %v4732_v0 }
 0x46e   : > { %4146 = vmatprep.subr.bf16.mxu1 %v4732_v0 }
 0x470   : > { %4123 = vmatmul.mubr.bf16.vlgmr.msra.gmra.mrb[24].mxu1 %v3558_v25  ;;  %4169 = vmatpush3.bf16.msra.mxu0 %v4509_v11 }
 0x471   : > { %4147 = vmatpush3.bf16.msra.mxu1 %v4497_v3  ;;  %4162 = vmatprep.mubr.msk.bf16.mxu1 %vm4733_vm0, %v4732_v0 }
 0x472   : > { %4148 = vmatprep.subr.bf16.mxu1 %v4732_v0  ;;  %4170 = vmatprep.subr.bf16.mxu0 %v4732_v0 }
 0x474   : > { %4171 = vmatpush3.bf16.msra.mxu0 %v4511_v44 }
 0x475   : > { %4149 = vmatpush3.bf16.msra.mxu1 %v4498_v26  ;;  %4172 = vmatprep.subr.bf16.mxu0 %v4732_v0 }
 0x476   : > { %4150 = vmatprep.subr.bf16.mxu1 %v4732_v0 }
 0x478   : > { %4173 = vmatpush3.bf16.msra.mxu0 %v4513_v46 }
 0x479   : > { %4151 = vmatpush3.bf16.msra.mxu1 %v4499_v27  ;;  %4174 = vmatprep.subr.bf16.mxu0 %v4732_v0 }
 0x47a   : > { %4152 = vmatprep.subr.bf16.mxu1 %v4732_v0 }
 0x47c   : > { %4175 = vmatpush3.bf16.msra.mxu0 %v4515_v48 }
 0x47d   : > { %4153 = vmatpush3.bf16.msra.mxu1 %v4500_v28  ;;  %4176 = vmatprep.subr.bf16.mxu0 %v4732_v0 }
 0x47e   : > { %4154 = vmatprep.subr.bf16.mxu1 %v4732_v0 }
 0x480   : > { %4177 = vmatpush3.bf16.msra.mxu0 %v4517_v50 }
 0x481   : > { %4155 = vmatpush3.bf16.msra.mxu1 %v4501_v29  ;;  %4178 = vmatprep.subr.bf16.mxu0 %v4732_v0 }
 0x482   : > { %4156 = vmatprep.subr.bf16.mxu1 %v4732_v0 }
 0x484   : > { %4179 = vmatpush3.bf16.msra.mxu0 %v4519_v52 }
 0x485   : > { %4157 = vmatpush3.bf16.msra.mxu1 %v4502_v32  ;;  %4180 = vmatprep.subr.bf16.mxu0 %v4732_v0 }
 0x486   : > { %4158 = vmatprep.subr.bf16.mxu1 %v4732_v0 }
 0x488   : > { %4181 = vmatpush3.bf16.msra.mxu0 %v4521_v55 }
 0x489   : > { %4159 = vmatpush3.bf16.msra.mxu1 %v4503_v34  ;;  %4206 = vmatprep.subr.bf16.mxu0 %v4732_v0 }
 0x48a   : > { %4160 = vmatprep.subr.bf16.mxu1 %v4732_v0 }
 0x48d   : > { %4161 = vmatpush3.bf16.msra.mxu1 %v4504_v38 }
 0x48e   : > { %4186 = vmatprep.subr.bf16.mxu1 %v4732_v0 }
 0x490   : > { %4163 = vmatmul.mubr.bf16.vlgmr.msra.gmra.mrb[28].mxu1 %v2011_v31 }
 0x491   : > { %4202 = vmatprep.mubr.msk.bf16.mxu1 %vm4733_vm0, %v4732_v0  ;;  %4187 = vmatpush3.bf16.msra.mxu1 %v4506_v40 }
 0x492   : > { %4188 = vmatprep.subr.bf16.mxu1 %v4732_v0 }
 0x495   : > { %4189 = vmatpush3.bf16.msra.mxu1 %v4508_v42 }
 0x496   : > { %4190 = vmatprep.subr.bf16.mxu1 %v4732_v0 }
 0x499   : > { %4191 = vmatpush3.bf16.msra.mxu1 %v4510_v43 }
 0x49a   : > { %4192 = vmatprep.subr.bf16.mxu1 %v4732_v0 }
 0x49d   : > { %4193 = vmatpush3.bf16.msra.mxu1 %v4512_v45  ;;  %v4524_v45 = vld [vmem:[#allocation6 + $0xc0] sm:$0xff]  }
 0x49e   : > { %4194 = vmatprep.subr.bf16.mxu1 %v4732_v0 }
 0x4a1   : > { %4195 = vmatpush3.bf16.msra.mxu1 %v4514_v47 }
 0x4a2   : > { %4196 = vmatprep.subr.bf16.mxu1 %v4732_v0 }
 0x4a5   : > { %4197 = vmatpush3.bf16.msra.mxu1 %v4516_v49 }
 0x4a6   : > { %4198 = vmatprep.subr.bf16.mxu1 %v4732_v0 }
 0x4a9   : > { %4199 = vmatpush3.bf16.msra.mxu1 %v4518_v51 }
 0x4aa   : > { %4200 = vmatprep.subr.bf16.mxu1 %v4732_v0 }
 0x4ad   : > { %4201 = vmatpush3.bf16.msra.mxu1 %v4520_v53 }
 0x4ae   : > { %4226 = vmatprep.subr.bf16.mxu1 %v4732_v0 }
 0x51e   : > { %v1738_v61 = vpop.f32.mrb[16].mxu0 }
 0x51f   : > { %v4104_v62 = vpop.f32.mrb[17].mxu0 }
 0x520   : > { %v1741_v63 = vpop.f32.mrb[18].mxu0  ;;  %v4528_v62 = vld [vmem:[#allocation6 + $0x88] sm:$0xff]  }
 0x521   : > { %v4105_v1 = vpop.f32.mrb[19].mxu0 }
 0x522   : > { %v4530_v1 = vld [vmem:[#allocation6 + $0x90] sm:$0xff]  }
 0x523   : > { %v1641_v2 = vpop.f32.mrb[20].mxu1 }
 0x524   : > { %v1739_v4 = vadd.f32 %v1738_v61, %v1641_v2  ;;  %v4084_v5 = vpop.f32.mrb[21].mxu1  ;;  %v4529_v61 = vld [vmem:[#allocation6 + $0xd0] sm:$0xff]  }
 0x525   : > { %v1644_v12 = vpop.f32.mrb[22].mxu1  ;;  %v4533_v5 = vld [vmem:[#allocation6 + $0xe0] sm:$0xff]  }
 0x526   : > { %v1742_v6 = vadd.f32 %v1741_v63, %v1644_v12  ;;  %v4085_v7 = vpop.f32.mrb[23].mxu1  ;;  %v4531_v63 = vld [vmem:[#allocation6 + $0xd8] sm:$0xff]  }
 0x527   : > { %v4532_v12 = vld [vmem:[#allocation6 + $0x98] sm:$0xff]   ;;  %v4535_v7 = vld [vmem:[#allocation6 + $0xe8] sm:$0xff]  }
 0x53e   : > { %v1978_v8 = vpop.f32.mrb[20].mxu0 }
 0x53f   : > { %v4144_v9 = vpop.f32.mrb[21].mxu0 }
 0x540   : > { %v1981_v10 = vpop.f32.mrb[22].mxu0 }
 0x541   : > { %v4145_v13 = vpop.f32.mrb[23].mxu0 }
 0x542   : > { %v4536_v13 = vld [vmem:[#allocation6 + $0xa8] sm:$0xff]  }
 0x543   : > { %v1846_v14 = vpop.f32.mrb[24].mxu1 }
 0x544   : > { %v1853_v15 = vadd.f32 %v1846_v14, %v1739_v4  ;;  %v4124_v16 = vpop.f32.mrb[25].mxu1 }
 0x545   : > { %v1849_v18 = vpop.f32.mrb[26].mxu1  ;;  %v4539_v16 = vld [vmem:[#allocation6 + $0xf8] sm:$0xff]  }
 0x546   : > { %v1854_v17 = vadd.f32 %v1849_v18, %v1742_v6  ;;  %v4125_v19 = vpop.f32.mrb[27].mxu1  ;;  %v1985_v20 = vadd.f32 %v1978_v8, %v1853_v15  ;;  %v4534_v8 = vld [vmem:[#allocation6 + $0xa0] sm:$0xff]   ;;  %v2524_v15 = vshll.u32 %v5353_v59, 16 }
 0x548   : > { %v1986_v21 = vadd.f32 %v1981_v10, %v1854_v17  ;;  %v4537_v10 = vld [vmem:[#allocation6 + $0xf0] sm:$0xff]  }
 0x549   : > { %v4538_v17 = vld [vmem:[#allocation6 + $0xb0] sm:$0xff]  }
 0x563   : > { %v2095_v3 = vpop.f32.mrb[28].mxu1 }
 0x564   : > { %v2102_v25 = vadd.f32 %v2095_v3, %v1985_v20  ;;  %v4164_v26 = vpop.f32.mrb[29].mxu1  ;;  %v2526_v20 = vrot.slane %v2524_v15, 1  ;;  %v4544_v3 = vld [vmem:[#allocation6 + $0x100] sm:$0xff]  }
 0x565   : > { %v2098_v27 = vpop.f32.mrb[30].mxu1  ;;  %v4545_v26 = vld [vmem:[#allocation6 + $0x108] sm:$0xff]  }
 0x566   : > { %v2110_v28 = vadd.f32 %v3618_v24, %v2102_v25  ;;  %v2103_v29 = vadd.f32 %v2098_v27, %v1986_v21  ;;  %v4165_v32 = vpop.f32.mrb[31].mxu1  ;;  %v4542_v21 = vld [vmem:[#allocation6 + $0xb8] sm:$0xff]   ;;  %v4546_v27 = vld [vmem:[#allocation6 + $0x110] sm:$0xff]  }
 0x567   : > { %v4549_v32 = vld [vmem:[#allocation6 + $0x128] sm:$0xff]  }
 0x568   : > { %v2114_v33 = vmul.f32 0.2, %v2110_v28  ;;  %v2111_v34 = vadd.f32 %v3618_v24, %v2103_v29  ;;  %vm2112_vm8 = vcmp.ge.f32.partialorder %v2110_v28, 0.0  ;;  %v4548_v29 = vld [vmem:[#allocation6 + $0x120] sm:$0xff]  }
 0x56a   : > { %vm2113_vm9 = vcmp.ge.f32.partialorder %v2111_v34, 0.0  ;;  %v2115_v35 = vmul.f32 0.2, %v2111_v34  ;;  %v2116_v38 = vsel %vm2112_vm8, %v2110_v28, %v2114_v33  ;;  %v4547_v28 = vld [vmem:[#allocation6 + $0x118] sm:$0xff]  }
 0x56c   : > { %v2117_v30 = vsel %vm2113_vm9, %v2111_v34, %v2115_v35  ;;  %v4550_v34 = vld [vmem:[#allocation6 + $0x130] sm:$0xff]  }
 0x56d   : > { %v3771_v39 = vpack.c.bf16 %v2117_v30, %v2116_v38  ;;  %v4551_v38 = vld [vmem:[#allocation6 + $0x138] sm:$0xff]  }
 0x56f   : > { %3780 = vst [vmem:[#allocation2 + $0x8] sm:$0xff] %v3771_v39   ;;  %v2642_v39 = vrot.slane %v5353_v59, 1  ;;  %v4555_v59 = vld [vmem:[%s5631_s13 + $0x10] sm:$0xff]  }
 0x576   : > { %v5360_v31 = vld [vmem:[#allocation2 + $0x8] sm:$0xf]  ;;  %v5362_v40 = vld [vmem:[#allocation2 + $0xc] sm:$0xf] }
 0x577   : > { %v3621_v41 = vcombine.low %v2130_v56, %v5360_v31  ;;  %v4523_v42 = vld [vmem:[#allocation2 + $0xc] ss:$0 sps:$4 sm:$0x77]   ;;  %v3622_v11 = vcombine.low %v5362_v40, %v5362_v40  ;;  %v4527_v56 = vld [vmem:[#allocation6 + $0xc8] sm:$0xff]   ;;  %v2488_v2 = vld [vmem:[#allocation2 + $0x8] sm:$0xf]  ;;  %v3640_v25 = vcombine.low %v5360_v31, %v5362_v40 }
 0x578   : > { %v2286_v44 = vrot.slane %v4523_v42, 3  ;;  %v5378_v4 = vld [vmem:[#allocation2 + $0xc] sm:$0xf]  ;;  %v2620_v33 = vld [vmem:[#allocation2 + $0x8] sm:$0xe]  ;;  %v4553_v40 = vld [vmem:[%s5631_s13] sm:$0xff]  }
 0x579   : > { %v2285_v43 = vrot.slane %v3621_v41, 3  ;;  %v2176_v46 = vshrl.u32 %v3621_v41, 16  ;;  %v2179_v47 = vshll.u32 %v3621_v41, 16  ;;  %v2184_v48 = vshrl.u32 %v3622_v11, 16  ;;  %v4554_v41 = vld [vmem:[%s5631_s13 + $0x8] sm:$0xff]   ;;  %v4556_v42 = vld [vmem:[%s5631_s13 + $0x18] sm:$0xff]  }
 0x57a   : > { %v2187_v49 = vshll.u32 %v3622_v11, 16  ;;  %v3649_v6 = vcombine.low %v2488_v2, %v5378_v4  ;;  %v3659_v35 = vcombine.low %v2620_v33, %v5378_v4  ;;  %v4557_v11 = vld [vmem:[%s5631_s13 + $0x20] sm:$0xff]  }
 0x57b   : > { %v2287_v50 = vsel %vm1651_vm6, %v2285_v43, %v2286_v44  ;;  %v2178_v51 = vrot.slane %v2176_v46, 3  ;;  %v2181_v52 = vrot.slane %v2179_v47, 4  ;;  %v2186_v53 = vrot.slane %v2184_v48, 3  ;;  %v4558_v43 = vld [vmem:[%s5631_s13 + $0x28] sm:$0xff]   ;;  %v4559_v44 = vld [vmem:[%s5631_s13 + $0x30] sm:$0xff]  }
 0x57c   : > { %4203 = vmatmul.mubr.bf16.vlgmr.msra.gmra.mrb[32].mxu1 %v2287_v50  ;;  %v2189_v54 = vrot.slane %v2187_v49, 4  ;;  %v2519_v9 = vshll.u32 %v3649_v6, 16  ;;  %v2517_v18 = vshrl.u32 %v3649_v6, 16  ;;  %v2641_v30 = vrot.slane %v3659_v35, 1  ;;  %v1483_v46 = vld [vmem:[%s5632_s14] sm:$0x1] }
 0x57d   : > { %4227 = vmatpush3.bf16.msra.mxu1 %v4524_v45  ;;  %v2182_v55 = vor.u32 %v2181_v52, %v2178_v51  ;;  %4242 = vmatprep.mubr.msk.bf16.mxu1 %vm4733_vm0, %v4732_v0  ;;  %v4560_v45 = vld [vmem:[%s5631_s13 + $0x38] sm:$0xff]   ;;  %v2847_v47 = vsel %vm857_vm10, %v1483_v46, 0  ;;  %v4572_v46 = vld [vmem:[%s5633_s15 + $0x20] sm:$0xff]  }
 0x57e   : > { %4228 = vmatprep.subr.bf16.mxu1 %v4732_v0  ;;  %v2190_v57 = vor.u32 %v2189_v54, %v2186_v53  ;;  %v2521_v14 = vrot.slane %v2519_v9, 1  ;;  %v2643_v31 = vsel %vm2008_vm7, %v2641_v30, %v2642_v39  ;;  %v4561_v30 = vld [vmem:[%s5633_s15 + $0x40] sm:$0xff]   ;;  %v4562_v39 = vld [vmem:[%s5633_s15 + $0x48] sm:$0xff]  }
 0x580   : > { %v2191_v60 = vsel %vm688_vm15, %v2182_v55, %v2190_v57  ;;  %v2522_v19 = vor.u32 %v2521_v14, %v2517_v18 }
 0x581   : > { %4183 = vmatmul.mubr.bf16.vlgmr.msra.gmra.mrb[24].mxu0 %v2191_v60  ;;  %4229 = vmatpush3.bf16.msra.mxu1 %v4527_v56 }
 0x582   : > { %4207 = vmatpush3.bf16.msra.mxu0 %v4526_v58  ;;  %4230 = vmatprep.subr.bf16.mxu1 %v4732_v0  ;;  %v2527_v24 = vsel %vm766_vm14, %v2522_v19, %v2526_v20 }
 0x583   : > { %4208 = vmatprep.subr.bf16.mxu0 %v4732_v0  ;;  %4222 = vmatprep.mubr.msk.bf16.mxu0 %vm4733_vm0, %v4732_v0 }
 0x585   : > { %4231 = vmatpush3.bf16.msra.mxu1 %v4529_v61 }
 0x586   : > { %4209 = vmatpush3.bf16.msra.mxu0 %v4528_v62  ;;  %4232 = vmatprep.subr.bf16.mxu1 %v4732_v0 }
 0x587   : > { %4210 = vmatprep.subr.bf16.mxu0 %v4732_v0 }
 0x589   : > { %4233 = vmatpush3.bf16.msra.mxu1 %v4531_v63 }
 0x58a   : > { %4211 = vmatpush3.bf16.msra.mxu0 %v4530_v1  ;;  %4234 = vmatprep.subr.bf16.mxu1 %v4732_v0 }
 0x58b   : > { %4212 = vmatprep.subr.bf16.mxu0 %v4732_v0 }
 0x58d   : > { %4235 = vmatpush3.bf16.msra.mxu1 %v4533_v5 }
 0x58e   : > { %4213 = vmatpush3.bf16.msra.mxu0 %v4532_v12  ;;  %4236 = vmatprep.subr.bf16.mxu1 %v4732_v0 }
 0x58f   : > { %4214 = vmatprep.subr.bf16.mxu0 %v4732_v0 }
 0x591   : > { %4237 = vmatpush3.bf16.msra.mxu1 %v4535_v7 }
 0x592   : > { %4215 = vmatpush3.bf16.msra.mxu0 %v4534_v8  ;;  %4238 = vmatprep.subr.bf16.mxu1 %v4732_v0 }
 0x593   : > { %4216 = vmatprep.subr.bf16.mxu0 %v4732_v0 }
 0x595   : > { %4239 = vmatpush3.bf16.msra.mxu1 %v4537_v10 }
 0x596   : > { %4217 = vmatpush3.bf16.msra.mxu0 %v4536_v13  ;;  %4240 = vmatprep.subr.bf16.mxu1 %v4732_v0  ;;  %v3668_v13 = vld [vmem:[%s5630_s12] ss:$0 sm:$0xff] }
 0x597   : > { %4218 = vmatprep.subr.bf16.mxu0 %v4732_v0 }
 0x599   : > { %4241 = vmatpush3.bf16.msra.mxu1 %v4539_v16 }
 0x59a   : > { %4219 = vmatpush3.bf16.msra.mxu0 %v4538_v17  ;;  %4266 = vmatprep.subr.bf16.mxu1 %v4732_v0 }
 0x59b   : > { %4220 = vmatprep.subr.bf16.mxu0 %v4732_v0 }
 0x59c   : > { %4243 = vmatmul.mubr.bf16.vlgmr.msra.gmra.mrb[36].mxu1 %v2527_v24 }
 0x59d   : > { %4282 = vmatprep.mubr.msk.bf16.mxu1 %vm4733_vm0, %v4732_v0  ;;  %4267 = vmatpush3.bf16.msra.mxu1 %v4553_v40  ;;  %v4564_v40 = vld [vmem:[%s5633_s15] sm:$0xff]  }
 0x59e   : > { %4221 = vmatpush3.bf16.msra.mxu0 %v4542_v21  ;;  %4268 = vmatprep.subr.bf16.mxu1 %v4732_v0 }
 0x59f   : > { %4246 = vmatprep.subr.bf16.mxu0 %v4732_v0 }
 0x5a1   : > { %4223 = vmatmul.mubr.bf16.vlgmr.msra.gmra.mrb[28].mxu0 %v3640_v25  ;;  %4269 = vmatpush3.bf16.msra.mxu1 %v4554_v41  ;;  %v4565_v41 = vld [vmem:[%s5633_s15 + $0x58] sm:$0xff]  }
 0x5a2   : > { %4247 = vmatpush3.bf16.msra.mxu0 %v4544_v3  ;;  %4262 = vmatprep.mubr.msk.bf16.mxu0 %vm4733_vm0, %v4732_v0 }
 0x5a3   : > { %4248 = vmatprep.subr.bf16.mxu0 %v4732_v0  ;;  %4270 = vmatprep.subr.bf16.mxu1 %v4732_v0 }
 0x5a5   : > { %4271 = vmatpush3.bf16.msra.mxu1 %v4555_v59  ;;  %v4566_v59 = vld [vmem:[%s5633_s15 + $0x8] sm:$0xff]  }
 0x5a6   : > { %4249 = vmatpush3.bf16.msra.mxu0 %v4545_v26  ;;  %4272 = vmatprep.subr.bf16.mxu1 %v4732_v0 }
 0x5a7   : > { %4250 = vmatprep.subr.bf16.mxu0 %v4732_v0 }
 0x5a9   : > { %4273 = vmatpush3.bf16.msra.mxu1 %v4556_v42  ;;  %v4567_v42 = vld [vmem:[%s5633_s15 + $0x60] sm:$0xff]  }
 0x5aa   : > { %4251 = vmatpush3.bf16.msra.mxu0 %v4546_v27  ;;  %4274 = vmatprep.subr.bf16.mxu1 %v4732_v0 }
 0x5ab   : > { %4252 = vmatprep.subr.bf16.mxu0 %v4732_v0 }
 0x5ad   : > { %4275 = vmatpush3.bf16.msra.mxu1 %v4557_v11  ;;  %v4568_v11 = vld [vmem:[%s5633_s15 + $0x10] sm:$0xff]  }
 0x5ae   : > { %4253 = vmatpush3.bf16.msra.mxu0 %v4547_v28  ;;  %4276 = vmatprep.subr.bf16.mxu1 %v4732_v0 }
 0x5af   : > { %4254 = vmatprep.subr.bf16.mxu0 %v4732_v0 }
 0x5b1   : > { %4277 = vmatpush3.bf16.msra.mxu1 %v4558_v43  ;;  %v4569_v43 = vld [vmem:[%s5633_s15 + $0x68] sm:$0xff]  }
 0x5b2   : > { %4255 = vmatpush3.bf16.msra.mxu0 %v4548_v29  ;;  %4278 = vmatprep.subr.bf16.mxu1 %v4732_v0 }
 0x5b3   : > { %4256 = vmatprep.subr.bf16.mxu0 %v4732_v0 }
 0x5b5   : > { %4279 = vmatpush3.bf16.msra.mxu1 %v4559_v44  ;;  %v4570_v44 = vld [vmem:[%s5633_s15 + $0x18] sm:$0xff]  }
 0x5b6   : > { %4257 = vmatpush3.bf16.msra.mxu0 %v4549_v32  ;;  %4280 = vmatprep.subr.bf16.mxu1 %v4732_v0 }
 0x5b7   : > { %4258 = vmatprep.subr.bf16.mxu0 %v4732_v0 }
 0x5b9   : > { %4281 = vmatpush3.bf16.msra.mxu1 %v4560_v45  ;;  %v4571_v45 = vld [vmem:[%s5633_s15 + $0x70] sm:$0xff]  }
 0x5ba   : > { %4259 = vmatpush3.bf16.msra.mxu0 %v4550_v34  ;;  %4312 = vmatprep.subr.bf16.mxu1 %v4732_v0 }
 0x5bb   : > { %4260 = vmatprep.subr.bf16.mxu0 %v4732_v0 }
 0x5be   : > { %4261 = vmatpush3.bf16.msra.mxu0 %v4551_v38 }
 0x5bf   : > { %4286 = vmatprep.subr.bf16.mxu0 %v4732_v0 }
 0x5c1   : > { %4263 = vmatmul.mubr.bf16.vlgmr.msra.gmra.mrb[32].mxu0 %v2643_v31  ;;  %v4563_v31 = vld [vmem:[%s5633_s15 + $0x50] sm:$0xff]  }
 0x5c2   : > { %4288 = vmatprep.mubr.msk.bf16.mxu0 %vm4733_vm0, %v4732_v0  ;;  %4287 = vmatpush3.bf16.msra.mxu0 %v2847_v47  ;;  %v4573_v47 = vld [vmem:[%s5633_s15 + $0x78] sm:$0xff]  }
 0x5c3   : > { %4292 = vmatprep.subr.bf16.mxu0 %v4732_v0 }
 0x64f   : > { %v2371_v48 = vpop.f32.mrb[32].mxu1 }
 0x650   : > { %v4204_v49 = vpop.f32.mrb[33].mxu1 }
 0x651   : > { %v2374_v50 = vpop.f32.mrb[34].mxu1  ;;  %v4578_v49 = vld [vmem:[%s5633_s15 + $0x30] sm:$0xff]  }
 0x652   : > { %v4205_v51 = vpop.f32.mrb[35].mxu1 }
 0x654   : > { %v2275_v52 = vpop.f32.mrb[24].mxu0 }
 0x655   : > { %v2372_v53 = vadd.f32 %v2371_v48, %v2275_v52  ;;  %v4184_v54 = vpop.f32.mrb[25].mxu0  ;;  %v4574_v48 = vld [vmem:[%s5633_s15 + $0x28] sm:$0xff]  }
 0x656   : > { %v2278_v55 = vpop.f32.mrb[26].mxu0 }
 0x657   : > { %v2375_v56 = vadd.f32 %v2374_v50, %v2278_v55  ;;  %v4185_v57 = vpop.f32.mrb[27].mxu0  ;;  %v4580_v50 = vld [vmem:[%s5633_s15 + $0x38] sm:$0xff]  }
 0x66f   : > { %v2611_v58 = vpop.f32.mrb[36].mxu1 }
 0x670   : > { %v4244_v60 = vpop.f32.mrb[37].mxu1 }
 0x671   : > { %v2614_v61 = vpop.f32.mrb[38].mxu1 }
 0x672   : > { %v4245_v62 = vpop.f32.mrb[39].mxu1 }
 0x674   : > { %v2479_v63 = vpop.f32.mrb[28].mxu0 }
 0x675   : > { %v2486_v1 = vadd.f32 %v2479_v63, %v2372_v53  ;;  %v4224_v2 = vpop.f32.mrb[29].mxu0 }
 0x676   : > { %v2482_v4 = vpop.f32.mrb[30].mxu0 }
 0x677   : > { %v2487_v5 = vadd.f32 %v2482_v4, %v2375_v56  ;;  %v4225_v12 = vpop.f32.mrb[31].mxu0  ;;  %v2618_v6 = vadd.f32 %v2611_v58, %v2486_v1 }
 0x679   : > { %v2619_v7 = vadd.f32 %v2614_v61, %v2487_v5 }
 0x694   : > { %v2727_v8 = vpop.f32.mrb[32].mxu0 }
 0x695   : > { %v2734_v9 = vadd.f32 %v2727_v8, %v2618_v6  ;;  %v4264_v10 = vpop.f32.mrb[33].mxu0 }
 0x696   : > { %v2730_v14 = vpop.f32.mrb[34].mxu0 }
 0x697   : > { %v2735_v15 = vadd.f32 %v2730_v14, %v2619_v7  ;;  %v4265_v16 = vpop.f32.mrb[35].mxu0  ;;  %v5453_v18 = vadd.f32 %v3668_v13, %v2734_v9  ;;  %v2926_v7 = vld [vmem:[#allocation2 + $0x4] sm:$0x8] }
 0x698   : > { %v4581_v16 = vld [vmem:[%s5633_s15 + $0x88] sm:$0xff]  }
 0x699   : > { %v5455_v17 = vadd.f32 %v3668_v13, %v2735_v15 }
 0x69b   : > { %v2744_v19 = vadd.f32 %v5455_v17, %v5453_v18 }
 0x69d   : > { %v2745_v20 = vrot.slane %v2744_v19, 4 }
 0x69f   : > { %v2746_v21 = vadd.f32 %v2745_v20, %v2744_v19 }
 0x6a1   : > { %v2747_v24 = vrot.slane %v2746_v21, 2 }
 0x6a3   : > { %v2748_v3 = vadd.f32 %v2747_v24, %v2746_v21 }
 0x6a5   : > { %v2749_v25 = vrot.slane %v2748_v3, 1 }
 0x6a7   : > { %v2750_v26 = vadd.f32 %v2749_v25, %v2748_v3  ;;  %v4582_v3 = vld [vmem:[%s5633_s15 + $0x90] sm:$0xff]  }
 0x6a9   : > { %v2751_v27 = vmul.f32 0.0625, %v2750_v26  ;;  %v4583_v26 = vld [vmem:[%s5633_s15 + $0x98] sm:$0xff]  }
 0x6ab   : > { %v2752_v28 = vpack.c.bf16 %v2751_v27, %v2751_v27  ;;  %v4584_v27 = vld [vmem:[%s5633_s15 + $0xa0] sm:$0xff]  }
 0x6ad   : > { %4283 = vmatmul.mubr.bf16.vlgmr.msra.gmra.mrb[40].mxu1 %v2752_v28 }
 0x6ae   : > { %4328 = vmatprep.mubr.msk.bf16.mxu1 %vm4733_vm0, %v4732_v0  ;;  %4313 = vmatpush3.bf16.msra.mxu1 %v4564_v40 }
 0x6af   : > { %4314 = vmatprep.subr.bf16.mxu1 %v4732_v0 }
 0x6b2   : > { %4315 = vmatpush3.bf16.msra.mxu1 %v4566_v59 }
 0x6b3   : > { %4316 = vmatprep.subr.bf16.mxu1 %v4732_v0 }
 0x6b6   : > { %4317 = vmatpush3.bf16.msra.mxu1 %v4568_v11 }
 0x6b7   : > { %4318 = vmatprep.subr.bf16.mxu1 %v4732_v0 }
 0x6ba   : > { %4319 = vmatpush3.bf16.msra.mxu1 %v4570_v44 }
 0x6bb   : > { %4320 = vmatprep.subr.bf16.mxu1 %v4732_v0 }
 0x6be   : > { %4321 = vmatpush3.bf16.msra.mxu1 %v4572_v46 }
 0x6bf   : > { %4322 = vmatprep.subr.bf16.mxu1 %v4732_v0 }
 0x6c2   : > { %4323 = vmatpush3.bf16.msra.mxu1 %v4574_v48 }
 0x6c3   : > { %4324 = vmatprep.subr.bf16.mxu1 %v4732_v0 }
 0x6c6   : > { %4325 = vmatpush3.bf16.msra.mxu1 %v4578_v49 }
 0x6c7   : > { %4326 = vmatprep.subr.bf16.mxu1 %v4732_v0 }
 0x6ca   : > { %4327 = vmatpush3.bf16.msra.mxu1 %v4580_v50 }
 0x780   : > { %v2835_v29 = vpop.f32.mrb[40].mxu1 }
 0x781   : > { %v2841_v32 = vmax.f32 %v2835_v29, 0.0  ;;  %v4284_v33 = vpop.f32.mrb[41].mxu1  ;;  %v4585_v29 = vld [vmem:[%s5633_s15 + $0xa8] sm:$0xff]  }
 0x782   : > { %v2838_v34 = vpop.f32.mrb[42].mxu1 }
 0x783   : > { %v2842_v35 = vpack.c.bf16 %v2841_v32, %v2841_v32  ;;  %v4285_v38 = vpop.f32.mrb[43].mxu1  ;;  %v4589_v32 = vld [vmem:[#allocation2 + $0x10] ss:$0 sps:$4 sm:$0x11]  }
 0x784   : > { %v4586_v34 = vld [vmem:[%s5633_s15 + $0xb0] sm:$0xff]   ;;  %v3204_v38 = vshll.u32 %v4589_v32, 16 }
 0x785   : > { %4289 = vmatmul.mubr.msk.bf16.vlgmr.msra.gmra.mrb[36].mxu0 %vm1344_vm3, %v2842_v35 }
 0x786   : > { %4308 = vmatprep.mubr.msk.bf16.mxu0 %vm4733_vm0, %v4732_v0  ;;  %4293 = vmatpush3.bf16.msra.mxu0 %v4561_v30  ;;  %v4587_v30 = vld [vmem:[%s5633_s15 + $0xb8] sm:$0xff]   ;;  %v3206_v40 = vrot.slane %v3204_v38, 1 }
 0x787   : > { %4294 = vmatprep.subr.bf16.mxu0 %v4732_v0 }
 0x78a   : > { %4295 = vmatpush3.bf16.msra.mxu0 %v4562_v39 }
 0x78b   : > { %4296 = vmatprep.subr.bf16.mxu0 %v4732_v0 }
 0x78e   : > { %4297 = vmatpush3.bf16.msra.mxu0 %v4563_v31 }
 0x78f   : > { %4298 = vmatprep.subr.bf16.mxu0 %v4732_v0 }
 0x792   : > { %4299 = vmatpush3.bf16.msra.mxu0 %v4565_v41 }
 0x793   : > { %4300 = vmatprep.subr.bf16.mxu0 %v4732_v0 }
 0x796   : > { %4301 = vmatpush3.bf16.msra.mxu0 %v4567_v42 }
 0x797   : > { %4302 = vmatprep.subr.bf16.mxu0 %v4732_v0 }
 0x79a   : > { %4303 = vmatpush3.bf16.msra.mxu0 %v4569_v43 }
 0x79b   : > { %4304 = vmatprep.subr.bf16.mxu0 %v4732_v0 }
 0x79e   : > { %4305 = vmatpush3.bf16.msra.mxu0 %v4571_v45 }
 0x79f   : > { %4306 = vmatprep.subr.bf16.mxu0 %v4732_v0 }
 0x7a2   : > { %4307 = vmatpush3.bf16.msra.mxu0 %v4573_v47 }
 0x7a3   : > { %4332 = vmatprep.subr.bf16.mxu0 %v4732_v0 }
 0x858   : > { %v2883_v51 = vpop.f32.mrb[36].mxu0 }
 0x859   : > { %v3678_v52 = vmul.f32 -1.442695, %v2883_v51  ;;  %v4290_v53 = vpop.f32.mrb[37].mxu0 }
 0x85a   : > { %v2886_v54 = vpop.f32.mrb[38].mxu0 }
 0x85b   : > { %4594 = vpow2.f32 %v3678_v52  ;;  %v4291_v55 = vpop.f32.mrb[39].mxu0 }
 0x865   : > { %v4595_v56 = vpop.eup %4594 }
 0x866   : > { %v2892_v57 = vadd.f32 1.0, %v4595_v56 }
 0x868   : > { %4596 = vrcp.f32 %v2892_v57 }
 0x872   : > { %v4597_v58 = vpop.eup %4596 }
 0x873   : > { %v2898_v60 = vrot.slane %v4597_v58, %v1400_v23 }
 0x875   : > { %v2899_v61 = vmul.f32 %v2898_v60, %v5453_v18  ;;  %v2900_v62 = vmul.f32 %v2898_v60, %v5455_v17 }
 0x877   : > { %v2901_v63 = vadd.f32 %v2899_v61, %v5204_v36  ;;  %v2902_v1 = vadd.f32 %v2900_v62, %v5206_v37 }
 0x879   : > { %vm2903_vm10 = vcmp.ge.f32.partialorder %v2901_v63, 0.0  ;;  %vm2904_vm11 = vcmp.ge.f32.partialorder %v2902_v1, 0.0  ;;  %v2905_v2 = vmul.f32 0.2, %v2901_v63  ;;  %v2906_v4 = vmul.f32 0.2, %v2902_v1 }
 0x87b   : > { %v2907_v5 = vsel %vm2903_vm10, %v2901_v63, %v2905_v2  ;;  %v2908_v12 = vsel %vm2904_vm11, %v2902_v1, %v2906_v4 }
 0x87c   : > { %v3776_v6 = vpack.c.bf16 %v2908_v12, %v2907_v5 }
 0x87e   : > { %3781 = vst [vmem:[#allocation2 + $0x8] sm:$0xff] %v3776_v6  }
 0x885   : > { %v2927_v23 = vld [vmem:[#allocation2 + $0x8] sm:$0xf]  ;;  %v2928_v8 = vld [vmem:[#allocation2 + $0xc] sm:$0xf] }
 0x886   : > { %v3697_v9 = vcombine.low %v2927_v23, %v2928_v8  ;;  %v3706_v10 = vcombine.low %v2926_v7, %v2927_v23  ;;  %v3707_v36 = vcombine.low %v2928_v8, %v2928_v8  ;;  %v4588_v28 = vld [vmem:[#allocation2 + $0x8] sm:$0xff]  }
 0x887   : > { %v3199_v33 = vshll.u32 %v4588_v28, 16  ;;  %v3197_v39 = vshrl.u32 %v4588_v28, 16 }
 0x888   : > { %4309 = vmatmul.mubr.bf16.vlgmr.msra.gmra.mrb[40].mxu0 %v3697_v9  ;;  %v3062_v37 = vshrl.u32 %v3706_v10, 16  ;;  %v3065_v13 = vshll.u32 %v3706_v10, 16  ;;  %v3070_v14 = vshrl.u32 %v3707_v36, 16  ;;  %v3073_v15 = vshll.u32 %v3707_v36, 16 }
 0x889   : > { %4333 = vmatpush3.bf16.msra.mxu0 %v4579_v22  ;;  %4348 = vmatprep.mubr.msk.bf16.mxu0 %vm4733_vm0, %v4732_v0  ;;  %v3201_v35 = vrot.slane %v3199_v33, 1  ;;  %vm3340_vm0 = vcmask 125952  }
 0x88a   : > { %4334 = vmatprep.subr.bf16.mxu0 %v4732_v0  ;;  %v3064_v18 = vrot.slane %v3062_v37, 3  ;;  %v3067_v17 = vrot.slane %v3065_v13, 4  ;;  %v3072_v19 = vrot.slane %v3070_v14, 3  ;;  %v3075_v20 = vrot.slane %v3073_v15, 4 }
 0x88b   : > { %v3202_v31 = vor.u32 %v3201_v35, %v3197_v39 }
 0x88c   : > { %v3068_v21 = vor.u32 %v3067_v17, %v3064_v18  ;;  %v3076_v24 = vor.u32 %v3075_v20, %v3072_v19 }
 0x88d   : > { %4335 = vmatpush3.bf16.msra.mxu0 %v4581_v16  ;;  %v3207_v41 = vsel %vm766_vm14, %v3202_v31, %v3206_v40 }
 0x88e   : > { %v3077_v25 = vsel %vm688_vm15, %v3068_v21, %v3076_v24  ;;  %4336 = vmatprep.subr.bf16.mxu0 %v4732_v0 }
 0x88f   : > { %4329 = vmatmul.mubr.bf16.vlgmr.msra.gmra.mrb[44].mxu1 %v3077_v25 }
 0x891   : > { %4337 = vmatpush3.bf16.msra.mxu0 %v4582_v3 }
 0x892   : > { %4338 = vmatprep.subr.bf16.mxu0 %v4732_v0 }
 0x895   : > { %4339 = vmatpush3.bf16.msra.mxu0 %v4583_v26 }
 0x896   : > { %4340 = vmatprep.subr.bf16.mxu0 %v4732_v0 }
 0x899   : > { %4341 = vmatpush3.bf16.msra.mxu0 %v4584_v27 }
 0x89a   : > { %4342 = vmatprep.subr.bf16.mxu0 %v4732_v0 }
 0x89d   : > { %4343 = vmatpush3.bf16.msra.mxu0 %v4585_v29 }
 0x89e   : > { %4344 = vmatprep.subr.bf16.mxu0 %v4732_v0 }
 0x8a1   : > { %4345 = vmatpush3.bf16.msra.mxu0 %v4586_v34 }
 0x8a2   : > { %4346 = vmatprep.subr.bf16.mxu0 %v4732_v0  ;;  %v3742_v0 = vld [vmem:[%s5679_s19] ss:$0 sm:$0xff]  ;;  %s4660_s19 = sshll.u32 %s4735_s28, 4  ;;  %s4661_s19 = int_to_ptr.vmem [resolvable:$false] %s4660_s19 }
 0x8a3   : > { %s4662_s16 = scalar_lea.vmem %s4661_s19, 128  ;;  %p4663_p4 = scmp.lt.s32.totalorder %s5578_s21, %s4661_s19 }
 0x8a4   : > { %p4664_p7 = scmp.lt.s32.totalorder %s4662_s16, %s4656_s22 }
 0x8a5   : > { %4347 = vmatpush3.bf16.msra.mxu0 %v4587_v30 }
 0x8a6   : > { %p4665_p8 = por %p4664_p7, %p4663_p4 }
 0x8a8   : > { %4349 = vmatmul.mubr.bf16.vlgmr.msra.gmra.mrb[44].mxu0 %v3207_v41  ;;  %p4666_p11 = pnand %p4665_p8, %p4659_p3 }
 0x95b   : > { %v3050_v59 = vpop.f32.mrb[40].mxu0 }
 0x95c   : > { %v4310_v42 = vpop.f32.mrb[41].mxu0 }
 0x95d   : > { %v3053_v11 = vpop.f32.mrb[42].mxu0 }
 0x95e   : > { %v4311_v43 = vpop.f32.mrb[43].mxu0 }
 0x962   : > { %v3161_v44 = vpop.f32.mrb[44].mxu1 }
 0x963   : > { %v3162_v45 = vadd.f32 %v3161_v44, %v3050_v59  ;;  %v4330_v46 = vpop.f32.mrb[45].mxu1 }
 0x964   : > { %v3164_v47 = vpop.f32.mrb[46].mxu1 }
 0x965   : > { %v3165_v48 = vadd.f32 %v3164_v47, %v3053_v11  ;;  %v4331_v49 = vpop.f32.mrb[47].mxu1 }
 0x97b   : > { %v3291_v50 = vpop.f32.mrb[44].mxu0 }
 0x97c   : > { %v3298_v51 = vadd.f32 %v3291_v50, %v3162_v45  ;;  %v4350_v52 = vpop.f32.mrb[45].mxu0 }
 0x97d   : > { %v3294_v53 = vpop.f32.mrb[46].mxu0 }
 0x97e   : > { %v3299_v54 = vadd.f32 %v3294_v53, %v3165_v48  ;;  %v4351_v55 = vpop.f32.mrb[47].mxu0  ;;  %v3306_v56 = vadd.f32 %v3742_v0, %v3298_v51 }
 0x980   : > { %3308 = vxpose.xlu0.b32.start [1/2] (short) (narrow) %v3306_v56, 8  ;;  %v3307_v57 = vadd.f32 %v3742_v0, %v3299_v54 }
 0x984   : > { %3309 = vxpose.xlu0.b32.end [2/2] (short) (narrow) %v3307_v57, 8 }
 0xa00   : > { %v3324_v58 = vpop.trf.xlu0 }
 0xa01   : > { %3341 = vst.msk [vmem:[%s571_s1] sm:$0xf] %vm3340_vm0, %v3324_v58 }
 0xa02   : > { %4669 = shalt.err (!%p4666_p11)
}
 0xa03   : > { %s4670_s23 = scalar_lea.hbm %s5576_s24, 64  ;;  %s4674_s29 = scalar_lea.hbm %s5682_s20, 128 }
 0xa04   : > { %p4671_p13 = scmp.ne.s32.totalorder %s5576_s24, %s4670_s23  ;;  %p4675_p6 = scmp.lt.u32.totalorder %s5576_s24, %s5682_s20 }
 0xa05   : > { %p4676_p9 = scmp.lt.u32.totalorder %s4674_s29, %s4670_s23  ;;  %p4678_p12 = scmp.lt.u32.totalorder %s4670_s23, %s5576_s24 }
 0xa06   : > { %p4672_p5 = pnand %p4671_p13, %p5683_p1 }
 0xa07   : > { %p4677_p10 = por %p4676_p9, %p4675_p6 }
 0xa08   : > { %p4673_p0 = pneg %p4672_p5 }
 0xa09   : > { %p4679_p2 = por %p4678_p12, %p4677_p10 }
 0xa0b   : > { %p4680_p3 = pnand %p4679_p2, %p4673_p0 }
 0xa0d   : > { %4683 = shalt.err (!%p4680_p3)
}
 0xa0e   : > { %4360 = dma.vmem_to_hbm [thread:$0]  (%p5683_p1), %s5578_s21, 64, %s5576_s24, %s3343_s27  }
 0xa0f PF: > { %s5684_s22 = sld [smem:[#allocation14_spill]]  ;;  %s5685_s28 = sld [smem:[#allocation12_spill]] }
 0xa10   : > { %s5686_s19 = sld [smem:[#allocation18_spill]] }
 0xa15   : > { %p4377_p4 = scmp.ge.s32.totalorder %s5684_s22, 2  ;;  %s3368_s16 = sand.u32 1, %s5685_s28  }
 0xa16   : > { %p5687_p7 = scmp.ne.s32.totalorder %s5686_s19, 0  ;;  %s3369_s17 = scalar_lea.sflag [#allocation5], %s3368_s16 }
 0xa18   : > { %p4370_p8 = pnand %p4377_p4, %p5687_p7 }
 0xa1a   : > { %4709 = dma.done.wait (!%p4370_p8), %s3369_s17, 64  }
 0xa1b   : > { %4711 = vsyncadd (!%p4370_p8), %s3369_s17, 4294967232  ;;  %s5688_s27 = sld [smem:[#allocation15_spill]]  ;;  %s5689_s23 = sld [smem:[#allocation13_spill]] }
 0xa1c   : > { %s5690_s26 = sld [smem:[#allocation16_spill]]  ;;  %s5691_s24 = smov %s4718_s25 }
 0xa21   : > { %p29_p11 = scmp.ge.s32.totalorder %s5688_s27, 4   ;;  %s5692_s25 = smov %s5689_s23 }
 0xa23   :  { %31 = sbr.rel (!%p29_p11) target bundleno = 10 (0xa), region = 146 }
 0xa2a   :  { %3374 = vsyncpa [#allocation4], 1 }
 0xa2b   :  { %3376 = vsyncpa [#allocation4 + $0x1], 1 }
 0xa2c   :  { %3377 = vsyncpa [#allocation7], 1 }
 0xa2d   :  { %3378 = vsyncpa [#allocation5], 1 }
 0xa2e   :  { %3380 = vsyncpa [#allocation5 + $0x1], 1 }

// kernel: tpu_custom_call.1
= control target key start
LH: loop header
LB: loop body
LE: loop exit
PB: predicated region body
PF: predicated region fallthrough
CT: control target
= control target key end

     0   :  { %s5618_s0 = inlined_call_operand.vmem [shape: f32[2,16,4], index: 0, kind: input, shape index: {}]   ;;  %s5619_s1 = inlined_call_operand.vmem [shape: bf16[3,4,128], index: 1, kind: input, shape index: {}]   ;;  %s5620_s2 = inlined_call_operand.vmem [shape: f32[1,128], index: 2, kind: input, shape index: {}]   ;;  %s5621_s3 = inlined_call_operand.hbm [shape: bf16[3,128,128], index: 3, kind: input, shape index: {}]   ;;  %s5622_s4 = inlined_call_operand.vmem [shape: f32[1,128], index: 4, kind: input, shape index: {}]   ;;  %s5623_s5 = inlined_call_operand.vmem [shape: bf16[128,2], index: 5, kind: input, shape index: {}]   ;;  %s5624_s6 = inlined_call_operand.vmem [shape: bf16[2,128], index: 6, kind: input, shape index: {}]   ;;  %s5625_s7 = inlined_call_operand.vmem [shape: bf16[4,128], index: 7, kind: input, shape index: {}]   ;;  %s5626_s8 = inlined_call_operand.vmem [shape: f32[1,128], index: 8, kind: input, shape index: {}]   ;;  %s5627_s9 = inlined_call_operand.vmem [shape: bf16[5,128,128], index: 9, kind: input, shape index: {}]   ;;  %s5628_s10 = inlined_call_operand.vmem [shape: f32[1,128], index: 10, kind: input, shape index: {}]   ;;  %s5629_s11 = inlined_call_operand.hbm [shape: bf16[5,128,128], index: 11, kind: input, shape index: {}]   ;;  %s5630_s12 = inlined_call_operand.vmem [shape: f32[1,128], index: 12, kind: input, shape index: {}]   ;;  %s5631_s13 = inlined_call_operand.vmem [shape: bf16[128,2], index: 13, kind: input, shape index: {}]   ;;  %s5632_s14 = inlined_call_operand.vmem [shape: bf16[2,128], index: 14, kind: input, shape index: {}]   ;;  %s5633_s15 = inlined_call_operand.vmem [shape: bf16[3,128,4], index: 15, kind: input, shape index: {}]   ;;  %s5634_s16 = inlined_call_operand.vmem [shape: f32[1,4], index: 16, kind: input, shape index: {}]   ;;  %s5635_s17 = inlined_call_operand.hbm [shape: f32[2,4,16], index: 17, kind: output, shape index: {}]  }
   0x1   :  { %5649 = sst [smem:[#allocation19_spill]] %s5618_s0 }
   0x2   :  { %5650 = sst [smem:[#allocation20_spill]] %s5619_s1 }
   0x3   :  { %5651 = sst [smem:[#allocation21_spill]] %s5634_s16 }
   0x4   :  { %5652 = sst [smem:[#allocation22_spill]] %s5635_s17 }
   0x5   :  { %22 = vsyncpa [#allocation4], 0 }
   0x6   :  { %23 = vsyncpa [#allocation7], 0 }
   0x7   :  { %24 = vsyncpa [#allocation5], 0 }
   0x8   :  { %26 = vsyncpa [#allocation5 + $0x1], 0  ;;  %s4826_s24 = smov 0   ;;  %s4828_s25 = smov 0  }
   0x9   :  { %s4830_s26 = smov 0   ;;  %s4832_s27 = smov 0  }
   0xa LB: > { %5653 = sst [smem:[#allocation12_spill]] %s4714_s24  ;;  %s4847_s28 = sadd.s32 4294967295, %s4726_s27   ;;  %s4726_s27 = sphi %s4832_s27, %s5688_s27   ;;  %s4722_s26 = sphi %s4830_s26, %s5690_s26   ;;  %s4718_s25 = sphi %s4828_s25, %s5692_s25   ;;  %s4714_s24 = sphi %s4826_s24, %s5691_s24  }
   0xb   : > { %5654 = sst [smem:[#allocation13_spill]] %s4722_s26  ;;  %s3437_s29 = sadd.s32 4294967294, %s4726_s27  }
   0xc   : > { %5655 = sst [smem:[#allocation14_spill]] %s4726_s27  ;;  %s4851_s0 = sadd.s32 1, %s4726_s27  }
   0xd   : > { %5656 = sst [smem:[#allocation15_spill]] %s4851_s0  ;;  %s401_s30 = sadd.s32 1, %s4722_s26 }
   0xe   : > { %s398_s18 = ssub.s32 %s4726_s27, %s4851_s0  ;;  %p411_p0 = scmp.ne.s32.totalorder %s4722_s26, %s4718_s25 }
   0xf   : > { %p399_p1 = scmp.eq.s32.totalorder %s398_s18, 0  ;;  %p412_p2 = scmp.eq.s32.totalorder %s4847_s28, 1 }
  0x10   : > { %p417_p3 = scmp.ne.s32.totalorder %s4718_s25, %s4714_s24  ;;  %p418_p4 = scmp.eq.s32.totalorder %s3437_s29, 1 }
  0x11   : > { %s4862_s19 = scalar_select %p399_p1, %s4722_s26, %s401_s30  }
  0x12   : > { %p4864_p5 = por %p412_p2, %p411_p0  ;;  %p4868_p6 = por %p418_p4, %p417_p3 }
  0x13   : > { %5657 = sst [smem:[#allocation16_spill]] %s4862_s19  ;;  %p3438_p7 = scmp.ge.s32.totalorder %s4726_s27, 1 }
  0x14   : > { %s5658_s1 = scalar_select %p4864_p5, 1, 0 }
  0x15   : > { %s5660_s20 = scalar_select %p4868_p6, 1, 0 }
  0x16   : > { %5659 = sst [smem:[#allocation17_spill]] %s5658_s1  ;;  %p425_p8 = scmp.lt.s32.totalorder %s4726_s27, 3 }
  0x17   : > { %5661 = sst [smem:[#allocation18_spill]] %s5660_s20  ;;  %p5643_p9 = scmp.eq.s32.totalorder %s4847_s28, 0 }
  0x18   : > { %p4875_p10 = pnand %p3438_p7, %p425_p8  ;;  %s4728_s22 = smov [#allocation3]  }
  0x19   : > { %s443_s23 = sshll.u32 %s4728_s22, 4  ;;  %s4729_s30 = smov [#allocation6]   ;;  %s444_s23 = int_to_ptr.vmem [resolvable:$true] %s443_s23 }
  0x1a   : > { %s5662_s21 = scalar_select %p4875_p10, 1, 0 }
  0x1b   : > { %p4362_p11 = pneg %p4875_p10  ;;  %s477_s18 = sshll.u32 %s4729_s30, 4  ;;  %s4887_s18 = int_to_ptr.vmem [resolvable:$true] %s477_s18 }
  0x1c   : > { %s4600_s0 = scalar_lea.hbm %s5621_s3, 3072 }
  0x1d   : > { %p4883_p12 = pnand %p5643_p9, %p4362_p11  ;;  %p4601_p13 = scmp.ne.s32.totalorder %s5621_s3, %s4600_s0 }
  0x1e   : > { %p4607_p3 = scmp.lt.u32.totalorder %s4600_s0, %s5621_s3 }
  0x1f   : > { %p4602_p0 = pneg %p4883_p12 }
  0x21   : > { %p4603_p1 = pnand %p4602_p0, %p4601_p13 }
  0x23   : > { %p4604_p2 = pneg %p4603_p1 }
  0x25   : > { %p4609_p4 = pnand %p4607_p3, %p4604_p2 }
  0x27   : > { %4612 = shalt.err (!%p4609_p4)
}
  0x28   : > { %s4613_s30 = scalar_lea.vmem %s444_s23, 3072  ;;  %p4621_p9 = scmp.lt.s32.totalorder %s444_s23, %s444_s23 }
  0x29   : > { %p4614_p7 = scmp.ne.s32.totalorder %s444_s23, %s4613_s30  ;;  %p4622_p6 = scmp.lt.s32.totalorder %s4613_s30, %s4613_s30 }
  0x2b   : > { %p4616_p8 = pnand %p4614_p7, %p4602_p0  ;;  %p4623_p5 = por %p4622_p6, %p4621_p9 }
  0x2d   : > { %p4617_p11 = pneg %p4616_p8 }
  0x2f   : > { %p4624_p10 = pnand %p4623_p5, %p4617_p11 }
  0x31   : > { %4627 = shalt.err (!%p4624_p10)
}
  0x32   : > { %s4730_s26 = smov 64   ;;  %s4731_s19 = smov 4  }
  0x33   : > { %4365 = dma.hbm_to_vmem [thread:$0]  (!%p4883_p12), %s5621_s3, 3072, %s444_s23, [#allocation4], %s4730_s26, %s4730_s26, %s4731_s19  }
  0x34   : > { %s4628_s22 = scalar_lea.hbm %s5629_s11, 5120 }
  0x35   : > { %p4629_p13 = scmp.ne.s32.totalorder %s5629_s11, %s4628_s22  ;;  %p4635_p9 = scmp.lt.u32.totalorder %s4628_s22, %s5629_s11 }
  0x37   : > { %p4631_p5 = pnand %p4629_p13, %p4602_p0 }
  0x39   : > { %p4632_p6 = pneg %p4631_p5 }
  0x3b   : > { %p4637_p10 = pnand %p4635_p9, %p4632_p6 }
  0x3d   : > { %4640 = shalt.err (!%p4637_p10)
}
  0x3e   : > { %s4641_s23 = scalar_lea.vmem %s4887_s18, 5120  ;;  %p4649_p4 = scmp.lt.s32.totalorder %s4887_s18, %s4887_s18 }
  0x3f   : > { %p4642_p1 = scmp.ne.s32.totalorder %s4887_s18, %s4641_s23  ;;  %p4650_p7 = scmp.lt.s32.totalorder %s4641_s23, %s4641_s23 }
  0x41   : > { %p4644_p2 = pnand %p4642_p1, %p4602_p0  ;;  %p4651_p8 = por %p4650_p7, %p4649_p4 }
  0x43   : > { %p4645_p3 = pneg %p4644_p2 }
  0x45   : > { %p4652_p11 = pnand %p4651_p8, %p4645_p3 }
  0x47   : > { %4655 = shalt.err (!%p4652_p11)
}
  0x48   : > { %4368 = dma.hbm_to_vmem [thread:$0]  (!%p4883_p12), %s5629_s11, 5120, %s4887_s18, [#allocation7], %s4730_s26, %s4730_s26, %s4731_s19  }
  0x49   : > { %p5664_p13 = scmp.ne.s32.totalorder %s5662_s21, 0 }
  0x4a   : > { %p5665_p5 = scmp.eq.s32.totalorder (!%p5664_p13), %s4847_s28, 0 }
  0x4b   : > { %516 = sbr.rel (%p5664_p13) target bundleno = 2575 (0xa0f), region = 88 }
  0x52   : > { %4701 = dma.done.wait (%p5665_p5), [#allocation4], 3072   ;;  %p5666_p0 = pmov %p5665_p5 }
  0x54   : > { %4703 = vsyncadd (%p5666_p0), [#allocation4], 4294964224  ;;  %p5667_p6 = pmov %p5666_p0 }
  0x55   : > { %p5668_p9 = pmov %p5666_p0 }
  0x56   : > { %4705 = dma.done.wait (%p5667_p6), [#allocation7], 5120  }
  0x57   : > { %4707 = vsyncadd (%p5668_p9), [#allocation7], 4294962176  ;;  %p572_p10 = scmp.lt.s32.totalorder %s4847_s28, 1  ;;  %v4732_v0 = vmov 0.0   ;;  %vm4733_vm0 = vmmov 0   ;;  %vm602_vm1 = vcmask 27651  }
  0x58   : > { %3956 = vmatprep.subr.bf16.mxu1 %v4732_v0  ;;  %3958 = vmatprep.mubr.msk.bf16.mxu1 %vm4733_vm0, %v4732_v0  ;;  %vm603_vm2 = vsmask.f32 7950  ;;  %vm618_vm3 = vcmask 24576   ;;  %vm619_vm4 = vsmask.f32 256  ;;  %vm639_vm5 = vcmask 1041408  }
  0x59   : > { %s573_s1 = scalar_select %p572_p10, %s4847_s28, 1  ;;  %3968 = vmatprep.subr.bf16.mxu0 %v4732_v0  ;;  %3970 = vmatprep.mubr.msk.bf16.mxu0 %vm4733_vm0, %v4732_v0  ;;  %vm4960_vm6 = vmand %vm602_vm1, %vm603_vm2  ;;  %vm843_vm7 = vcmask 1043459   ;;  %vm615_vm9 = vcmask 27648   ;;  %vm857_vm10 = vcmask 1040384   ;;  %v605_v7 = vld [vmem:[#allocation2 + $0x4] sm:$0x8] }
  0x5a   : > { %s5669_s26 = sld [smem:[#allocation19_spill]]  ;;  %vm4965_vm8 = vmand %vm618_vm3, %vm619_vm4  ;;  %s5674_s0 = sld [smem:[#allocation20_spill]]  ;;  %v606_v11 = vsel %vm4960_vm6, 0, %v605_v7  ;;  %vm635_vm11 = vcmask 31744   ;;  %v621_v15 = vld [vmem:[#allocation2 + $0x10] sm:$0x1] }
  0x5b   : > { %s3747_s21 = sshll.u32 %s573_s1, 4  ;;  %vm4982_vm12 = vmand %vm843_vm7, %vm603_vm2  ;;  %607 = vst [vmem:[#allocation2 + $0x4] sm:$0x8] %v606_v11  ;;  %v622_v17 = vsel %vm4965_vm8, 0, %v621_v15  ;;  %vm766_vm14 = vsmask.f32 7424 }
  0x5c   : > { %vm4998_vm13 = vmand %vm857_vm10, %vm619_vm4  ;;  %623 = vst [vmem:[#allocation2 + $0x10] sm:$0x1] %v622_v17  ;;  %vm688_vm15 = vsmask.f32 4352  ;;  %v4422_v49 = vld [vmem:[#allocation3 + $0x40] sm:$0xff]   ;;  %v4423_v50 = vld [vmem:[#allocation3 + $0x48] sm:$0xff]  }
  0x5d   : > { %v4424_v51 = vld [vmem:[#allocation3 + $0x50] sm:$0xff]   ;;  %v4425_v52 = vld [vmem:[#allocation3] sm:$0xff]   ;;  %v4426_v53 = vld [vmem:[#allocation3 + $0x58] sm:$0xff]   ;;  %vm1344_vm3 = vcmask 15360   ;;  %vm1651_vm6 = vcmask 1044480   ;;  %vm2008_vm7 = vcmask 1046528  }
  0x5e   : > { %v4427_v54 = vld [vmem:[#allocation3 + $0x8] sm:$0xff]   ;;  %v4428_v55 = vld [vmem:[#allocation3 + $0x60] sm:$0xff]   ;;  %v4429_v56 = vld [vmem:[#allocation3 + $0x10] sm:$0xff]   ;;  %s5680_s30 = sld [smem:[#allocation17_spill]]  ;;  %s569_s23 = sand.u32 1, %s4718_s25  }
  0x5f   : > { %v4430_v57 = vld [vmem:[#allocation3 + $0x68] sm:$0xff]   ;;  %v4431_v58 = vld [vmem:[#allocation3 + $0x18] sm:$0xff]   ;;  %v4432_v59 = vld [vmem:[#allocation3 + $0x70] sm:$0xff]   ;;  %s3445_s16 = sshll.u32 %s569_s23, 2  ;;  %s3744_s17 = sshll.u32 %s4847_s28, 6 }
  0x60   : > { %s4957_s19 = scalar_lea.vmem %s5669_s26, %s3747_s21  ;;  %v3450_v3 = vld [vmem:[%s5674_s0 + $0x2] sm:$0x3]  ;;  %v627_v10 = vld [vmem:[%s5674_s0] sm:$0x3]  ;;  %v3456_v14 = vld [vmem:[%s5674_s0 + $0x4] sm:$0x3] }
  0x61   : > { %v578_v4 = vld [vmem:[%s4957_s19] sm:$0xff]  ;;  %v579_v5 = vld [vmem:[%s4957_s19 + $0x8] sm:$0xff]  ;;  %v641_v6 = vsel %vm639_vm5, %v3450_v3, 0  ;;  %v710_v13 = vsel %vm639_vm5, %v627_v10, 0  ;;  %v783_v16 = vsel %vm639_vm5, %v3456_v14, 0  ;;  %v4433_v60 = vld [vmem:[#allocation3 + $0x20] sm:$0xff]  }
  0x62   : > { %v3748_v8 = vpack.c.bf16 %v578_v4, %v578_v4  ;;  %v3749_v9 = vpack.c.bf16 %v579_v5, %v579_v5  ;;  %3957 = vmatpush3.bf16.msra.mxu1 %v641_v6  ;;  %3969 = vmatpush3.bf16.msra.mxu0 %v783_v16  ;;  %v624_v19 = vld [vmem:[#allocation2 + $0x4] sm:$0x8]  ;;  %v4434_v61 = vld [vmem:[#allocation3 + $0x78] sm:$0xff]   ;;  %v4435_v62 = vld [vmem:[#allocation3 + $0x28] sm:$0xff]   ;;  %v4734_v3 = vmov 0   ;;  %s571_s1 = scalar_lea.vmem [#allocation8], %s3445_s16 }
  0x63   : > { %3962 = vmatprep.subr.bf16.mxu1 %v4732_v0  ;;  %3994 = vmatprep.subr.bf16.mxu0 %v4732_v0  ;;  %v845_v24 = vld [vmem:[#allocation2 + $0x4] sm:$0x8]  ;;  %v859_v28 = vld [vmem:[#allocation2 + $0x10] sm:$0x1]  ;;  %v3460_v15 = vld [vmem:[%s5620_s2] ss:$0 sm:$0xff] }
  0x64   : > { %616 = vst.msk [vmem:[#allocation2 + $0x8] sm:$0xf] %vm615_vm9, %v3748_v8  ;;  %617 = vst.msk [vmem:[#allocation2 + $0xc] sm:$0xf] %vm615_vm9, %v3749_v9  ;;  %v846_v26 = vsel %vm4982_vm12, 0, %v845_v24  ;;  %v860_v30 = vsel %vm4998_vm13, 0, %v859_v28 }
  0x65   : > { %847 = vst [vmem:[#allocation2 + $0x4] sm:$0x8] %v846_v26  ;;  %v4420_v29 = vld [vmem:[#allocation2 + $0x10] ss:$0 sps:$4 sm:$0x11]   ;;  %v4438_v63 = vld [vmem:[#allocation3 + $0x30] sm:$0xff]  }
  0x66   : > { %861 = vst [vmem:[#allocation2 + $0x10] sm:$0x1] %v860_v30  ;;  %v775_v37 = vshll.u32 %v4420_v29, 16  ;;  %v4440_v4 = vld [vmem:[#allocation3 + $0x38] sm:$0xff]   ;;  %s3356_s21 = sshll.u32 %s571_s1, 4  ;;  %s5681_s26 = sld [smem:[#allocation22_spill]]  ;;  %s5578_s21 = int_to_ptr.vmem [resolvable:$true] %s3356_s21 }
  0x67   : > { %s3343_s27 = scalar_lea.sflag [#allocation5], %s569_s23  ;;  %s4656_s22 = scalar_lea.vmem %s5578_s21, 64 }
  0x68   : > { %v777_v43 = vrot.slane %v775_v37, 1  ;;  %p4657_p12 = scmp.ne.s32.totalorder %s5578_s21, %s4656_s22  ;;  %p5683_p1 = scmp.ne.s32.totalorder %s5680_s30, 0 }
  0x69   : > { %s4735_s28 = smov [#allocation8]  }
  0x6a   : > { %p4658_p2 = pnand %p4657_p12, %p5683_p1 }
  0x6b   : > { %v625_v20 = vld [vmem:[#allocation2 + $0x8] sm:$0xf]  ;;  %v626_v21 = vld [vmem:[#allocation2 + $0xc] sm:$0xf] }
  0x6c   : > { %v3451_v22 = vcombine.low %v625_v20, %v626_v21  ;;  %v3453_v23 = vcombine.low %v624_v19, %v625_v20  ;;  %v3454_v25 = vcombine.low %v626_v21, %v626_v21  ;;  %v4419_v27 = vld [vmem:[#allocation2 + $0x8] sm:$0xff]   ;;  %v862_v1 = vld [vmem:[#allocation2 + $0x4] sm:$0x8]  ;;  %s5682_s20 = smov %s5681_s26  ;;  %s5576_s24 = scalar_lea.hbm %s5681_s26, %s3744_s17 }
  0x6d   : > { %v768_v33 = vshrl.u32 %v4419_v27, 16  ;;  %v770_v34 = vshll.u32 %v4419_v27, 16  ;;  %v5033_v2 = vld [vmem:[#allocation2 + $0x10] ss:$0 sps:$4 sm:$0x11]   ;;  %p4659_p3 = pneg %p4658_p2 }
  0x6e   : > { %3959 = vmatmul.mubr.msk.bf16.vlgmr.msra.gmra.mrb[0].mxu1 %vm635_vm11, %v3451_v22  ;;  %v690_v31 = vshrl.u32 %v3453_v23, 16  ;;  %v693_v32 = vshll.u32 %v3453_v23, 16  ;;  %v698_v35 = vshrl.u32 %v3454_v25, 16  ;;  %v701_v36 = vshll.u32 %v3454_v25, 16  ;;  %1485 = vst [vmem:[#allocation2 + $0x4] sm:$0x8] %v4734_v3 }
  0x6f   : > { %3963 = vmatpush3.bf16.msra.mxu1 %v710_v13  ;;  %3964 = vmatprep.mubr.msk.bf16.mxu1 %vm4733_vm0, %v4732_v0  ;;  %v772_v40 = vrot.slane %v770_v34, 1  ;;  %1495 = vst [vmem:[#allocation2 + $0x10] sm:$0x1] %v4734_v3 }
  0x70   : > { %v692_v38 = vrot.slane %v690_v31, 3  ;;  %v695_v39 = vrot.slane %v693_v32, 4  ;;  %3974 = vmatprep.subr.bf16.mxu1 %v4732_v0  ;;  %v700_v41 = vrot.slane %v698_v35, 3  ;;  %v703_v42 = vrot.slane %v701_v36, 4  ;;  %v4439_v31 = vld [vmem:[#allocation3 + $0x80] sm:$0xff]  }
  0x71   : > { %v773_v45 = vor.u32 %v772_v40, %v768_v33 }
  0x72   : > { %v696_v44 = vor.u32 %v695_v39, %v692_v38  ;;  %v704_v46 = vor.u32 %v703_v42, %v700_v41  ;;  %v4441_v41 = vld [vmem:[#allocation3 + $0x88] sm:$0xff]  }
  0x73   : > { %v778_v47 = vsel %vm766_vm14, %v773_v45, %v777_v43 }
  0x74   : > { %v705_v48 = vsel %vm688_vm15, %v696_v44, %v704_v46  ;;  %3971 = vmatmul.mubr.msk.bf16.vlgmr.msra.gmra.mrb[0].mxu0 %vm635_vm11, %v778_v47 }
  0x75   : > { %4010 = vmatprep.mubr.msk.bf16.mxu0 %vm4733_vm0, %v4732_v0  ;;  %3995 = vmatpush3.bf16.msra.mxu0 %v4425_v52 }
  0x76   : > { %3965 = vmatmul.mubr.msk.bf16.vlgmr.msra.gmra.mrb[4].mxu1 %vm635_vm11, %v705_v48  ;;  %3996 = vmatprep.subr.bf16.mxu0 %v4732_v0  ;;  %v4443_v48 = vld [vmem:[#allocation3 + $0x90] sm:$0xff]  }
  0x77   : > { %3990 = vmatprep.mubr.msk.bf16.mxu1 %vm4733_vm0, %v4732_v0  ;;  %3975 = vmatpush3.bf16.msra.mxu1 %v4422_v49 }
  0x78   : > { %3976 = vmatprep.subr.bf16.mxu1 %v4732_v0 }
  0x79   : > { %3997 = vmatpush3.bf16.msra.mxu0 %v4427_v54 }
  0x7a   : > { %3998 = vmatprep.subr.bf16.mxu0 %v4732_v0 }
  0x7b   : > { %3977 = vmatpush3.bf16.msra.mxu1 %v4423_v50  ;;  %v4444_v50 = vld [vmem:[#allocation3 + $0x98] sm:$0xff]  }
  0x7c   : > { %3978 = vmatprep.subr.bf16.mxu1 %v4732_v0 }
  0x7d   : > { %3999 = vmatpush3.bf16.msra.mxu0 %v4429_v56 }
  0x7e   : > { %4000 = vmatprep.subr.bf16.mxu0 %v4732_v0 }
  0x7f   : > { %3979 = vmatpush3.bf16.msra.mxu1 %v4424_v51  ;;  %v4445_v51 = vld [vmem:[#allocation3 + $0xa0] sm:$0xff]  }
  0x80   : > { %3980 = vmatprep.subr.bf16.mxu1 %v4732_v0 }
  0x81   : > { %4001 = vmatpush3.bf16.msra.mxu0 %v4431_v58  ;;  %v4448_v58 = vld [vmem:[#allocation3 + $0xb8] sm:$0xff]  }
  0x82   : > { %4002 = vmatprep.subr.bf16.mxu0 %v4732_v0 }
  0x83   : > { %3981 = vmatpush3.bf16.msra.mxu1 %v4426_v53  ;;  %v4446_v53 = vld [vmem:[#allocation3 + $0xa8] sm:$0xff]  }
  0x84   : > { %3982 = vmatprep.subr.bf16.mxu1 %v4732_v0 }
  0x85   : > { %4003 = vmatpush3.bf16.msra.mxu0 %v4433_v60 }
  0x86   : > { %4004 = vmatprep.subr.bf16.mxu0 %v4732_v0 }
  0x87   : > { %3983 = vmatpush3.bf16.msra.mxu1 %v4428_v55  ;;  %v4447_v55 = vld [vmem:[#allocation3 + $0xb0] sm:$0xff]  }
  0x88   : > { %3984 = vmatprep.subr.bf16.mxu1 %v4732_v0 }
  0x89   : > { %4005 = vmatpush3.bf16.msra.mxu0 %v4435_v62 }
  0x8a   : > { %4006 = vmatprep.subr.bf16.mxu0 %v4732_v0 }
  0x8b   : > { %3985 = vmatpush3.bf16.msra.mxu1 %v4430_v57  ;;  %v1140_v57 = vshll.u32 %v5033_v2, 16  ;;  %v4453_v2 = vld [vmem:[%s5623_s5 + $0x10] sm:$0xff]  }
  0x8c   : > { %3986 = vmatprep.subr.bf16.mxu1 %v4732_v0 }
  0x8d   : > { %4007 = vmatpush3.bf16.msra.mxu0 %v4438_v63  ;;  %v4451_v63 = vld [vmem:[%s5623_s5] sm:$0xff]  }
  0x8e   : > { %4008 = vmatprep.subr.bf16.mxu0 %v4732_v0 }
  0x8f   : > { %3987 = vmatpush3.bf16.msra.mxu1 %v4432_v59 }
  0x90   : > { %3988 = vmatprep.subr.bf16.mxu1 %v4732_v0 }
  0x91   : > { %4009 = vmatpush3.bf16.msra.mxu0 %v4440_v4  ;;  %v4454_v4 = vld [vmem:[%s5623_s5 + $0x18] sm:$0xff]  }
  0x92   : > { %4034 = vmatprep.subr.bf16.mxu0 %v4732_v0 }
  0x93   : > { %3989 = vmatpush3.bf16.msra.mxu1 %v4434_v61  ;;  %v1142_v61 = vrot.slane %v1140_v57, 1 }
  0x94   : > { %4014 = vmatprep.subr.bf16.mxu1 %v4732_v0 }
 0x141   : > { %v677_v5 = vpop.f32.mrb[0].mxu1 }
 0x142   : > { %v3960_v6 = vpop.f32.mrb[1].mxu1 }
 0x143   : > { %v680_v7 = vpop.f32.mrb[2].mxu1  ;;  %v4456_v6 = vld [vmem:[%s5623_s5 + $0x28] sm:$0xff]  }
 0x144   : > { %v3961_v8 = vpop.f32.mrb[3].mxu1 }
 0x145   : > { %v4458_v8 = vld [vmem:[%s5623_s5 + $0x38] sm:$0xff]  }
 0x147   : > { %v819_v9 = vpop.f32.mrb[0].mxu0 }
 0x148   : > { %v3972_v13 = vpop.f32.mrb[1].mxu0 }
 0x149   : > { %v746_v10 = vpop.f32.mrb[4].mxu1  ;;  %v822_v16 = vpop.f32.mrb[2].mxu0 }
 0x14a   : > { %v747_v11 = vadd.f32 %v746_v10, %v677_v5  ;;  %v3966_v14 = vpop.f32.mrb[5].mxu1  ;;  %v3973_v21 = vpop.f32.mrb[3].mxu0  ;;  %v4455_v5 = vld [vmem:[%s5623_s5 + $0x20] sm:$0xff]  }
 0x14b   : > { %v749_v17 = vpop.f32.mrb[6].mxu1 }
 0x14c   : > { %v826_v19 = vadd.f32 %v819_v9, %v747_v11  ;;  %v750_v20 = vadd.f32 %v749_v17, %v680_v7  ;;  %v3967_v22 = vpop.f32.mrb[7].mxu1  ;;  %v4457_v7 = vld [vmem:[%s5623_s5 + $0x30] sm:$0xff]   ;;  %v598_v9 = vld [vmem:[%s5624_s6] sm:$0x1] }
 0x14d   : > { %v1350_v10 = vsel %vm857_vm10, %v598_v9, 0  ;;  %v4473_v9 = vld [vmem:[%s5627_s9 + $0x38] sm:$0xff]  }
 0x14e   : > { %v834_v23 = vadd.f32 %v3460_v15, %v826_v19  ;;  %v827_v24 = vadd.f32 %v822_v16, %v750_v20 }
 0x150   : > { %v838_v25 = vmul.f32 0.2, %v834_v23  ;;  %v835_v26 = vadd.f32 %v3460_v15, %v827_v24  ;;  %vm836_vm1 = vcmp.ge.f32.partialorder %v834_v23, 0.0 }
 0x152   : > { %vm837_vm2 = vcmp.ge.f32.partialorder %v835_v26, 0.0  ;;  %v839_v27 = vmul.f32 0.2, %v835_v26  ;;  %v840_v28 = vsel %vm836_vm1, %v834_v23, %v838_v25 }
 0x154   : > { %v841_v29 = vsel %vm837_vm2, %v835_v26, %v839_v27  ;;  %v3492_v26 = vld [vmem:[%s5622_s4] ss:$0 sm:$0xff] }
 0x155   : > { %v3761_v30 = vpack.c.bf16 %v841_v29, %v840_v28 }
 0x157   : > { %3778 = vst [vmem:[#allocation2 + $0x8] sm:$0xff] %v3761_v30  }
 0x15e   : > { %v863_v32 = vld [vmem:[#allocation2 + $0x8] sm:$0xf]  ;;  %v864_v33 = vld [vmem:[#allocation2 + $0xc] sm:$0xf] }
 0x15f   : > { %v3463_v34 = vcombine.low %v863_v32, %v864_v33  ;;  %v3472_v35 = vcombine.low %v862_v1, %v863_v32  ;;  %v3473_v36 = vcombine.low %v864_v33, %v864_v33  ;;  %v4449_v52 = vld [vmem:[#allocation2 + $0x8] sm:$0xff]  }
 0x160   : > { %v1135_v54 = vshll.u32 %v4449_v52, 16  ;;  %v1133_v59 = vshrl.u32 %v4449_v52, 16  ;;  %v4452_v1 = vld [vmem:[%s5623_s5 + $0x8] sm:$0xff]   ;;  %v4459_v52 = vld [vmem:[%s5627_s9] sm:$0xff]  }
 0x161   : > { %3991 = vmatmul.mubr.bf16.vlgmr.msra.gmra.mrb[8].mxu1 %v3463_v34  ;;  %v998_v37 = vshrl.u32 %v3472_v35, 16  ;;  %v1001_v38 = vshll.u32 %v3472_v35, 16  ;;  %v1006_v39 = vshrl.u32 %v3473_v36, 16  ;;  %v1009_v40 = vshll.u32 %v3473_v36, 16 }
 0x162   : > { %4015 = vmatpush3.bf16.msra.mxu1 %v4439_v31  ;;  %4030 = vmatprep.mubr.msk.bf16.mxu1 %vm4733_vm0, %v4732_v0  ;;  %v1137_v56 = vrot.slane %v1135_v54, 1  ;;  %v4461_v54 = vld [vmem:[%s5627_s9 + $0x8] sm:$0xff]  }
 0x163   : > { %4016 = vmatprep.subr.bf16.mxu1 %v4732_v0  ;;  %v1000_v42 = vrot.slane %v998_v37, 3  ;;  %v1003_v43 = vrot.slane %v1001_v38, 4  ;;  %v1008_v44 = vrot.slane %v1006_v39, 3  ;;  %v1011_v45 = vrot.slane %v1009_v40, 4 }
 0x164   : > { %v1138_v60 = vor.u32 %v1137_v56, %v1133_v59  ;;  %v4463_v59 = vld [vmem:[%s5627_s9 + $0x10] sm:$0xff]  }
 0x165   : > { %v1004_v46 = vor.u32 %v1003_v43, %v1000_v42  ;;  %v1012_v47 = vor.u32 %v1011_v45, %v1008_v44  ;;  %v4598_v43 = vld [vmem:[%s4957_s19] sm:$0xff]  ;;  %v4599_v44 = vld [vmem:[%s4957_s19 + $0x8] sm:$0xff]  ;;  %s5679_s19 = sld [smem:[#allocation21_spill]] }
 0x166   : > { %4017 = vmatpush3.bf16.msra.mxu1 %v4441_v41  ;;  %v1143_v62 = vsel %vm766_vm14, %v1138_v60, %v1142_v61  ;;  %v599_v41 = vld [vmem:[%s5625_s7] sm:$0x3]  ;;  %v601_v45 = vpack.c.bf16 %v4599_v44, %v4598_v43  ;;  %v4464_v61 = vld [vmem:[%s5627_s9 + $0x50] sm:$0xff]  }
 0x167   : > { %v1013_v49 = vsel %vm688_vm15, %v1004_v46, %v1012_v47  ;;  %4018 = vmatprep.subr.bf16.mxu1 %v4732_v0  ;;  %v1414_v42 = vsel %vm639_vm5, %v599_v41, 0  ;;  %v4477_v44 = vld [vmem:[%s5627_s9 + $0xc0] sm:$0xff]  }
 0x168   : > { %4011 = vmatmul.mubr.bf16.vlgmr.msra.gmra.mrb[4].mxu0 %v1013_v49 }
 0x169   : > { %4050 = vmatprep.mubr.msk.bf16.mxu0 %vm4733_vm0, %v4732_v0  ;;  %4035 = vmatpush3.bf16.msra.mxu0 %v4451_v63  ;;  %v4466_v63 = vld [vmem:[%s5627_s9 + $0x58] sm:$0xff]  }
 0x16a   : > { %4019 = vmatpush3.bf16.msra.mxu1 %v4443_v48  ;;  %4036 = vmatprep.subr.bf16.mxu0 %v4732_v0 }
 0x16b   : > { %4020 = vmatprep.subr.bf16.mxu1 %v4732_v0 }
 0x16d   : > { %4037 = vmatpush3.bf16.msra.mxu0 %v4452_v1  ;;  %v4467_v1 = vld [vmem:[%s5627_s9 + $0x20] sm:$0xff]  }
 0x16e   : > { %4021 = vmatpush3.bf16.msra.mxu1 %v4444_v50  ;;  %4038 = vmatprep.subr.bf16.mxu0 %v4732_v0 }
 0x16f   : > { %4022 = vmatprep.subr.bf16.mxu1 %v4732_v0 }
 0x171   : > { %4039 = vmatpush3.bf16.msra.mxu0 %v4453_v2  ;;  %v4468_v2 = vld [vmem:[%s5627_s9 + $0x60] sm:$0xff]  }
 0x172   : > { %4023 = vmatpush3.bf16.msra.mxu1 %v4445_v51  ;;  %4040 = vmatprep.subr.bf16.mxu0 %v4732_v0 }
 0x173   : > { %4024 = vmatprep.subr.bf16.mxu1 %v4732_v0 }
 0x175   : > { %4041 = vmatpush3.bf16.msra.mxu0 %v4454_v4  ;;  %v4469_v4 = vld [vmem:[%s5627_s9 + $0x28] sm:$0xff]  }
 0x176   : > { %4025 = vmatpush3.bf16.msra.mxu1 %v4446_v53  ;;  %4042 = vmatprep.subr.bf16.mxu0 %v4732_v0  ;;  %v4460_v53 = vld [vmem:[%s5627_s9 + $0x40] sm:$0xff]  }
 0x177   : > { %4026 = vmatprep.subr.bf16.mxu1 %v4732_v0 }
 0x179   : > { %4043 = vmatpush3.bf16.msra.mxu0 %v4455_v5  ;;  %v4470_v5 = vld [vmem:[%s5627_s9 + $0x68] sm:$0xff]  }
 0x17a   : > { %4027 = vmatpush3.bf16.msra.mxu1 %v4447_v55  ;;  %4044 = vmatprep.subr.bf16.mxu0 %v4732_v0 }
 0x17b   : > { %4028 = vmatprep.subr.bf16.mxu1 %v4732_v0 }
 0x17d   : > { %4045 = vmatpush3.bf16.msra.mxu0 %v4456_v6  ;;  %v4471_v6 = vld [vmem:[%s5627_s9 + $0x30] sm:$0xff]  }
 0x17e   : > { %4029 = vmatpush3.bf16.msra.mxu1 %v4448_v58  ;;  %4046 = vmatprep.subr.bf16.mxu0 %v4732_v0  ;;  %v4462_v58 = vld [vmem:[%s5627_s9 + $0x48] sm:$0xff]  }
 0x17f   : > { %4054 = vmatprep.subr.bf16.mxu1 %v4732_v0 }
 0x181   : > { %4031 = vmatmul.mubr.bf16.vlgmr.msra.gmra.mrb[12].mxu1 %v1143_v62  ;;  %4047 = vmatpush3.bf16.msra.mxu0 %v4457_v7  ;;  %v4465_v62 = vld [vmem:[%s5627_s9 + $0x18] sm:$0xff]   ;;  %v1496_v7 = vld [vmem:[#allocation2 + $0x4] sm:$0x8] }
 0x182   : > { %4056 = vmatprep.mubr.msk.bf16.mxu1 %vm4733_vm0, %v4732_v0  ;;  %4048 = vmatprep.subr.bf16.mxu0 %v4732_v0  ;;  %2119 = vst [vmem:[#allocation2 + $0x4] sm:$0x8] %v4734_v3 }
 0x183   : > { %4055 = vmatpush3.bf16.msra.mxu1 %v1350_v10  ;;  %v4474_v10 = vld [vmem:[%s5627_s9 + $0x78] sm:$0xff]  }
 0x184   : > { %4066 = vmatprep.subr.bf16.mxu1 %v4732_v0 }
 0x185   : > { %4049 = vmatpush3.bf16.msra.mxu0 %v4458_v8  ;;  %v4472_v8 = vld [vmem:[%s5627_s9 + $0x70] sm:$0xff]  }
 0x186   : > { %4060 = vmatprep.subr.bf16.mxu0 %v4732_v0 }
 0x234   : > { %v986_v11 = vpop.f32.mrb[8].mxu1 }
 0x235   : > { %v3992_v13 = vpop.f32.mrb[9].mxu1 }
 0x236   : > { %v989_v14 = vpop.f32.mrb[10].mxu1 }
 0x237   : > { %v3993_v15 = vpop.f32.mrb[11].mxu1 }
 0x23b   : > { %v1097_v16 = vpop.f32.mrb[4].mxu0 }
 0x23c   : > { %v1098_v17 = vadd.f32 %v1097_v16, %v986_v11  ;;  %v4012_v19 = vpop.f32.mrb[5].mxu0  ;;  %v5188_v11 = vld [vmem:[#allocation2 + $0x10] ss:$0 sps:$4 sm:$0x11]  }
 0x23d   : > { %v1100_v20 = vpop.f32.mrb[6].mxu0  ;;  %2129 = vst [vmem:[#allocation2 + $0x10] sm:$0x1] %v4734_v3  ;;  %v3503_v3 = vld [vmem:[%s5626_s8] ss:$0 sm:$0xff] }
 0x23e   : > { %v1101_v21 = vadd.f32 %v1100_v20, %v989_v14  ;;  %v4013_v22 = vpop.f32.mrb[7].mxu0 }
 0x254   : > { %v1227_v23 = vpop.f32.mrb[12].mxu1 }
 0x255   : > { %v1234_v24 = vadd.f32 %v1227_v23, %v1098_v17  ;;  %v4032_v25 = vpop.f32.mrb[13].mxu1 }
 0x256   : > { %v1230_v27 = vpop.f32.mrb[14].mxu1 }
 0x257   : > { %v1235_v28 = vadd.f32 %v1230_v27, %v1101_v21  ;;  %v4033_v29 = vpop.f32.mrb[15].mxu1  ;;  %v5099_v30 = vadd.f32 %v3492_v26, %v1234_v24  ;;  %v1398_v21 = vlaneseq }
 0x259   : > { %v5101_v31 = vadd.f32 %v3492_v26, %v1235_v28  ;;  %v5192_v22 = vshrl.u32 %v1398_v21, 7  ;;  %v4495_v21 = vld [vmem:[%s5627_s9 + $0xb8] sm:$0xff]  }
 0x25b   : > { %v1244_v32 = vadd.f32 %v5101_v31, %v5099_v30  ;;  %v1400_v23 = vsub.s32 0, %v5192_v22  ;;  %v4579_v22 = vld [vmem:[%s5633_s15 + $0x80] sm:$0xff]  }
 0x25d   : > { %v1245_v33 = vrot.slane %v1244_v32, 4 }
 0x25f   : > { %v1246_v34 = vadd.f32 %v1245_v33, %v1244_v32 }
 0x261   : > { %v1247_v35 = vrot.slane %v1246_v34, 2 }
 0x263   : > { %v1248_v36 = vadd.f32 %v1247_v35, %v1246_v34 }
 0x265   : > { %v1249_v37 = vrot.slane %v1248_v36, 1 }
 0x267   : > { %v1250_v38 = vadd.f32 %v1249_v37, %v1248_v36 }
 0x269   : > { %v1252_v39 = vmul.f32 0.0625, %v1250_v38 }
 0x26b   : > { %v1253_v40 = vpack.c.bf16 %v1252_v39, %v1252_v39 }
 0x26d   : > { %4051 = vmatmul.mubr.bf16.vlgmr.msra.gmra.mrb[8].mxu0 %v1253_v40 }
 0x26e   : > { %4062 = vmatprep.mubr.msk.bf16.mxu0 %vm4733_vm0, %v4732_v0  ;;  %4061 = vmatpush3.bf16.msra.mxu0 %v1414_v42 }
 0x26f   : > { %4086 = vmatprep.subr.bf16.mxu0 %v4732_v0 }
 0x275   : > { %4063 = vmatmul.mubr.msk.bf16.vlgmr.msra.gmra.mrb[12].mxu0 %vm635_vm11, %v601_v45 }
 0x276   : > { %4102 = vmatprep.mubr.msk.bf16.mxu0 %vm4733_vm0, %v4732_v0  ;;  %4087 = vmatpush3.bf16.msra.mxu0 %v4459_v52 }
 0x277   : > { %4088 = vmatprep.subr.bf16.mxu0 %v4732_v0 }
 0x27a   : > { %4089 = vmatpush3.bf16.msra.mxu0 %v4461_v54 }
 0x27b   : > { %4090 = vmatprep.subr.bf16.mxu0 %v4732_v0 }
 0x27e   : > { %4091 = vmatpush3.bf16.msra.mxu0 %v4463_v59  ;;  %v4482_v59 = vld [vmem:[%s5627_s9 + $0xd0] sm:$0xff]  }
 0x27f   : > { %4092 = vmatprep.subr.bf16.mxu0 %v4732_v0 }
 0x282   : > { %4093 = vmatpush3.bf16.msra.mxu0 %v4465_v62  ;;  %v4483_v62 = vld [vmem:[%s5627_s9 + $0x90] sm:$0xff]  }
 0x283   : > { %4094 = vmatprep.subr.bf16.mxu0 %v4732_v0 }
 0x286   : > { %4095 = vmatpush3.bf16.msra.mxu0 %v4467_v1 }
 0x287   : > { %4096 = vmatprep.subr.bf16.mxu0 %v4732_v0 }
 0x28a   : > { %4097 = vmatpush3.bf16.msra.mxu0 %v4469_v4  ;;  %v4485_v4 = vld [vmem:[%s5627_s9 + $0x98] sm:$0xff]  }
 0x28b   : > { %4098 = vmatprep.subr.bf16.mxu0 %v4732_v0 }
 0x28e   : > { %4099 = vmatpush3.bf16.msra.mxu0 %v4471_v6  ;;  %v4488_v6 = vld [vmem:[%s5627_s9 + $0xe8] sm:$0xff]  }
 0x28f   : > { %4100 = vmatprep.subr.bf16.mxu0 %v4732_v0 }
 0x292   : > { %4101 = vmatpush3.bf16.msra.mxu0 %v4473_v9  ;;  %v4490_v9 = vld [vmem:[%s5627_s9 + $0xf0] sm:$0xff]  }
 0x293   : > { %4126 = vmatprep.subr.bf16.mxu0 %v4732_v0 }
 0x340   : > { %v1336_v46 = vpop.f32.mrb[8].mxu0 }
 0x341   : > { %v1342_v47 = vmax.f32 %v1336_v46, 0.0  ;;  %v4052_v48 = vpop.f32.mrb[9].mxu0 }
 0x342   : > { %v1339_v49 = vpop.f32.mrb[10].mxu0 }
 0x343   : > { %v1343_v50 = vpack.c.bf16 %v1342_v47, %v1342_v47  ;;  %v4053_v51 = vpop.f32.mrb[11].mxu0 }
 0x345   : > { %4057 = vmatmul.mubr.msk.bf16.vlgmr.msra.gmra.mrb[16].mxu1 %vm1344_vm3, %v1343_v50 }
 0x346   : > { %4082 = vmatprep.mubr.msk.bf16.mxu1 %vm4733_vm0, %v4732_v0  ;;  %4067 = vmatpush3.bf16.msra.mxu1 %v4460_v53 }
 0x347   : > { %4068 = vmatprep.subr.bf16.mxu1 %v4732_v0 }
 0x348   : > { %v5130_v55 = vpop.f32.mrb[12].mxu0 }
 0x349   : > { %v4064_v56 = vpop.f32.mrb[13].mxu0  ;;  %v1451_v27 = vadd.f32 %v3503_v3, %v5130_v55  ;;  %v4480_v55 = vld [vmem:[%s5627_s9 + $0xc8] sm:$0xff]  }
 0x34a   : > { %v5134_v57 = vpop.f32.mrb[14].mxu0  ;;  %4069 = vmatpush3.bf16.msra.mxu1 %v4462_v58 }
 0x34b   : > { %v4065_v60 = vpop.f32.mrb[15].mxu0  ;;  %4070 = vmatprep.subr.bf16.mxu1 %v4732_v0  ;;  %v1454_v29 = vadd.f32 %v3503_v3, %v5134_v57  ;;  %v4479_v57 = vld [vmem:[%s5627_s9 + $0x80] sm:$0xff]  }
 0x34c   : > { %v4481_v60 = vld [vmem:[%s5627_s9 + $0x88] sm:$0xff]   ;;  %v4497_v3 = vld [vmem:[%s5627_s9 + $0x100] sm:$0xff]  }
 0x34e   : > { %4071 = vmatpush3.bf16.msra.mxu1 %v4464_v61  ;;  %v4484_v61 = vld [vmem:[%s5627_s9 + $0xd8] sm:$0xff]  }
 0x34f   : > { %4072 = vmatprep.subr.bf16.mxu1 %v4732_v0 }
 0x352   : > { %4073 = vmatpush3.bf16.msra.mxu1 %v4466_v63 }
 0x353   : > { %4074 = vmatprep.subr.bf16.mxu1 %v4732_v0 }
 0x356   : > { %4075 = vmatpush3.bf16.msra.mxu1 %v4468_v2  ;;  %v4486_v2 = vld [vmem:[%s5627_s9 + $0xe0] sm:$0xff]  }
 0x357   : > { %4076 = vmatprep.subr.bf16.mxu1 %v4732_v0 }
 0x35a   : > { %4077 = vmatpush3.bf16.msra.mxu1 %v4470_v5 }
 0x35b   : > { %4078 = vmatprep.subr.bf16.mxu1 %v4732_v0 }
 0x35e   : > { %4079 = vmatpush3.bf16.msra.mxu1 %v4472_v8 }
 0x35f   : > { %4080 = vmatprep.subr.bf16.mxu1 %v4732_v0 }
 0x362   : > { %4081 = vmatpush3.bf16.msra.mxu1 %v4474_v10  ;;  %v4489_v10 = vld [vmem:[%s5627_s9 + $0xa8] sm:$0xff]  }
 0x363   : > { %4106 = vmatprep.subr.bf16.mxu1 %v4732_v0 }
 0x418   : > { %v1386_v13 = vpop.f32.mrb[16].mxu1 }
 0x419   : > { %v3502_v14 = vmul.f32 -1.442695, %v1386_v13  ;;  %v4058_v15 = vpop.f32.mrb[17].mxu1 }
 0x41a   : > { %v1389_v16 = vpop.f32.mrb[18].mxu1  ;;  %v4492_v15 = vld [vmem:[%s5627_s9 + $0xf8] sm:$0xff]  }
 0x41b   : > { %4590 = vpow2.f32 %v3502_v14  ;;  %v4059_v17 = vpop.f32.mrb[19].mxu1  ;;  %v1891_v14 = vshll.u32 %v5188_v11, 16 }
 0x41c   : > { %v4491_v17 = vld [vmem:[%s5627_s9 + $0xb0] sm:$0xff]  }
 0x425   : > { %v4591_v19 = vpop.eup %4590 }
 0x426   : > { %v1395_v20 = vadd.f32 1.0, %v4591_v19 }
 0x428   : > { %4592 = vrcp.f32 %v1395_v20  ;;  %v1893_v20 = vrot.slane %v1891_v14, 1 }
 0x432   : > { %v4593_v24 = vpop.eup %4592 }
 0x433   : > { %v1401_v25 = vrot.slane %v4593_v24, %v1400_v23 }
 0x435   : > { %v1402_v26 = vmul.f32 %v1401_v25, %v5099_v30  ;;  %v1403_v28 = vmul.f32 %v1401_v25, %v5101_v31 }
 0x437   : > { %v1457_v32 = vadd.f32 %v1451_v27, %v1402_v26  ;;  %v1458_v33 = vadd.f32 %v1454_v29, %v1403_v28  ;;  %v4498_v26 = vld [vmem:[%s5627_s9 + $0x108] sm:$0xff]   ;;  %v4499_v27 = vld [vmem:[%s5627_s9 + $0x110] sm:$0xff]   ;;  %v4500_v28 = vld [vmem:[%s5627_s9 + $0x118] sm:$0xff]  }
 0x438   : > { %v4501_v29 = vld [vmem:[%s5627_s9 + $0x120] sm:$0xff]  }
 0x439   : > { %vm1459_vm4 = vcmp.ge.f32.partialorder %v1457_v32, 0.0  ;;  %v1461_v34 = vmul.f32 0.2, %v1457_v32  ;;  %vm1460_vm5 = vcmp.ge.f32.partialorder %v1458_v33, 0.0  ;;  %v1462_v35 = vmul.f32 0.2, %v1458_v33 }
 0x43b   : > { %v5204_v36 = vsel %vm1459_vm4, %v1457_v32, %v1461_v34  ;;  %v5206_v37 = vsel %vm1460_vm5, %v1458_v33, %v1462_v35  ;;  %v4502_v32 = vld [vmem:[%s5627_s9 + $0x128] sm:$0xff]   ;;  %v4503_v34 = vld [vmem:[%s5627_s9 + $0x130] sm:$0xff]  }
 0x43c   : > { %v3766_v38 = vpack.c.bf16 %v5206_v37, %v5204_v36 }
 0x43e   : > { %3779 = vst [vmem:[#allocation2 + $0x8] sm:$0xff] %v3766_v38   ;;  %v4504_v38 = vld [vmem:[%s5627_s9 + $0x138] sm:$0xff]  }
 0x445   : > { %v5210_v30 = vld [vmem:[#allocation2 + $0x8] sm:$0xf]  ;;  %v5212_v39 = vld [vmem:[#allocation2 + $0xc] sm:$0xf] }
 0x446   : > { %v3523_v31 = vcombine.low %v1496_v7, %v5210_v30  ;;  %v4476_v40 = vld [vmem:[#allocation2 + $0xc] ss:$0 sps:$4 sm:$0x77]   ;;  %v3524_v41 = vcombine.low %v5212_v39, %v5212_v39  ;;  %v1855_v63 = vld [vmem:[#allocation2 + $0x8] sm:$0xf]  ;;  %v4487_v7 = vld [vmem:[%s5627_s9 + $0xa0] sm:$0xff]   ;;  %v3558_v25 = vcombine.low %v5210_v30, %v5212_v39 }
 0x447   : > { %v1653_v43 = vrot.slane %v4476_v40, 3  ;;  %v5249_v1 = vld [vmem:[#allocation2 + $0xc] sm:$0xf]  ;;  %v1987_v33 = vld [vmem:[#allocation2 + $0x8] sm:$0xe]  ;;  %v2010_v39 = vrot.slane %v5188_v11, 1 }
 0x448   : > { %v1652_v42 = vrot.slane %v3523_v31, 3  ;;  %v1542_v45 = vshrl.u32 %v3523_v31, 16  ;;  %v1545_v46 = vshll.u32 %v3523_v31, 16  ;;  %v1550_v47 = vshrl.u32 %v3524_v41, 16  ;;  %v4506_v40 = vld [vmem:[#allocation6] sm:$0xff]   ;;  %v4509_v11 = vld [vmem:[#allocation6 + $0x48] sm:$0xff]  }
 0x449   : > { %v1553_v48 = vshll.u32 %v3524_v41, 16  ;;  %v3583_v5 = vcombine.low %v1855_v63, %v5249_v1  ;;  %v3609_v35 = vcombine.low %v1987_v33, %v5249_v1  ;;  %v4507_v41 = vld [vmem:[#allocation6 + $0x40] sm:$0xff]  }
 0x44a   : > { %v1654_v49 = vsel %vm1651_vm6, %v1652_v42, %v1653_v43  ;;  %v1544_v50 = vrot.slane %v1542_v45, 3  ;;  %v1547_v51 = vrot.slane %v1545_v46, 4  ;;  %v1552_v52 = vrot.slane %v1550_v47, 3  ;;  %v4508_v42 = vld [vmem:[#allocation6 + $0x8] sm:$0xff]   ;;  %v4510_v43 = vld [vmem:[#allocation6 + $0x10] sm:$0xff]   ;;  %v4512_v45 = vld [vmem:[#allocation6 + $0x18] sm:$0xff]  }
 0x44b   : > { %4103 = vmatmul.mubr.bf16.vlgmr.msra.gmra.mrb[16].mxu0 %v1654_v49  ;;  %v1555_v53 = vrot.slane %v1553_v48, 4  ;;  %v1886_v8 = vshll.u32 %v3583_v5, 16  ;;  %v1884_v16 = vshrl.u32 %v3583_v5, 16  ;;  %v2009_v30 = vrot.slane %v3609_v35, 1  ;;  %v4513_v46 = vld [vmem:[#allocation6 + $0x58] sm:$0xff]   ;;  %v4514_v47 = vld [vmem:[#allocation6 + $0x20] sm:$0xff]  }
 0x44c   : > { %4127 = vmatpush3.bf16.msra.mxu0 %v4477_v44  ;;  %v1548_v54 = vor.u32 %v1547_v51, %v1544_v50  ;;  %4142 = vmatprep.mubr.msk.bf16.mxu0 %vm4733_vm0, %v4732_v0  ;;  %v4511_v44 = vld [vmem:[#allocation6 + $0x50] sm:$0xff]   ;;  %v4515_v48 = vld [vmem:[#allocation6 + $0x60] sm:$0xff]   ;;  %v4516_v49 = vld [vmem:[#allocation6 + $0x28] sm:$0xff]  }
 0x44d   : > { %4128 = vmatprep.subr.bf16.mxu0 %v4732_v0  ;;  %v1556_v56 = vor.u32 %v1555_v53, %v1552_v52  ;;  %v1888_v13 = vrot.slane %v1886_v8, 1  ;;  %v2011_v31 = vsel %vm2008_vm7, %v2009_v30, %v2010_v39  ;;  %v4517_v50 = vld [vmem:[#allocation6 + $0x68] sm:$0xff]   ;;  %v4518_v51 = vld [vmem:[#allocation6 + $0x30] sm:$0xff]   ;;  %v4520_v53 = vld [vmem:[#allocation6 + $0x38] sm:$0xff]  }
 0x44e   : > { %v4519_v52 = vld [vmem:[#allocation6 + $0x70] sm:$0xff]  }
 0x44f   : > { %v1557_v58 = vsel %vm688_vm15, %v1548_v54, %v1556_v56  ;;  %v1889_v19 = vor.u32 %v1888_v13, %v1884_v16  ;;  %v2911_v54 = vld [vmem:[#allocation2 + $0x4] sm:$0x8] }
 0x450   : > { %4083 = vmatmul.mubr.bf16.vlgmr.msra.gmra.mrb[20].mxu1 %v1557_v58  ;;  %4129 = vmatpush3.bf16.msra.mxu0 %v4480_v55  ;;  %v4521_v55 = vld [vmem:[#allocation6 + $0x78] sm:$0xff]   ;;  %v2130_v56 = vld [vmem:[#allocation2 + $0x4] sm:$0x8] }
 0x451   : > { %4107 = vmatpush3.bf16.msra.mxu1 %v4479_v57  ;;  %4130 = vmatprep.subr.bf16.mxu0 %v4732_v0  ;;  %v1894_v24 = vsel %vm766_vm14, %v1889_v19, %v1893_v20  ;;  %v2912_v57 = vsel %vm4982_vm12, 0, %v2911_v54  ;;  %v2923_v58 = vld [vmem:[#allocation2 + $0x10] sm:$0x1] }
 0x452   : > { %4108 = vmatprep.subr.bf16.mxu1 %v4732_v0  ;;  %4122 = vmatprep.mubr.msk.bf16.mxu1 %vm4733_vm0, %v4732_v0  ;;  %2913 = vst [vmem:[#allocation2 + $0x4] sm:$0x8] %v2912_v57 }
 0x454   : > { %4131 = vmatpush3.bf16.msra.mxu0 %v4482_v59  ;;  %v5353_v59 = vld [vmem:[#allocation2 + $0x10] ss:$0 sps:$4 sm:$0x11]  }
 0x455   : > { %4109 = vmatpush3.bf16.msra.mxu1 %v4481_v60  ;;  %4132 = vmatprep.subr.bf16.mxu0 %v4732_v0  ;;  %v2924_v60 = vsel %vm4998_vm13, 0, %v2923_v58  ;;  %v4526_v58 = vld [vmem:[#allocation6 + $0x80] sm:$0xff]  }
 0x456   : > { %4110 = vmatprep.subr.bf16.mxu1 %v4732_v0  ;;  %2925 = vst [vmem:[#allocation2 + $0x10] sm:$0x1] %v2924_v60 }
 0x458   : > { %4133 = vmatpush3.bf16.msra.mxu0 %v4484_v61 }
 0x459   : > { %4111 = vmatpush3.bf16.msra.mxu1 %v4483_v62  ;;  %4134 = vmatprep.subr.bf16.mxu0 %v4732_v0 }
 0x45a   : > { %4112 = vmatprep.subr.bf16.mxu1 %v4732_v0 }
 0x45c   : > { %4135 = vmatpush3.bf16.msra.mxu0 %v4486_v2 }
 0x45d   : > { %4113 = vmatpush3.bf16.msra.mxu1 %v4485_v4  ;;  %4136 = vmatprep.subr.bf16.mxu0 %v4732_v0 }
 0x45e   : > { %4114 = vmatprep.subr.bf16.mxu1 %v4732_v0 }
 0x460   : > { %4137 = vmatpush3.bf16.msra.mxu0 %v4488_v6 }
 0x461   : > { %4115 = vmatpush3.bf16.msra.mxu1 %v4487_v7  ;;  %4138 = vmatprep.subr.bf16.mxu0 %v4732_v0 }
 0x462   : > { %4116 = vmatprep.subr.bf16.mxu1 %v4732_v0 }
 0x464   : > { %4139 = vmatpush3.bf16.msra.mxu0 %v4490_v9 }
 0x465   : > { %4117 = vmatpush3.bf16.msra.mxu1 %v4489_v10  ;;  %4140 = vmatprep.subr.bf16.mxu0 %v4732_v0 }
 0x466   : > { %4118 = vmatprep.subr.bf16.mxu1 %v4732_v0 }
 0x468   : > { %4141 = vmatpush3.bf16.msra.mxu0 %v4492_v15 }
 0x469   : > { %4119 = vmatpush3.bf16.msra.mxu1 %v4491_v17  ;;  %4166 = vmatprep.subr.bf16.mxu0 %v4732_v0 }
 0x46a   : > { %4120 = vmatprep.subr.bf16.mxu1 %v4732_v0 }
 0x46b   : > { %4143 = vmatmul.mubr.bf16.vlgmr.msra.gmra.mrb[20].mxu0 %v1894_v24  ;;  %v3618_v24 = vld [vmem:[%s5628_s10] ss:$0 sm:$0xff] }
 0x46c   : > { %4182 = vmatprep.mubr.msk.bf16.mxu0 %vm4733_vm0, %v4732_v0  ;;  %4167 = vmatpush3.bf16.msra.mxu0 %v4507_v41 }
 0x46d   : > { %4121 = vmatpush3.bf16.msra.mxu1 %v4495_v21  ;;  %4168 = vmatprep.subr.bf16.mxu0 %v4732_v0 }
 0x46e   : > { %4146 = vmatprep.subr.bf16.mxu1 %v4732_v0 }
 0x470   : > { %4123 = vmatmul.mubr.bf16.vlgmr.msra.gmra.mrb[24].mxu1 %v3558_v25  ;;  %4169 = vmatpush3.bf16.msra.mxu0 %v4509_v11 }
 0x471   : > { %4147 = vmatpush3.bf16.msra.mxu1 %v4497_v3  ;;  %4162 = vmatprep.mubr.msk.bf16.mxu1 %vm4733_vm0, %v4732_v0 }
 0x472   : > { %4148 = vmatprep.subr.bf16.mxu1 %v4732_v0  ;;  %4170 = vmatprep.subr.bf16.mxu0 %v4732_v0 }
 0x474   : > { %4171 = vmatpush3.bf16.msra.mxu0 %v4511_v44 }
 0x475   : > { %4149 = vmatpush3.bf16.msra.mxu1 %v4498_v26  ;;  %4172 = vmatprep.subr.bf16.mxu0 %v4732_v0 }
 0x476   : > { %4150 = vmatprep.subr.bf16.mxu1 %v4732_v0 }
 0x478   : > { %4173 = vmatpush3.bf16.msra.mxu0 %v4513_v46 }
 0x479   : > { %4151 = vmatpush3.bf16.msra.mxu1 %v4499_v27  ;;  %4174 = vmatprep.subr.bf16.mxu0 %v4732_v0 }
 0x47a   : > { %4152 = vmatprep.subr.bf16.mxu1 %v4732_v0 }
 0x47c   : > { %4175 = vmatpush3.bf16.msra.mxu0 %v4515_v48 }
 0x47d   : > { %4153 = vmatpush3.bf16.msra.mxu1 %v4500_v28  ;;  %4176 = vmatprep.subr.bf16.mxu0 %v4732_v0 }
 0x47e   : > { %4154 = vmatprep.subr.bf16.mxu1 %v4732_v0 }
 0x480   : > { %4177 = vmatpush3.bf16.msra.mxu0 %v4517_v50 }
 0x481   : > { %4155 = vmatpush3.bf16.msra.mxu1 %v4501_v29  ;;  %4178 = vmatprep.subr.bf16.mxu0 %v4732_v0 }
 0x482   : > { %4156 = vmatprep.subr.bf16.mxu1 %v4732_v0 }
 0x484   : > { %4179 = vmatpush3.bf16.msra.mxu0 %v4519_v52 }
 0x485   : > { %4157 = vmatpush3.bf16.msra.mxu1 %v4502_v32  ;;  %4180 = vmatprep.subr.bf16.mxu0 %v4732_v0 }
 0x486   : > { %4158 = vmatprep.subr.bf16.mxu1 %v4732_v0 }
 0x488   : > { %4181 = vmatpush3.bf16.msra.mxu0 %v4521_v55 }
 0x489   : > { %4159 = vmatpush3.bf16.msra.mxu1 %v4503_v34  ;;  %4206 = vmatprep.subr.bf16.mxu0 %v4732_v0 }
 0x48a   : > { %4160 = vmatprep.subr.bf16.mxu1 %v4732_v0 }
 0x48d   : > { %4161 = vmatpush3.bf16.msra.mxu1 %v4504_v38 }
 0x48e   : > { %4186 = vmatprep.subr.bf16.mxu1 %v4732_v0 }
 0x490   : > { %4163 = vmatmul.mubr.bf16.vlgmr.msra.gmra.mrb[28].mxu1 %v2011_v31 }
 0x491   : > { %4202 = vmatprep.mubr.msk.bf16.mxu1 %vm4733_vm0, %v4732_v0  ;;  %4187 = vmatpush3.bf16.msra.mxu1 %v4506_v40 }
 0x492   : > { %4188 = vmatprep.subr.bf16.mxu1 %v4732_v0 }
 0x495   : > { %4189 = vmatpush3.bf16.msra.mxu1 %v4508_v42 }
 0x496   : > { %4190 = vmatprep.subr.bf16.mxu1 %v4732_v0 }
 0x499   : > { %4191 = vmatpush3.bf16.msra.mxu1 %v4510_v43 }
 0x49a   : > { %4192 = vmatprep.subr.bf16.mxu1 %v4732_v0 }
 0x49d   : > { %4193 = vmatpush3.bf16.msra.mxu1 %v4512_v45  ;;  %v4524_v45 = vld [vmem:[#allocation6 + $0xc0] sm:$0xff]  }
 0x49e   : > { %4194 = vmatprep.subr.bf16.mxu1 %v4732_v0 }
 0x4a1   : > { %4195 = vmatpush3.bf16.msra.mxu1 %v4514_v47 }
 0x4a2   : > { %4196 = vmatprep.subr.bf16.mxu1 %v4732_v0 }
 0x4a5   : > { %4197 = vmatpush3.bf16.msra.mxu1 %v4516_v49 }
 0x4a6   : > { %4198 = vmatprep.subr.bf16.mxu1 %v4732_v0 }
 0x4a9   : > { %4199 = vmatpush3.bf16.msra.mxu1 %v4518_v51 }
 0x4aa   : > { %4200 = vmatprep.subr.bf16.mxu1 %v4732_v0 }
 0x4ad   : > { %4201 = vmatpush3.bf16.msra.mxu1 %v4520_v53 }
 0x4ae   : > { %4226 = vmatprep.subr.bf16.mxu1 %v4732_v0 }
 0x51e   : > { %v1738_v61 = vpop.f32.mrb[16].mxu0 }
 0x51f   : > { %v4104_v62 = vpop.f32.mrb[17].mxu0 }
 0x520   : > { %v1741_v63 = vpop.f32.mrb[18].mxu0  ;;  %v4528_v62 = vld [vmem:[#allocation6 + $0x88] sm:$0xff]  }
 0x521   : > { %v4105_v1 = vpop.f32.mrb[19].mxu0 }
 0x522   : > { %v4530_v1 = vld [vmem:[#allocation6 + $0x90] sm:$0xff]  }
 0x523   : > { %v1641_v2 = vpop.f32.mrb[20].mxu1 }
 0x524   : > { %v1739_v4 = vadd.f32 %v1738_v61, %v1641_v2  ;;  %v4084_v5 = vpop.f32.mrb[21].mxu1  ;;  %v4529_v61 = vld [vmem:[#allocation6 + $0xd0] sm:$0xff]  }
 0x525   : > { %v1644_v12 = vpop.f32.mrb[22].mxu1  ;;  %v4533_v5 = vld [vmem:[#allocation6 + $0xe0] sm:$0xff]  }
 0x526   : > { %v1742_v6 = vadd.f32 %v1741_v63, %v1644_v12  ;;  %v4085_v7 = vpop.f32.mrb[23].mxu1  ;;  %v4531_v63 = vld [vmem:[#allocation6 + $0xd8] sm:$0xff]  }
 0x527   : > { %v4532_v12 = vld [vmem:[#allocation6 + $0x98] sm:$0xff]   ;;  %v4535_v7 = vld [vmem:[#allocation6 + $0xe8] sm:$0xff]  }
 0x53e   : > { %v1978_v8 = vpop.f32.mrb[20].mxu0 }
 0x53f   : > { %v4144_v9 = vpop.f32.mrb[21].mxu0 }
 0x540   : > { %v1981_v10 = vpop.f32.mrb[22].mxu0 }
 0x541   : > { %v4145_v13 = vpop.f32.mrb[23].mxu0 }
 0x542   : > { %v4536_v13 = vld [vmem:[#allocation6 + $0xa8] sm:$0xff]  }
 0x543   : > { %v1846_v14 = vpop.f32.mrb[24].mxu1 }
 0x544   : > { %v1853_v15 = vadd.f32 %v1846_v14, %v1739_v4  ;;  %v4124_v16 = vpop.f32.mrb[25].mxu1 }
 0x545   : > { %v1849_v18 = vpop.f32.mrb[26].mxu1  ;;  %v4539_v16 = vld [vmem:[#allocation6 + $0xf8] sm:$0xff]  }
 0x546   : > { %v1854_v17 = vadd.f32 %v1849_v18, %v1742_v6  ;;  %v4125_v19 = vpop.f32.mrb[27].mxu1  ;;  %v1985_v20 = vadd.f32 %v1978_v8, %v1853_v15  ;;  %v4534_v8 = vld [vmem:[#allocation6 + $0xa0] sm:$0xff]   ;;  %v2524_v15 = vshll.u32 %v5353_v59, 16 }
 0x548   : > { %v1986_v21 = vadd.f32 %v1981_v10, %v1854_v17  ;;  %v4537_v10 = vld [vmem:[#allocation6 + $0xf0] sm:$0xff]  }
 0x549   : > { %v4538_v17 = vld [vmem:[#allocation6 + $0xb0] sm:$0xff]  }
 0x563   : > { %v2095_v3 = vpop.f32.mrb[28].mxu1 }
 0x564   : > { %v2102_v25 = vadd.f32 %v2095_v3, %v1985_v20  ;;  %v4164_v26 = vpop.f32.mrb[29].mxu1  ;;  %v2526_v20 = vrot.slane %v2524_v15, 1  ;;  %v4544_v3 = vld [vmem:[#allocation6 + $0x100] sm:$0xff]  }
 0x565   : > { %v2098_v27 = vpop.f32.mrb[30].mxu1  ;;  %v4545_v26 = vld [vmem:[#allocation6 + $0x108] sm:$0xff]  }
 0x566   : > { %v2110_v28 = vadd.f32 %v3618_v24, %v2102_v25  ;;  %v2103_v29 = vadd.f32 %v2098_v27, %v1986_v21  ;;  %v4165_v32 = vpop.f32.mrb[31].mxu1  ;;  %v4542_v21 = vld [vmem:[#allocation6 + $0xb8] sm:$0xff]   ;;  %v4546_v27 = vld [vmem:[#allocation6 + $0x110] sm:$0xff]  }
 0x567   : > { %v4549_v32 = vld [vmem:[#allocation6 + $0x128] sm:$0xff]  }
 0x568   : > { %v2114_v33 = vmul.f32 0.2, %v2110_v28  ;;  %v2111_v34 = vadd.f32 %v3618_v24, %v2103_v29  ;;  %vm2112_vm8 = vcmp.ge.f32.partialorder %v2110_v28, 0.0  ;;  %v4548_v29 = vld [vmem:[#allocation6 + $0x120] sm:$0xff]  }
 0x56a   : > { %vm2113_vm9 = vcmp.ge.f32.partialorder %v2111_v34, 0.0  ;;  %v2115_v35 = vmul.f32 0.2, %v2111_v34  ;;  %v2116_v38 = vsel %vm2112_vm8, %v2110_v28, %v2114_v33  ;;  %v4547_v28 = vld [vmem:[#allocation6 + $0x118] sm:$0xff]  }
 0x56c   : > { %v2117_v30 = vsel %vm2113_vm9, %v2111_v34, %v2115_v35  ;;  %v4550_v34 = vld [vmem:[#allocation6 + $0x130] sm:$0xff]  }
 0x56d   : > { %v3771_v39 = vpack.c.bf16 %v2117_v30, %v2116_v38  ;;  %v4551_v38 = vld [vmem:[#allocation6 + $0x138] sm:$0xff]  }
 0x56f   : > { %3780 = vst [vmem:[#allocation2 + $0x8] sm:$0xff] %v3771_v39   ;;  %v2642_v39 = vrot.slane %v5353_v59, 1  ;;  %v4555_v59 = vld [vmem:[%s5631_s13 + $0x10] sm:$0xff]  }
 0x576   : > { %v5360_v31 = vld [vmem:[#allocation2 + $0x8] sm:$0xf]  ;;  %v5362_v40 = vld [vmem:[#allocation2 + $0xc] sm:$0xf] }
 0x577   : > { %v3621_v41 = vcombine.low %v2130_v56, %v5360_v31  ;;  %v4523_v42 = vld [vmem:[#allocation2 + $0xc] ss:$0 sps:$4 sm:$0x77]   ;;  %v3622_v11 = vcombine.low %v5362_v40, %v5362_v40  ;;  %v4527_v56 = vld [vmem:[#allocation6 + $0xc8] sm:$0xff]   ;;  %v2488_v2 = vld [vmem:[#allocation2 + $0x8] sm:$0xf]  ;;  %v3640_v25 = vcombine.low %v5360_v31, %v5362_v40 }
 0x578   : > { %v2286_v44 = vrot.slane %v4523_v42, 3  ;;  %v5378_v4 = vld [vmem:[#allocation2 + $0xc] sm:$0xf]  ;;  %v2620_v33 = vld [vmem:[#allocation2 + $0x8] sm:$0xe]  ;;  %v4553_v40 = vld [vmem:[%s5631_s13] sm:$0xff]  }
 0x579   : > { %v2285_v43 = vrot.slane %v3621_v41, 3  ;;  %v2176_v46 = vshrl.u32 %v3621_v41, 16  ;;  %v2179_v47 = vshll.u32 %v3621_v41, 16  ;;  %v2184_v48 = vshrl.u32 %v3622_v11, 16  ;;  %v4554_v41 = vld [vmem:[%s5631_s13 + $0x8] sm:$0xff]   ;;  %v4556_v42 = vld [vmem:[%s5631_s13 + $0x18] sm:$0xff]  }
 0x57a   : > { %v2187_v49 = vshll.u32 %v3622_v11, 16  ;;  %v3649_v6 = vcombine.low %v2488_v2, %v5378_v4  ;;  %v3659_v35 = vcombine.low %v2620_v33, %v5378_v4  ;;  %v4557_v11 = vld [vmem:[%s5631_s13 + $0x20] sm:$0xff]  }
 0x57b   : > { %v2287_v50 = vsel %vm1651_vm6, %v2285_v43, %v2286_v44  ;;  %v2178_v51 = vrot.slane %v2176_v46, 3  ;;  %v2181_v52 = vrot.slane %v2179_v47, 4  ;;  %v2186_v53 = vrot.slane %v2184_v48, 3  ;;  %v4558_v43 = vld [vmem:[%s5631_s13 + $0x28] sm:$0xff]   ;;  %v4559_v44 = vld [vmem:[%s5631_s13 + $0x30] sm:$0xff]  }
 0x57c   : > { %4203 = vmatmul.mubr.bf16.vlgmr.msra.gmra.mrb[32].mxu1 %v2287_v50  ;;  %v2189_v54 = vrot.slane %v2187_v49, 4  ;;  %v2519_v9 = vshll.u32 %v3649_v6, 16  ;;  %v2517_v18 = vshrl.u32 %v3649_v6, 16  ;;  %v2641_v30 = vrot.slane %v3659_v35, 1  ;;  %v1483_v46 = vld [vmem:[%s5632_s14] sm:$0x1] }
 0x57d   : > { %4227 = vmatpush3.bf16.msra.mxu1 %v4524_v45  ;;  %v2182_v55 = vor.u32 %v2181_v52, %v2178_v51  ;;  %4242 = vmatprep.mubr.msk.bf16.mxu1 %vm4733_vm0, %v4732_v0  ;;  %v4560_v45 = vld [vmem:[%s5631_s13 + $0x38] sm:$0xff]   ;;  %v2847_v47 = vsel %vm857_vm10, %v1483_v46, 0  ;;  %v4572_v46 = vld [vmem:[%s5633_s15 + $0x20] sm:$0xff]  }
 0x57e   : > { %4228 = vmatprep.subr.bf16.mxu1 %v4732_v0  ;;  %v2190_v57 = vor.u32 %v2189_v54, %v2186_v53  ;;  %v2521_v14 = vrot.slane %v2519_v9, 1  ;;  %v2643_v31 = vsel %vm2008_vm7, %v2641_v30, %v2642_v39  ;;  %v4561_v30 = vld [vmem:[%s5633_s15 + $0x40] sm:$0xff]   ;;  %v4562_v39 = vld [vmem:[%s5633_s15 + $0x48] sm:$0xff]  }
 0x580   : > { %v2191_v60 = vsel %vm688_vm15, %v2182_v55, %v2190_v57  ;;  %v2522_v19 = vor.u32 %v2521_v14, %v2517_v18 }
 0x581   : > { %4183 = vmatmul.mubr.bf16.vlgmr.msra.gmra.mrb[24].mxu0 %v2191_v60  ;;  %4229 = vmatpush3.bf16.msra.mxu1 %v4527_v56 }
 0x582   : > { %4207 = vmatpush3.bf16.msra.mxu0 %v4526_v58  ;;  %4230 = vmatprep.subr.bf16.mxu1 %v4732_v0  ;;  %v2527_v24 = vsel %vm766_vm14, %v2522_v19, %v2526_v20 }
 0x583   : > { %4208 = vmatprep.subr.bf16.mxu0 %v4732_v0  ;;  %4222 = vmatprep.mubr.msk.bf16.mxu0 %vm4733_vm0, %v4732_v0 }
 0x585   : > { %4231 = vmatpush3.bf16.msra.mxu1 %v4529_v61 }
 0x586   : > { %4209 = vmatpush3.bf16.msra.mxu0 %v4528_v62  ;;  %4232 = vmatprep.subr.bf16.mxu1 %v4732_v0 }
 0x587   : > { %4210 = vmatprep.subr.bf16.mxu0 %v4732_v0 }
 0x589   : > { %4233 = vmatpush3.bf16.msra.mxu1 %v4531_v63 }
 0x58a   : > { %4211 = vmatpush3.bf16.msra.mxu0 %v4530_v1  ;;  %4234 = vmatprep.subr.bf16.mxu1 %v4732_v0 }
 0x58b   : > { %4212 = vmatprep.subr.bf16.mxu0 %v4732_v0 }
 0x58d   : > { %4235 = vmatpush3.bf16.msra.mxu1 %v4533_v5 }
 0x58e   : > { %4213 = vmatpush3.bf16.msra.mxu0 %v4532_v12  ;;  %4236 = vmatprep.subr.bf16.mxu1 %v4732_v0 }
 0x58f   : > { %4214 = vmatprep.subr.bf16.mxu0 %v4732_v0 }
 0x591   : > { %4237 = vmatpush3.bf16.msra.mxu1 %v4535_v7 }
 0x592   : > { %4215 = vmatpush3.bf16.msra.mxu0 %v4534_v8  ;;  %4238 = vmatprep.subr.bf16.mxu1 %v4732_v0 }
 0x593   : > { %4216 = vmatprep.subr.bf16.mxu0 %v4732_v0 }
 0x595   : > { %4239 = vmatpush3.bf16.msra.mxu1 %v4537_v10 }
 0x596   : > { %4217 = vmatpush3.bf16.msra.mxu0 %v4536_v13  ;;  %4240 = vmatprep.subr.bf16.mxu1 %v4732_v0  ;;  %v3668_v13 = vld [vmem:[%s5630_s12] ss:$0 sm:$0xff] }
 0x597   : > { %4218 = vmatprep.subr.bf16.mxu0 %v4732_v0 }
 0x599   : > { %4241 = vmatpush3.bf16.msra.mxu1 %v4539_v16 }
 0x59a   : > { %4219 = vmatpush3.bf16.msra.mxu0 %v4538_v17  ;;  %4266 = vmatprep.subr.bf16.mxu1 %v4732_v0 }
 0x59b   : > { %4220 = vmatprep.subr.bf16.mxu0 %v4732_v0 }
 0x59c   : > { %4243 = vmatmul.mubr.bf16.vlgmr.msra.gmra.mrb[36].mxu1 %v2527_v24 }
 0x59d   : > { %4282 = vmatprep.mubr.msk.bf16.mxu1 %vm4733_vm0, %v4732_v0  ;;  %4267 = vmatpush3.bf16.msra.mxu1 %v4553_v40  ;;  %v4564_v40 = vld [vmem:[%s5633_s15] sm:$0xff]  }
 0x59e   : > { %4221 = vmatpush3.bf16.msra.mxu0 %v4542_v21  ;;  %4268 = vmatprep.subr.bf16.mxu1 %v4732_v0 }
 0x59f   : > { %4246 = vmatprep.subr.bf16.mxu0 %v4732_v0 }
 0x5a1   : > { %4223 = vmatmul.mubr.bf16.vlgmr.msra.gmra.mrb[28].mxu0 %v3640_v25  ;;  %4269 = vmatpush3.bf16.msra.mxu1 %v4554_v41  ;;  %v4565_v41 = vld [vmem:[%s5633_s15 + $0x58] sm:$0xff]  }
 0x5a2   : > { %4247 = vmatpush3.bf16.msra.mxu0 %v4544_v3  ;;  %4262 = vmatprep.mubr.msk.bf16.mxu0 %vm4733_vm0, %v4732_v0 }
 0x5a3   : > { %4248 = vmatprep.subr.bf16.mxu0 %v4732_v0  ;;  %4270 = vmatprep.subr.bf16.mxu1 %v4732_v0 }
 0x5a5   : > { %4271 = vmatpush3.bf16.msra.mxu1 %v4555_v59  ;;  %v4566_v59 = vld [vmem:[%s5633_s15 + $0x8] sm:$0xff]  }
 0x5a6   : > { %4249 = vmatpush3.bf16.msra.mxu0 %v4545_v26  ;;  %4272 = vmatprep.subr.bf16.mxu1 %v4732_v0 }
 0x5a7   : > { %4250 = vmatprep.subr.bf16.mxu0 %v4732_v0 }
 0x5a9   : > { %4273 = vmatpush3.bf16.msra.mxu1 %v4556_v42  ;;  %v4567_v42 = vld [vmem:[%s5633_s15 + $0x60] sm:$0xff]  }
 0x5aa   : > { %4251 = vmatpush3.bf16.msra.mxu0 %v4546_v27  ;;  %4274 = vmatprep.subr.bf16.mxu1 %v4732_v0 }
 0x5ab   : > { %4252 = vmatprep.subr.bf16.mxu0 %v4732_v0 }
 0x5ad   : > { %4275 = vmatpush3.bf16.msra.mxu1 %v4557_v11  ;;  %v4568_v11 = vld [vmem:[%s5633_s15 + $0x10] sm:$0xff]  }
 0x5ae   : > { %4253 = vmatpush3.bf16.msra.mxu0 %v4547_v28  ;;  %4276 = vmatprep.subr.bf16.mxu1 %v4732_v0 }
 0x5af   : > { %4254 = vmatprep.subr.bf16.mxu0 %v4732_v0 }
 0x5b1   : > { %4277 = vmatpush3.bf16.msra.mxu1 %v4558_v43  ;;  %v4569_v43 = vld [vmem:[%s5633_s15 + $0x68] sm:$0xff]  }
 0x5b2   : > { %4255 = vmatpush3.bf16.msra.mxu0 %v4548_v29  ;;  %4278 = vmatprep.subr.bf16.mxu1 %v4732_v0 }
 0x5b3   : > { %4256 = vmatprep.subr.bf16.mxu0 %v4732_v0 }
 0x5b5   : > { %4279 = vmatpush3.bf16.msra.mxu1 %v4559_v44  ;;  %v4570_v44 = vld [vmem:[%s5633_s15 + $0x18] sm:$0xff]  }
 0x5b6   : > { %4257 = vmatpush3.bf16.msra.mxu0 %v4549_v32  ;;  %4280 = vmatprep.subr.bf16.mxu1 %v4732_v0 }
 0x5b7   : > { %4258 = vmatprep.subr.bf16.mxu0 %v4732_v0 }
 0x5b9   : > { %4281 = vmatpush3.bf16.msra.mxu1 %v4560_v45  ;;  %v4571_v45 = vld [vmem:[%s5633_s15 + $0x70] sm:$0xff]  }
 0x5ba   : > { %4259 = vmatpush3.bf16.msra.mxu0 %v4550_v34  ;;  %4312 = vmatprep.subr.bf16.mxu1 %v4732_v0 }
 0x5bb   : > { %4260 = vmatprep.subr.bf16.mxu0 %v4732_v0 }
 0x5be   : > { %4261 = vmatpush3.bf16.msra.mxu0 %v4551_v38 }
 0x5bf   : > { %4286 = vmatprep.subr.bf16.mxu0 %v4732_v0 }
 0x5c1   : > { %4263 = vmatmul.mubr.bf16.vlgmr.msra.gmra.mrb[32].mxu0 %v2643_v31  ;;  %v4563_v31 = vld [vmem:[%s5633_s15 + $0x50] sm:$0xff]  }
 0x5c2   : > { %4288 = vmatprep.mubr.msk.bf16.mxu0 %vm4733_vm0, %v4732_v0  ;;  %4287 = vmatpush3.bf16.msra.mxu0 %v2847_v47  ;;  %v4573_v47 = vld [vmem:[%s5633_s15 + $0x78] sm:$0xff]  }
 0x5c3   : > { %4292 = vmatprep.subr.bf16.mxu0 %v4732_v0 }
 0x64f   : > { %v2371_v48 = vpop.f32.mrb[32].mxu1 }
 0x650   : > { %v4204_v49 = vpop.f32.mrb[33].mxu1 }
 0x651   : > { %v2374_v50 = vpop.f32.mrb[34].mxu1  ;;  %v4578_v49 = vld [vmem:[%s5633_s15 + $0x30] sm:$0xff]  }
 0x652   : > { %v4205_v51 = vpop.f32.mrb[35].mxu1 }
 0x654   : > { %v2275_v52 = vpop.f32.mrb[24].mxu0 }
 0x655   : > { %v2372_v53 = vadd.f32 %v2371_v48, %v2275_v52  ;;  %v4184_v54 = vpop.f32.mrb[25].mxu0  ;;  %v4574_v48 = vld [vmem:[%s5633_s15 + $0x28] sm:$0xff]  }
 0x656   : > { %v2278_v55 = vpop.f32.mrb[26].mxu0 }
 0x657   : > { %v2375_v56 = vadd.f32 %v2374_v50, %v2278_v55  ;;  %v4185_v57 = vpop.f32.mrb[27].mxu0  ;;  %v4580_v50 = vld [vmem:[%s5633_s15 + $0x38] sm:$0xff]  }
 0x66f   : > { %v2611_v58 = vpop.f32.mrb[36].mxu1 }
 0x670   : > { %v4244_v60 = vpop.f32.mrb[37].mxu1 }
 0x671   : > { %v2614_v61 = vpop.f32.mrb[38].mxu1 }
 0x672   : > { %v4245_v62 = vpop.f32.mrb[39].mxu1 }
 0x674   : > { %v2479_v63 = vpop.f32.mrb[28].mxu0 }
 0x675   : > { %v2486_v1 = vadd.f32 %v2479_v63, %v2372_v53  ;;  %v4224_v2 = vpop.f32.mrb[29].mxu0 }
 0x676   : > { %v2482_v4 = vpop.f32.mrb[30].mxu0 }
 0x677   : > { %v2487_v5 = vadd.f32 %v2482_v4, %v2375_v56  ;;  %v4225_v12 = vpop.f32.mrb[31].mxu0  ;;  %v2618_v6 = vadd.f32 %v2611_v58, %v2486_v1 }
 0x679   : > { %v2619_v7 = vadd.f32 %v2614_v61, %v2487_v5 }
 0x694   : > { %v2727_v8 = vpop.f32.mrb[32].mxu0 }
 0x695   : > { %v2734_v9 = vadd.f32 %v2727_v8, %v2618_v6  ;;  %v4264_v10 = vpop.f32.mrb[33].mxu0 }
 0x696   : > { %v2730_v14 = vpop.f32.mrb[34].mxu0 }
 0x697   : > { %v2735_v15 = vadd.f32 %v2730_v14, %v2619_v7  ;;  %v4265_v16 = vpop.f32.mrb[35].mxu0  ;;  %v5453_v18 = vadd.f32 %v3668_v13, %v2734_v9  ;;  %v2926_v7 = vld [vmem:[#allocation2 + $0x4] sm:$0x8] }
 0x698   : > { %v4581_v16 = vld [vmem:[%s5633_s15 + $0x88] sm:$0xff]  }
 0x699   : > { %v5455_v17 = vadd.f32 %v3668_v13, %v2735_v15 }
 0x69b   : > { %v2744_v19 = vadd.f32 %v5455_v17, %v5453_v18 }
 0x69d   : > { %v2745_v20 = vrot.slane %v2744_v19, 4 }
 0x69f   : > { %v2746_v21 = vadd.f32 %v2745_v20, %v2744_v19 }
 0x6a1   : > { %v2747_v24 = vrot.slane %v2746_v21, 2 }
 0x6a3   : > { %v2748_v3 = vadd.f32 %v2747_v24, %v2746_v21 }
 0x6a5   : > { %v2749_v25 = vrot.slane %v2748_v3, 1 }
 0x6a7   : > { %v2750_v26 = vadd.f32 %v2749_v25, %v2748_v3  ;;  %v4582_v3 = vld [vmem:[%s5633_s15 + $0x90] sm:$0xff]  }
 0x6a9   : > { %v2751_v27 = vmul.f32 0.0625, %v2750_v26  ;;  %v4583_v26 = vld [vmem:[%s5633_s15 + $0x98] sm:$0xff]  }
 0x6ab   : > { %v2752_v28 = vpack.c.bf16 %v2751_v27, %v2751_v27  ;;  %v4584_v27 = vld [vmem:[%s5633_s15 + $0xa0] sm:$0xff]  }
 0x6ad   : > { %4283 = vmatmul.mubr.bf16.vlgmr.msra.gmra.mrb[40].mxu1 %v2752_v28 }
 0x6ae   : > { %4328 = vmatprep.mubr.msk.bf16.mxu1 %vm4733_vm0, %v4732_v0  ;;  %4313 = vmatpush3.bf16.msra.mxu1 %v4564_v40 }
 0x6af   : > { %4314 = vmatprep.subr.bf16.mxu1 %v4732_v0 }
 0x6b2   : > { %4315 = vmatpush3.bf16.msra.mxu1 %v4566_v59 }
 0x6b3   : > { %4316 = vmatprep.subr.bf16.mxu1 %v4732_v0 }
 0x6b6   : > { %4317 = vmatpush3.bf16.msra.mxu1 %v4568_v11 }
 0x6b7   : > { %4318 = vmatprep.subr.bf16.mxu1 %v4732_v0 }
 0x6ba   : > { %4319 = vmatpush3.bf16.msra.mxu1 %v4570_v44 }
 0x6bb   : > { %4320 = vmatprep.subr.bf16.mxu1 %v4732_v0 }
 0x6be   : > { %4321 = vmatpush3.bf16.msra.mxu1 %v4572_v46 }
 0x6bf   : > { %4322 = vmatprep.subr.bf16.mxu1 %v4732_v0 }
 0x6c2   : > { %4323 = vmatpush3.bf16.msra.mxu1 %v4574_v48 }
 0x6c3   : > { %4324 = vmatprep.subr.bf16.mxu1 %v4732_v0 }
 0x6c6   : > { %4325 = vmatpush3.bf16.msra.mxu1 %v4578_v49 }
 0x6c7   : > { %4326 = vmatprep.subr.bf16.mxu1 %v4732_v0 }
 0x6ca   : > { %4327 = vmatpush3.bf16.msra.mxu1 %v4580_v50 }
 0x780   : > { %v2835_v29 = vpop.f32.mrb[40].mxu1 }
 0x781   : > { %v2841_v32 = vmax.f32 %v2835_v29, 0.0  ;;  %v4284_v33 = vpop.f32.mrb[41].mxu1  ;;  %v4585_v29 = vld [vmem:[%s5633_s15 + $0xa8] sm:$0xff]  }
 0x782   : > { %v2838_v34 = vpop.f32.mrb[42].mxu1 }
 0x783   : > { %v2842_v35 = vpack.c.bf16 %v2841_v32, %v2841_v32  ;;  %v4285_v38 = vpop.f32.mrb[43].mxu1  ;;  %v4589_v32 = vld [vmem:[#allocation2 + $0x10] ss:$0 sps:$4 sm:$0x11]  }
 0x784   : > { %v4586_v34 = vld [vmem:[%s5633_s15 + $0xb0] sm:$0xff]   ;;  %v3204_v38 = vshll.u32 %v4589_v32, 16 }
 0x785   : > { %4289 = vmatmul.mubr.msk.bf16.vlgmr.msra.gmra.mrb[36].mxu0 %vm1344_vm3, %v2842_v35 }
 0x786   : > { %4308 = vmatprep.mubr.msk.bf16.mxu0 %vm4733_vm0, %v4732_v0  ;;  %4293 = vmatpush3.bf16.msra.mxu0 %v4561_v30  ;;  %v4587_v30 = vld [vmem:[%s5633_s15 + $0xb8] sm:$0xff]   ;;  %v3206_v40 = vrot.slane %v3204_v38, 1 }
 0x787   : > { %4294 = vmatprep.subr.bf16.mxu0 %v4732_v0 }
 0x78a   : > { %4295 = vmatpush3.bf16.msra.mxu0 %v4562_v39 }
 0x78b   : > { %4296 = vmatprep.subr.bf16.mxu0 %v4732_v0 }
 0x78e   : > { %4297 = vmatpush3.bf16.msra.mxu0 %v4563_v31 }
 0x78f   : > { %4298 = vmatprep.subr.bf16.mxu0 %v4732_v0 }
 0x792   : > { %4299 = vmatpush3.bf16.msra.mxu0 %v4565_v41 }
 0x793   : > { %4300 = vmatprep.subr.bf16.mxu0 %v4732_v0 }
 0x796   : > { %4301 = vmatpush3.bf16.msra.mxu0 %v4567_v42 }
 0x797   : > { %4302 = vmatprep.subr.bf16.mxu0 %v4732_v0 }
 0x79a   : > { %4303 = vmatpush3.bf16.msra.mxu0 %v4569_v43 }
 0x79b   : > { %4304 = vmatprep.subr.bf16.mxu0 %v4732_v0 }
 0x79e   : > { %4305 = vmatpush3.bf16.msra.mxu0 %v4571_v45 }
 0x79f   : > { %4306 = vmatprep.subr.bf16.mxu0 %v4732_v0 }
 0x7a2   : > { %4307 = vmatpush3.bf16.msra.mxu0 %v4573_v47 }
 0x7a3   : > { %4332 = vmatprep.subr.bf16.mxu0 %v4732_v0 }
 0x858   : > { %v2883_v51 = vpop.f32.mrb[36].mxu0 }
 0x859   : > { %v3678_v52 = vmul.f32 -1.442695, %v2883_v51  ;;  %v4290_v53 = vpop.f32.mrb[37].mxu0 }
 0x85a   : > { %v2886_v54 = vpop.f32.mrb[38].mxu0 }
 0x85b   : > { %4594 = vpow2.f32 %v3678_v52  ;;  %v4291_v55 = vpop.f32.mrb[39].mxu0 }
 0x865   : > { %v4595_v56 = vpop.eup %4594 }
 0x866   : > { %v2892_v57 = vadd.f32 1.0, %v4595_v56 }
 0x868   : > { %4596 = vrcp.f32 %v2892_v57 }
 0x872   : > { %v4597_v58 = vpop.eup %4596 }
 0x873   : > { %v2898_v60 = vrot.slane %v4597_v58, %v1400_v23 }
 0x875   : > { %v2899_v61 = vmul.f32 %v2898_v60, %v5453_v18  ;;  %v2900_v62 = vmul.f32 %v2898_v60, %v5455_v17 }
 0x877   : > { %v2901_v63 = vadd.f32 %v2899_v61, %v5204_v36  ;;  %v2902_v1 = vadd.f32 %v2900_v62, %v5206_v37 }
 0x879   : > { %vm2903_vm10 = vcmp.ge.f32.partialorder %v2901_v63, 0.0  ;;  %vm2904_vm11 = vcmp.ge.f32.partialorder %v2902_v1, 0.0  ;;  %v2905_v2 = vmul.f32 0.2, %v2901_v63  ;;  %v2906_v4 = vmul.f32 0.2, %v2902_v1 }
 0x87b   : > { %v2907_v5 = vsel %vm2903_vm10, %v2901_v63, %v2905_v2  ;;  %v2908_v12 = vsel %vm2904_vm11, %v2902_v1, %v2906_v4 }
 0x87c   : > { %v3776_v6 = vpack.c.bf16 %v2908_v12, %v2907_v5 }
 0x87e   : > { %3781 = vst [vmem:[#allocation2 + $0x8] sm:$0xff] %v3776_v6  }
 0x885   : > { %v2927_v23 = vld [vmem:[#allocation2 + $0x8] sm:$0xf]  ;;  %v2928_v8 = vld [vmem:[#allocation2 + $0xc] sm:$0xf] }
 0x886   : > { %v3697_v9 = vcombine.low %v2927_v23, %v2928_v8  ;;  %v3706_v10 = vcombine.low %v2926_v7, %v2927_v23  ;;  %v3707_v36 = vcombine.low %v2928_v8, %v2928_v8  ;;  %v4588_v28 = vld [vmem:[#allocation2 + $0x8] sm:$0xff]  }
 0x887   : > { %v3199_v33 = vshll.u32 %v4588_v28, 16  ;;  %v3197_v39 = vshrl.u32 %v4588_v28, 16 }
 0x888   : > { %4309 = vmatmul.mubr.bf16.vlgmr.msra.gmra.mrb[40].mxu0 %v3697_v9  ;;  %v3062_v37 = vshrl.u32 %v3706_v10, 16  ;;  %v3065_v13 = vshll.u32 %v3706_v10, 16  ;;  %v3070_v14 = vshrl.u32 %v3707_v36, 16  ;;  %v3073_v15 = vshll.u32 %v3707_v36, 16 }
 0x889   : > { %4333 = vmatpush3.bf16.msra.mxu0 %v4579_v22  ;;  %4348 = vmatprep.mubr.msk.bf16.mxu0 %vm4733_vm0, %v4732_v0  ;;  %v3201_v35 = vrot.slane %v3199_v33, 1  ;;  %vm3340_vm0 = vcmask 125952  }
 0x88a   : > { %4334 = vmatprep.subr.bf16.mxu0 %v4732_v0  ;;  %v3064_v18 = vrot.slane %v3062_v37, 3  ;;  %v3067_v17 = vrot.slane %v3065_v13, 4  ;;  %v3072_v19 = vrot.slane %v3070_v14, 3  ;;  %v3075_v20 = vrot.slane %v3073_v15, 4 }
 0x88b   : > { %v3202_v31 = vor.u32 %v3201_v35, %v3197_v39 }
 0x88c   : > { %v3068_v21 = vor.u32 %v3067_v17, %v3064_v18  ;;  %v3076_v24 = vor.u32 %v3075_v20, %v3072_v19 }
 0x88d   : > { %4335 = vmatpush3.bf16.msra.mxu0 %v4581_v16  ;;  %v3207_v41 = vsel %vm766_vm14, %v3202_v31, %v3206_v40 }
 0x88e   : > { %v3077_v25 = vsel %vm688_vm15, %v3068_v21, %v3076_v24  ;;  %4336 = vmatprep.subr.bf16.mxu0 %v4732_v0 }
 0x88f   : > { %4329 = vmatmul.mubr.bf16.vlgmr.msra.gmra.mrb[44].mxu1 %v3077_v25 }
 0x891   : > { %4337 = vmatpush3.bf16.msra.mxu0 %v4582_v3 }
 0x892   : > { %4338 = vmatprep.subr.bf16.mxu0 %v4732_v0 }
 0x895   : > { %4339 = vmatpush3.bf16.msra.mxu0 %v4583_v26 }
 0x896   : > { %4340 = vmatprep.subr.bf16.mxu0 %v4732_v0 }
 0x899   : > { %4341 = vmatpush3.bf16.msra.mxu0 %v4584_v27 }
 0x89a   : > { %4342 = vmatprep.subr.bf16.mxu0 %v4732_v0 }
 0x89d   : > { %4343 = vmatpush3.bf16.msra.mxu0 %v4585_v29 }
 0x89e   : > { %4344 = vmatprep.subr.bf16.mxu0 %v4732_v0 }
 0x8a1   : > { %4345 = vmatpush3.bf16.msra.mxu0 %v4586_v34 }
 0x8a2   : > { %4346 = vmatprep.subr.bf16.mxu0 %v4732_v0  ;;  %v3742_v0 = vld [vmem:[%s5679_s19] ss:$0 sm:$0xff]  ;;  %s4660_s19 = sshll.u32 %s4735_s28, 4  ;;  %s4661_s19 = int_to_ptr.vmem [resolvable:$false] %s4660_s19 }
 0x8a3   : > { %s4662_s16 = scalar_lea.vmem %s4661_s19, 128  ;;  %p4663_p4 = scmp.lt.s32.totalorder %s5578_s21, %s4661_s19 }
 0x8a4   : > { %p4664_p7 = scmp.lt.s32.totalorder %s4662_s16, %s4656_s22 }
 0x8a5   : > { %4347 = vmatpush3.bf16.msra.mxu0 %v4587_v30 }
 0x8a6   : > { %p4665_p8 = por %p4664_p7, %p4663_p4 }
 0x8a8   : > { %4349 = vmatmul.mubr.bf16.vlgmr.msra.gmra.mrb[44].mxu0 %v3207_v41  ;;  %p4666_p11 = pnand %p4665_p8, %p4659_p3 }
 0x95b   : > { %v3050_v59 = vpop.f32.mrb[40].mxu0 }
 0x95c   : > { %v4310_v42 = vpop.f32.mrb[41].mxu0 }
 0x95d   : > { %v3053_v11 = vpop.f32.mrb[42].mxu0 }
 0x95e   : > { %v4311_v43 = vpop.f32.mrb[43].mxu0 }
 0x962   : > { %v3161_v44 = vpop.f32.mrb[44].mxu1 }
 0x963   : > { %v3162_v45 = vadd.f32 %v3161_v44, %v3050_v59  ;;  %v4330_v46 = vpop.f32.mrb[45].mxu1 }
 0x964   : > { %v3164_v47 = vpop.f32.mrb[46].mxu1 }
 0x965   : > { %v3165_v48 = vadd.f32 %v3164_v47, %v3053_v11  ;;  %v4331_v49 = vpop.f32.mrb[47].mxu1 }
 0x97b   : > { %v3291_v50 = vpop.f32.mrb[44].mxu0 }
 0x97c   : > { %v3298_v51 = vadd.f32 %v3291_v50, %v3162_v45  ;;  %v4350_v52 = vpop.f32.mrb[45].mxu0 }
 0x97d   : > { %v3294_v53 = vpop.f32.mrb[46].mxu0 }
 0x97e   : > { %v3299_v54 = vadd.f32 %v3294_v53, %v3165_v48  ;;  %v4351_v55 = vpop.f32.mrb[47].mxu0  ;;  %v3306_v56 = vadd.f32 %v3742_v0, %v3298_v51 }
 0x980   : > { %3308 = vxpose.xlu0.b32.start [1/2] (short) (narrow) %v3306_v56, 8  ;;  %v3307_v57 = vadd.f32 %v3742_v0, %v3299_v54 }
 0x984   : > { %3309 = vxpose.xlu0.b32.end [2/2] (short) (narrow) %v3307_v57, 8 }
 0xa00   : > { %v3324_v58 = vpop.trf.xlu0 }
 0xa01   : > { %3341 = vst.msk [vmem:[%s571_s1] sm:$0xf] %vm3340_vm0, %v3324_v58 }
 0xa02   : > { %4669 = shalt.err (!%p4666_p11)
}
 0xa03   : > { %s4670_s23 = scalar_lea.hbm %s5576_s24, 64  ;;  %s4674_s29 = scalar_lea.hbm %s5682_s20, 128 }
 0xa04   : > { %p4671_p13 = scmp.ne.s32.totalorder %s5576_s24, %s4670_s23  ;;  %p4675_p6 = scmp.lt.u32.totalorder %s5576_s24, %s5682_s20 }
 0xa05   : > { %p4676_p9 = scmp.lt.u32.totalorder %s4674_s29, %s4670_s23  ;;  %p4678_p12 = scmp.lt.u32.totalorder %s4670_s23, %s5576_s24 }
 0xa06   : > { %p4672_p5 = pnand %p4671_p13, %p5683_p1 }
 0xa07   : > { %p4677_p10 = por %p4676_p9, %p4675_p6 }
 0xa08   : > { %p4673_p0 = pneg %p4672_p5 }
 0xa09   : > { %p4679_p2 = por %p4678_p12, %p4677_p10 }
 0xa0b   : > { %p4680_p3 = pnand %p4679_p2, %p4673_p0 }
 0xa0d   : > { %4683 = shalt.err (!%p4680_p3)
}
 0xa0e   : > { %4360 = dma.vmem_to_hbm [thread:$0]  (%p5683_p1), %s5578_s21, 64, %s5576_s24, %s3343_s27  }
 0xa0f PF: > { %s5684_s22 = sld [smem:[#allocation14_spill]]  ;;  %s5685_s28 = sld [smem:[#allocation12_spill]] }
 0xa10   : > { %s5686_s19 = sld [smem:[#allocation18_spill]] }
 0xa15   : > { %p4377_p4 = scmp.ge.s32.totalorder %s5684_s22, 2  ;;  %s3368_s16 = sand.u32 1, %s5685_s28  }
 0xa16   : > { %p5687_p7 = scmp.ne.s32.totalorder %s5686_s19, 0  ;;  %s3369_s17 = scalar_lea.sflag [#allocation5], %s3368_s16 }
 0xa18   : > { %p4370_p8 = pnand %p4377_p4, %p5687_p7 }
 0xa1a   : > { %4709 = dma.done.wait (!%p4370_p8), %s3369_s17, 64  }
 0xa1b   : > { %4711 = vsyncadd (!%p4370_p8), %s3369_s17, 4294967232  ;;  %s5688_s27 = sld [smem:[#allocation15_spill]]  ;;  %s5689_s23 = sld [smem:[#allocation13_spill]] }
 0xa1c   : > { %s5690_s26 = sld [smem:[#allocation16_spill]]  ;;  %s5691_s24 = smov %s4718_s25 }
 0xa21   : > { %p29_p11 = scmp.ge.s32.totalorder %s5688_s27, 4   ;;  %s5692_s25 = smov %s5689_s23 }
 0xa23   :  { %31 = sbr.rel (!%p29_p11) target bundleno = 10 (0xa), region = 146 }
 0xa2a   :  { %3374 = vsyncpa [#allocation4], 1 }
 0xa2b   :  { %3376 = vsyncpa [#allocation4 + $0x1], 1 }
 0xa2c   :  { %3377 = vsyncpa [#allocation7], 1 }
 0xa2d   :  { %3378 = vsyncpa [#allocation5], 1 }
 0xa2e   :  { %3380 = vsyncpa [#allocation5 + $0x1], 1 }

</bundles_post_ra>
